<compile_context>
chip_gen: v6e
topology: v6e:2x2x1
jax: 0.10.0
libtpu: 0.0.40
codegen_flags: <defaults>
</compile_context>

<pallas_src>
import functools

import jax
import jax.numpy as jnp
from jax.experimental import pallas as pl
from jax.experimental.pallas import tpu as pltpu

LEAKY_SLOPE = 0.01  # torch.nn.LeakyReLU default negative_slope

_HEAD_DIMS = [(2048, 512), (512, 128), (128, 32), (32, 1)]
_WEIGHT_VMEM_BYTES = (sum(i * o for i, o in _HEAD_DIMS) * 2     # bf16 weights
                      + sum(o for _, o in _HEAD_DIMS) * 4)      # f32 biases


def _leaky_relu(x):
    return jnp.where(x > 0, x, LEAKY_SLOPE * x)


def _round_up(x, m):
    return -(-x // m) * m


def head_kernel(x_ref, w1_ref, b1_ref, w2_ref, b2_ref,
                w3_ref, b3_ref, w4_ref, b4_ref, out_ref):
    """Fused avg-pool + 4-layer MLP head for one batch tile.

    x_ref : (bm, HW, C) lane-dense (C=2048 on lanes) bf16 feature-map tile
    wN    : (in, out) transposed Linear weights, bf16 (w1 pre-scaled by 1/(H*W))
    bN    : (1, out) f32 biases
    out   : (bm, 1) f32
    """
    # AdaptiveAvgPool2d((1,1)) + view(B, -1): sum over the spatial (sublane) axis
    # with f32 accumulation; the 1/(H*W) factor is folded into w1 on the host.
    feat = jnp.sum(x_ref[...], axis=1, dtype=jnp.float32)           # (bm, C)
    feat = feat.astype(w1_ref.dtype)                                 # bf16 for MXU

    # Linear(2048, 512) -> Dropout (identity @ eval) -> LeakyReLU
    h = jnp.dot(feat, w1_ref[...], preferred_element_type=jnp.float32) + b1_ref[...]
    h = _leaky_relu(h).astype(w2_ref.dtype)
    # Linear(512, 128) -> Dropout -> LeakyReLU
    h = jnp.dot(h, w2_ref[...], preferred_element_type=jnp.float32) + b2_ref[...]
    h = _leaky_relu(h).astype(w3_ref.dtype)
    # Linear(128, 32) -> Dropout -> LeakyReLU
    h = jnp.dot(h, w3_ref[...], preferred_element_type=jnp.float32) + b3_ref[...]
    h = _leaky_relu(h).astype(w4_ref.dtype)
    # Linear(32, 1)
    out = jnp.dot(h, w4_ref[...], preferred_element_type=jnp.float32) + b4_ref[...]
    out_ref[...] = out.astype(out_ref.dtype)


def init_head_params(key):
    """Deterministic init mimicking torch.nn.Linear default U[-1/sqrt(fan_in), +].

    Weights are stored transposed: (in_features, out_features).
    """
    params = {}
    for i, (fan_in, fan_out) in enumerate(_HEAD_DIMS, start=1):
        key, kw, kb = jax.random.split(key, 3)
        bound = 1.0 / (fan_in ** 0.5)
        params[f"w{i}"] = jax.random.uniform(
            kw, (fan_in, fan_out), jnp.float32, minval=-bound, maxval=bound)
        params[f"b{i}"] = jax.random.uniform(
            kb, (1, fan_out), jnp.float32, minval=-bound, maxval=bound)
    return params


def _vmem_capacity_bytes():
    try:
        cap = int(getattr(pltpu.get_tpu_info(), "vmem_capacity_bytes", 0))
        if cap > 0:
            return cap
    except Exception:
        pass
    return 64 << 20  # conservative (v7x-sized) fallback


def _plan(B, HW, C):
    """Pick the batch tile (bm), grid length and a scoped-VMEM limit.

    All byte counts use the (16,128)-padded bf16 tile footprint, not raw sizes.
    """
    cap = _vmem_capacity_bytes()
    small_vmem = cap <= (64 << 20)                 # v7x-class: 64 MiB / TensorCore
    x_budget = (20 << 20) if small_vmem else (48 << 20)
    limit_cap = (52 << 20) if small_vmem else (96 << 20)

    itemsize = 2                                   # feature map streamed as bf16
    sub = 16 if itemsize == 2 else 8               # sublane tile multiple
    # Tile-padded bytes of ONE batch row of the (bm, HW, C) block.
    per_row = _round_up(HW, sub) * _round_up(C, 128) * itemsize
    # Budget covers the double-buffered bf16 tile plus in-kernel f32 reduce
    # staging (conservatively another ~2x the tile), i.e. ~4x per_row per row.
    bm_cap = max(8, (x_budget // (4 * per_row)) // 8 * 8)
    # Keep >= 2 grid steps when the batch allows it: megacore split + pipelining.
    bm_split = _round_up(-(-B // 2), 8) if B > 8 else 8
    bm = int(min(bm_cap, bm_split))
    n_tiles = -(-B // bm)

    vmem_limit = (4 * bm * per_row                 # x double-buffer + f32 staging
                  + 2 * _WEIGHT_VMEM_BYTES         # resident weights (2 buffers)
                  + 2 * _round_up(bm, 8) * 128 * 4 # output block + small activations
                  + (4 << 20))                     # Mosaic internal scratch slack
    vmem_limit = int(min(max(vmem_limit, 32 << 20), limit_cap))
    return bm, n_tiles, vmem_limit


@functools.partial(jax.jit, static_argnums=(2, 3, 4))
def _forward_impl(feat_map, params, bm, n_tiles, vmem_limit):
    B, C, H, W = feat_map.shape
    HW = H * W
    # Lane-dense relayout + bf16 streaming: NCHW -> (B, HW, C), C=2048 on lanes.
    x = feat_map.astype(jnp.bfloat16).transpose(0, 2, 3, 1).reshape(B, HW, C)
    Bp = n_tiles * bm
    if Bp != B:
        x = jnp.pad(x, ((0, Bp - B), (0, 0), (0, 0)))   # zero rows, sliced off below

    # Fold the 1/(H*W) average-pool scale into w1; bf16 weights, f32 biases.
    w1 = (params["w1"].astype(jnp.float32) * (1.0 / float(HW))).astype(jnp.bfloat16)
    w2 = params["w2"].astype(jnp.bfloat16)
    w3 = params["w3"].astype(jnp.bfloat16)
    w4 = params["w4"].astype(jnp.bfloat16)
    b1 = params["b1"].astype(jnp.float32)
    b2 = params["b2"].astype(jnp.float32)
    b3 = params["b3"].astype(jnp.float32)
    b4 = params["b4"].astype(jnp.float32)

    const2 = lambda i: (0, 0)   # weights/biases stay resident across the batch grid

    out = pl.pallas_call(
        head_kernel,
        out_shape=jax.ShapeDtypeStruct((Bp, 1), jnp.float32),
        grid_spec=pltpu.PrefetchScalarGridSpec(
            num_scalar_prefetch=0,
            grid=(n_tiles,),
            in_specs=[
                pl.BlockSpec((bm, HW, C), lambda i: (i, 0, 0)),   # feature-map tile
                pl.BlockSpec((C, 512), const2), pl.BlockSpec((1, 512), const2),
                pl.BlockSpec((512, 128), const2), pl.BlockSpec((1, 128), const2),
                pl.BlockSpec((128, 32), const2), pl.BlockSpec((1, 32), const2),
                pl.BlockSpec((32, 1), const2), pl.BlockSpec((1, 1), const2),
            ],
            out_specs=pl.BlockSpec((bm, 1), lambda i: (i, 0)),
        ),
        compiler_params=pltpu.CompilerParams(
            dimension_semantics=("parallel",),
            vmem_limit_bytes=vmem_limit,
        ),
    )(x, w1, b1, w2, b2, w3, b3, w4, b4)
    return out[:B]


def seresnext_wind_forward(feat_map, params):
    """feat_map: (B, 2048, H, W) backbone output, NCHW exactly as PyTorch emits it."""
    B, C, H, W = feat_map.shape
    assert C == 2048, "head expects the 2048-channel SE-ResNeXt feature map"
    bm, n_tiles, vmem_limit = _plan(B, H * W, C)
    return _forward_impl(feat_map, params, bm, n_tiles, vmem_limit)


def _reference_forward(feat_map, params):
    """Plain-JAX f32 reference for correctness checking."""
    feat = jnp.mean(feat_map.astype(jnp.float32), axis=(2, 3))   # (B, 2048)
    h = _leaky_relu(feat @ params["w1"] + params["b1"])
    h = _leaky_relu(h @ params["w2"] + params["b2"])
    h = _leaky_relu(h @ params["w3"] + params["b3"])
    return h @ params["w4"] + params["b4"]


if __name__ == "__main__":
    key = jax.random.PRNGKey(0)
    k_x, k_p = jax.random.split(key)

    # Small synthetic backbone feature map: batch=2, channels=2048 (fixed by the
    # head's Linear(2048, 512)), spatial 4x4.
    B, C, H, W = 2, 2048, 4, 4
    feat_map = jax.random.normal(k_x, (B, C, H, W), dtype=jnp.float32)

    params = init_head_params(k_p)

    out = seresnext_wind_forward(feat_map, params)
    out = jax.block_until_ready(out)

    ref = _reference_forward(feat_map, params)
    assert out.shape == (B, 1), out.shape
    # bf16 feature-map streaming + bf16 MXU matmuls (f32 accumulation) vs f32 ref.
    assert jnp.allclose(out, ref, atol=3e-2, rtol=3e-2), (out, ref)

    print("KERNEL_OK")
</pallas_src>

<mosaic_0001>
module attributes {stable_mosaic.version = 11 : i64} {
  func.func @head_kernel(%arg0: i32, %arg1: memref<8x16x2048xbf16, #tpu.memory_space<vmem>>, %arg2: memref<2048x512xbf16, #tpu.memory_space<vmem>>, %arg3: memref<1x512xf32, #tpu.memory_space<vmem>>, %arg4: memref<512x128xbf16, #tpu.memory_space<vmem>>, %arg5: memref<1x128xf32, #tpu.memory_space<vmem>>, %arg6: memref<128x32xbf16, #tpu.memory_space<vmem>>, %arg7: memref<1x32xf32, #tpu.memory_space<vmem>>, %arg8: memref<32x1xbf16, #tpu.memory_space<vmem>>, %arg9: memref<1x1xf32, #tpu.memory_space<vmem>>, %arg10: memref<8x1xf32, #tpu.memory_space<vmem>>) attributes {dimension_semantics = [#tpu.dimension_semantics<parallel>], iteration_bounds = array<i64: 1>, scalar_prefetch = 0 : i64, scratch_operands = 0 : i64, tpu.core_type = #tpu.core_type<tc>, window_params = [{transform_indices = @transform_0, window_bounds = array<i64: 8, 16, 2048>}, {pipeline_mode = #tpu.pipeline_mode<synchronous>, transform_indices = @transform_1, window_bounds = array<i64: 2048, 512>}, {pipeline_mode = #tpu.pipeline_mode<synchronous>, transform_indices = @transform_2, window_bounds = array<i64: 1, 512>}, {pipeline_mode = #tpu.pipeline_mode<synchronous>, transform_indices = @transform_3, window_bounds = array<i64: 512, 128>}, {pipeline_mode = #tpu.pipeline_mode<synchronous>, transform_indices = @transform_4, window_bounds = array<i64: 1, 128>}, {pipeline_mode = #tpu.pipeline_mode<synchronous>, transform_indices = @transform_5, window_bounds = array<i64: 128, 32>}, {pipeline_mode = #tpu.pipeline_mode<synchronous>, transform_indices = @transform_6, window_bounds = array<i64: 1, 32>}, {pipeline_mode = #tpu.pipeline_mode<synchronous>, transform_indices = @transform_7, window_bounds = array<i64: 32, 1>}, {pipeline_mode = #tpu.pipeline_mode<synchronous>, transform_indices = @transform_8, window_bounds = array<i64: 1, 1>}, {transform_indices = @transform_9, window_bounds = array<i64: 8, 1>}]} {
    %c0 = arith.constant 0 : index
    %c0_0 = arith.constant 0 : index
    %c0_1 = arith.constant 0 : index
    %0 = vector.load %arg1[%c0, %c0_0, %c0_1] : memref<8x16x2048xbf16, #tpu.memory_space<vmem>>, vector<8x16x2048xbf16>
    %1 = arith.extf %0 : vector<8x16x2048xbf16> to vector<8x16x2048xf32>
    %cst = arith.constant dense<0.000000e+00> : vector<8x2048xf32>
    %2 = vector.multi_reduction <add>, %1, %cst [1] : vector<8x16x2048xf32> to vector<8x2048xf32>
    %3 = arith.truncf %2 : vector<8x2048xf32> to vector<8x2048xbf16>
    %c0_2 = arith.constant 0 : index
    %c0_3 = arith.constant 0 : index
    %4 = vector.load %arg2[%c0_2, %c0_3] : memref<2048x512xbf16, #tpu.memory_space<vmem>>, vector<2048x512xbf16>
    %cst_4 = arith.constant dense<0.000000e+00> : vector<8x512xf32>
    %5 = tpu.matmul %3, %4, %cst_4 {dimension_numbers = #tpu.dot_dimension_numbers<[1], [0], [0], [1], [0, 0, 1, 1], [], []>} : vector<8x2048xbf16>, vector<2048x512xbf16>, vector<8x512xf32> -> vector<8x512xf32>
    %c0_5 = arith.constant 0 : index
    %c0_6 = arith.constant 0 : index
    %6 = vector.load %arg3[%c0_5, %c0_6] : memref<1x512xf32, #tpu.memory_space<vmem>>, vector<1x512xf32>
    %7 = vector.broadcast %6 : vector<1x512xf32> to vector<8x512xf32>
    %8 = arith.addf %5, %7 : vector<8x512xf32>
    %cst_7 = arith.constant 0.000000e+00 : f32
    %9 = vector.broadcast %cst_7 : f32 to vector<8x512xf32>
    %10 = arith.cmpf ogt, %8, %9 : vector<8x512xf32>
    %cst_8 = arith.constant 0.00999999977 : f32
    %11 = vector.broadcast %cst_8 : f32 to vector<8x512xf32>
    %12 = arith.mulf %11, %8 : vector<8x512xf32>
    %13 = arith.select %10, %8, %12 : vector<8x512xi1>, vector<8x512xf32>
    %14 = arith.truncf %13 : vector<8x512xf32> to vector<8x512xbf16>
    %c0_9 = arith.constant 0 : index
    %c0_10 = arith.constant 0 : index
    %15 = vector.load %arg4[%c0_9, %c0_10] : memref<512x128xbf16, #tpu.memory_space<vmem>>, vector<512x128xbf16>
    %cst_11 = arith.constant dense<0.000000e+00> : vector<8x128xf32>
    %16 = tpu.matmul %14, %15, %cst_11 {dimension_numbers = #tpu.dot_dimension_numbers<[1], [0], [0], [1], [0, 0, 1, 1], [], []>} : vector<8x512xbf16>, vector<512x128xbf16>, vector<8x128xf32> -> vector<8x128xf32>
    %c0_12 = arith.constant 0 : index
    %c0_13 = arith.constant 0 : index
    %17 = vector.load %arg5[%c0_12, %c0_13] : memref<1x128xf32, #tpu.memory_space<vmem>>, vector<1x128xf32>
    %18 = vector.broadcast %17 : vector<1x128xf32> to vector<8x128xf32>
    %19 = arith.addf %16, %18 : vector<8x128xf32>
    %cst_14 = arith.constant 0.000000e+00 : f32
    %20 = vector.broadcast %cst_14 : f32 to vector<8x128xf32>
    %21 = arith.cmpf ogt, %19, %20 : vector<8x128xf32>
    %cst_15 = arith.constant 0.00999999977 : f32
    %22 = vector.broadcast %cst_15 : f32 to vector<8x128xf32>
    %23 = arith.mulf %22, %19 : vector<8x128xf32>
    %24 = arith.select %21, %19, %23 : vector<8x128xi1>, vector<8x128xf32>
    %25 = arith.truncf %24 : vector<8x128xf32> to vector<8x128xbf16>
    %c0_16 = arith.constant 0 : index
    %c0_17 = arith.constant 0 : index
    %26 = vector.load %arg6[%c0_16, %c0_17] : memref<128x32xbf16, #tpu.memory_space<vmem>>, vector<128x32xbf16>
    %cst_18 = arith.constant dense<0.000000e+00> : vector<8x32xf32>
    %27 = tpu.matmul %25, %26, %cst_18 {dimension_numbers = #tpu.dot_dimension_numbers<[1], [0], [0], [1], [0, 0, 1, 1], [], []>} : vector<8x128xbf16>, vector<128x32xbf16>, vector<8x32xf32> -> vector<8x32xf32>
    %c0_19 = arith.constant 0 : index
    %c0_20 = arith.constant 0 : index
    %28 = vector.load %arg7[%c0_19, %c0_20] : memref<1x32xf32, #tpu.memory_space<vmem>>, vector<1x32xf32>
    %29 = vector.broadcast %28 : vector<1x32xf32> to vector<8x32xf32>
    %30 = arith.addf %27, %29 : vector<8x32xf32>
    %cst_21 = arith.constant 0.000000e+00 : f32
    %31 = vector.broadcast %cst_21 : f32 to vector<8x32xf32>
    %32 = arith.cmpf ogt, %30, %31 : vector<8x32xf32>
    %cst_22 = arith.constant 0.00999999977 : f32
    %33 = vector.broadcast %cst_22 : f32 to vector<8x32xf32>
    %34 = arith.mulf %33, %30 : vector<8x32xf32>
    %35 = arith.select %32, %30, %34 : vector<8x32xi1>, vector<8x32xf32>
    %36 = arith.truncf %35 : vector<8x32xf32> to vector<8x32xbf16>
    %c0_23 = arith.constant 0 : index
    %c0_24 = arith.constant 0 : index
    %37 = vector.load %arg8[%c0_23, %c0_24] : memref<32x1xbf16, #tpu.memory_space<vmem>>, vector<32x1xbf16>
    %cst_25 = arith.constant dense<0.000000e+00> : vector<8x1xf32>
    %38 = tpu.matmul %36, %37, %cst_25 {dimension_numbers = #tpu.dot_dimension_numbers<[1], [0], [0], [1], [0, 0, 1, 1], [], []>} : vector<8x32xbf16>, vector<32x1xbf16>, vector<8x1xf32> -> vector<8x1xf32>
    %c0_26 = arith.constant 0 : index
    %c0_27 = arith.constant 0 : index
    %39 = vector.load %arg9[%c0_26, %c0_27] : memref<1x1xf32, #tpu.memory_space<vmem>>, vector<1x1xf32>
    %40 = vector.broadcast %39 : vector<1x1xf32> to vector<8x1xf32>
    %41 = arith.addf %38, %40 : vector<8x1xf32>
    %c0_28 = arith.constant 0 : index
    %c0_29 = arith.constant 0 : index
    %42 = vector.load %arg10[%c0_28, %c0_29] : memref<8x1xf32, #tpu.memory_space<vmem>>, vector<8x1xf32>
    tpu.vector_store %arg10[%c0_28, %c0_29], %41 {strides = array<i32>} : memref<8x1xf32, #tpu.memory_space<vmem>>, vector<8x1xf32>,
    return
  }
  func.func @transform_0(%arg0: i32) -> (i32, i32, i32) {
    %c0_i32 = arith.constant 0 : i32
    %c0_i32_0 = arith.constant 0 : i32
    %c0_i32_1 = arith.constant 0 : i32
    return %arg0, %c0_i32, %c0_i32_0 : i32, i32, i32
  }
  func.func @transform_1(%arg0: i32) -> (i32, i32) {
    %c0_i32 = arith.constant 0 : i32
    %c0_i32_0 = arith.constant 0 : i32
    %c0_i32_1 = arith.constant 0 : i32
    return %c0_i32, %c0_i32_0 : i32, i32
  }
  func.func @transform_2(%arg0: i32) -> (i32, i32) {
    %c0_i32 = arith.constant 0 : i32
    %c0_i32_0 = arith.constant 0 : i32
    %c0_i32_1 = arith.constant 0 : i32
    return %c0_i32, %c0_i32_0 : i32, i32
  }
  func.func @transform_3(%arg0: i32) -> (i32, i32) {
    %c0_i32 = arith.constant 0 : i32
    %c0_i32_0 = arith.constant 0 : i32
    %c0_i32_1 = arith.constant 0 : i32
    return %c0_i32, %c0_i32_0 : i32, i32
  }
  func.func @transform_4(%arg0: i32) -> (i32, i32) {
    %c0_i32 = arith.constant 0 : i32
    %c0_i32_0 = arith.constant 0 : i32
    %c0_i32_1 = arith.constant 0 : i32
    return %c0_i32, %c0_i32_0 : i32, i32
  }
  func.func @transform_5(%arg0: i32) -> (i32, i32) {
    %c0_i32 = arith.constant 0 : i32
    %c0_i32_0 = arith.constant 0 : i32
    %c0_i32_1 = arith.constant 0 : i32
    return %c0_i32, %c0_i32_0 : i32, i32
  }
  func.func @transform_6(%arg0: i32) -> (i32, i32) {
    %c0_i32 = arith.constant 0 : i32
    %c0_i32_0 = arith.constant 0 : i32
    %c0_i32_1 = arith.constant 0 : i32
    return %c0_i32, %c0_i32_0 : i32, i32
  }
  func.func @transform_7(%arg0: i32) -> (i32, i32) {
    %c0_i32 = arith.constant 0 : i32
    %c0_i32_0 = arith.constant 0 : i32
    %c0_i32_1 = arith.constant 0 : i32
    return %c0_i32, %c0_i32_0 : i32, i32
  }
  func.func @transform_8(%arg0: i32) -> (i32, i32) {
    %c0_i32 = arith.constant 0 : i32
    %c0_i32_0 = arith.constant 0 : i32
    %c0_i32_1 = arith.constant 0 : i32
    return %c0_i32, %c0_i32_0 : i32, i32
  }
  func.func @transform_9(%arg0: i32) -> (i32, i32) {
    %c0_i32 = arith.constant 0 : i32
    %c0_i32_0 = arith.constant 0 : i32
    return %arg0, %c0_i32 : i32, i32
  }
}

</mosaic_0001>

<bundles_post_ra>
// kernel: _forward_impl.1
= control target key start
LH: loop header
LB: loop body
LE: loop exit
PB: predicated region body
PF: predicated region fallthrough
CT: control target
= control target key end

     0   :  { %vm2233_vm0 = vcmask 1041409   ;;  %vm2235_vm1 = vcmask 1042434   ;;  %vm2237_vm2 = vcmask 1043459   ;;  %vm2239_vm3 = vcmask 1044484   ;;  %s10749_s1 = inlined_call_operand.vmem [shape: bf16[2048,512], index: 1, kind: input, shape index: {}]   ;;  %s10750_s0 = inlined_call_operand.vmem [shape: bf16[8,16,2048], index: 0, kind: input, shape index: {}]   ;;  %s10751_s2 = inlined_call_operand.vmem [shape: f32[1,512], index: 2, kind: input, shape index: {}]   ;;  %s10752_s3 = inlined_call_operand.vmem [shape: bf16[512,128], index: 3, kind: input, shape index: {}]   ;;  %s10753_s5 = inlined_call_operand.vmem [shape: bf16[128,32], index: 5, kind: input, shape index: {}]   ;;  %s10754_s4 = inlined_call_operand.vmem [shape: f32[1,128], index: 4, kind: input, shape index: {}]   ;;  %s10755_s7 = inlined_call_operand.vmem [shape: bf16[32,1], index: 7, kind: input, shape index: {}]   ;;  %s10756_s8 = inlined_call_operand.<no memory space> [shape: f32[1,1], index: 8, kind: input, shape index: {}]   ;;  %s10757_s6 = inlined_call_operand.vmem [shape: f32[1,32], index: 6, kind: input, shape index: {}]   ;;  %s10758_s9 = inlined_call_operand.vmem [shape: f32[8,1], index: 9, kind: output, shape index: {}]  }
   0x1   :  { %v6795_v0 = vld [vmem:[%s10749_s1 + $0xe4] ss:$16 sps:$4 sm:$0xff]   ;;  %v6799_v2 = vld [vmem:[%s10749_s1 + $0xe0] ss:$16 sps:$4 sm:$0xff]   ;;  %vm2241_vm4 = vcmask 1045509   ;;  %vm2243_vm5 = vcmask 1046534  }
   0x2   :  { %v6797_v1 = vld [vmem:[%s10749_s1 + $0x2e4] ss:$16 sps:$4 sm:$0xff]   ;;  %4944 = vmatprep.subr.bf16.mxu0 %v6795_v0  ;;  %v6800_v3 = vld [vmem:[%s10749_s1 + $0x2e0] ss:$16 sps:$4 sm:$0xff]   ;;  %vm2245_vm6 = vcmask 1047559   ;;  %vm7607_vm11 = vmmov 0  }
   0x3   :  { %4985 = vmatprep.subr.bf16.mxu1 %v6797_v1  ;;  %v6801_v4 = vld [vmem:[%s10749_s1 + $0xc4] ss:$16 sps:$4 sm:$0xff]   ;;  %4945 = vmatpush1.bf16.msra.mxu0 %v6799_v2  ;;  %v6805_v6 = vld [vmem:[%s10749_s1 + $0xc0] ss:$16 sps:$4 sm:$0xff]   ;;  %vm6101_vm14 = vcmask 261120   ;;  %vm6145_vm15 = vcmask 7168  }
   0x4   :  { %4986 = vmatpush1.bf16.msra.mxu1 %v6800_v3  ;;  %v6803_v5 = vld [vmem:[%s10749_s1 + $0x2c4] ss:$16 sps:$4 sm:$0xff]   ;;  %4946 = vmatprep.subr.bf16.mxu0 %v6801_v4  ;;  %v6806_v7 = vld [vmem:[%s10749_s1 + $0x2c0] ss:$16 sps:$4 sm:$0xff]  }
   0x5   :  { %4987 = vmatprep.subr.bf16.mxu1 %v6803_v5  ;;  %v6807_v8 = vld [vmem:[%s10749_s1 + $0xa4] ss:$16 sps:$4 sm:$0xff]   ;;  %v6811_v10 = vld [vmem:[%s10749_s1 + $0xa0] ss:$16 sps:$4 sm:$0xff]  }
   0x6   :  { %v6809_v9 = vld [vmem:[%s10749_s1 + $0x2a4] ss:$16 sps:$4 sm:$0xff]   ;;  %v6812_v11 = vld [vmem:[%s10749_s1 + $0x2a0] ss:$16 sps:$4 sm:$0xff]  }
   0x7   :  { %4947 = vmatpush1.bf16.msra.mxu0 %v6805_v6  ;;  %v6813_v12 = vld [vmem:[%s10749_s1 + $0x84] ss:$16 sps:$4 sm:$0xff]   ;;  %v6817_v14 = vld [vmem:[%s10749_s1 + $0x80] ss:$16 sps:$4 sm:$0xff]  }
   0x8   :  { %4988 = vmatpush1.bf16.msra.mxu1 %v6806_v7  ;;  %4948 = vmatprep.subr.bf16.mxu0 %v6807_v8  ;;  %v6815_v13 = vld [vmem:[%s10749_s1 + $0x284] ss:$16 sps:$4 sm:$0xff]   ;;  %v6818_v15 = vld [vmem:[%s10749_s1 + $0x280] ss:$16 sps:$4 sm:$0xff]  }
   0x9   :  { %4989 = vmatprep.subr.bf16.mxu1 %v6809_v9  ;;  %v6819_v16 = vld [vmem:[%s10749_s1 + $0x64] ss:$16 sps:$4 sm:$0xff]   ;;  %v6823_v18 = vld [vmem:[%s10749_s1 + $0x60] ss:$16 sps:$4 sm:$0xff]  }
   0xa   :  { %v6821_v17 = vld [vmem:[%s10749_s1 + $0x264] ss:$16 sps:$4 sm:$0xff]   ;;  %v6824_v19 = vld [vmem:[%s10749_s1 + $0x260] ss:$16 sps:$4 sm:$0xff]  }
   0xb   :  { %4949 = vmatpush1.bf16.msra.mxu0 %v6811_v10  ;;  %v6825_v20 = vld [vmem:[%s10749_s1 + $0x44] ss:$16 sps:$4 sm:$0xff]   ;;  %v6829_v22 = vld [vmem:[%s10749_s1 + $0x40] ss:$16 sps:$4 sm:$0xff]  }
   0xc   :  { %4990 = vmatpush1.bf16.msra.mxu1 %v6812_v11  ;;  %4950 = vmatprep.subr.bf16.mxu0 %v6813_v12  ;;  %v6827_v21 = vld [vmem:[%s10749_s1 + $0x244] ss:$16 sps:$4 sm:$0xff]   ;;  %v6830_v23 = vld [vmem:[%s10749_s1 + $0x240] ss:$16 sps:$4 sm:$0xff]  }
   0xd   :  { %4991 = vmatprep.subr.bf16.mxu1 %v6815_v13  ;;  %v6831_v24 = vld [vmem:[%s10749_s1 + $0x24] ss:$16 sps:$4 sm:$0xff]   ;;  %v6835_v26 = vld [vmem:[%s10749_s1 + $0x20] ss:$16 sps:$4 sm:$0xff]  }
   0xe   :  { %v6833_v25 = vld [vmem:[%s10749_s1 + $0x224] ss:$16 sps:$4 sm:$0xff]   ;;  %v6836_v27 = vld [vmem:[%s10749_s1 + $0x220] ss:$16 sps:$4 sm:$0xff]  }
   0xf   :  { %4951 = vmatpush1.bf16.msra.mxu0 %v6817_v14  ;;  %v6837_v28 = vld [vmem:[%s10749_s1 + $0x4] ss:$16 sps:$4 sm:$0xff]   ;;  %v6841_v30 = vld [vmem:[%s10749_s1] ss:$16 sps:$4 sm:$0xff]  }
  0x10   :  { %4992 = vmatpush1.bf16.msra.mxu1 %v6818_v15  ;;  %4952 = vmatprep.subr.bf16.mxu0 %v6819_v16  ;;  %v6839_v29 = vld [vmem:[%s10749_s1 + $0x204] ss:$16 sps:$4 sm:$0xff]   ;;  %v6842_v31 = vld [vmem:[%s10749_s1 + $0x200] ss:$16 sps:$4 sm:$0xff]  }
  0x11   :  { %4993 = vmatprep.subr.bf16.mxu1 %v6821_v17  ;;  %v6843_v32 = vld [vmem:[%s10749_s1 + $0x1e4] ss:$16 sps:$4 sm:$0xff]   ;;  %v6847_v34 = vld [vmem:[%s10749_s1 + $0x1e0] ss:$16 sps:$4 sm:$0xff]  }
  0x12   :  { %v6845_v33 = vld [vmem:[%s10749_s1 + $0x3e4] ss:$16 sps:$4 sm:$0xff]   ;;  %v6848_v35 = vld [vmem:[%s10749_s1 + $0x3e0] ss:$16 sps:$4 sm:$0xff]  }
  0x13   :  { %4953 = vmatpush1.bf16.msra.mxu0 %v6823_v18  ;;  %v6849_v36 = vld [vmem:[%s10749_s1 + $0x1c4] ss:$16 sps:$4 sm:$0xff]   ;;  %v6853_v38 = vld [vmem:[%s10749_s1 + $0x1c0] ss:$16 sps:$4 sm:$0xff]  }
  0x14   :  { %4994 = vmatpush1.bf16.msra.mxu1 %v6824_v19  ;;  %4954 = vmatprep.subr.bf16.mxu0 %v6825_v20  ;;  %v6851_v37 = vld [vmem:[%s10749_s1 + $0x3c4] ss:$16 sps:$4 sm:$0xff]   ;;  %v6854_v39 = vld [vmem:[%s10749_s1 + $0x3c0] ss:$16 sps:$4 sm:$0xff]  }
  0x15   :  { %4995 = vmatprep.subr.bf16.mxu1 %v6827_v21  ;;  %v6855_v40 = vld [vmem:[%s10749_s1 + $0x1a4] ss:$16 sps:$4 sm:$0xff]   ;;  %v6859_v42 = vld [vmem:[%s10749_s1 + $0x1a0] ss:$16 sps:$4 sm:$0xff]  }
  0x16   :  { %v6857_v41 = vld [vmem:[%s10749_s1 + $0x3a4] ss:$16 sps:$4 sm:$0xff]   ;;  %v6860_v43 = vld [vmem:[%s10749_s1 + $0x3a0] ss:$16 sps:$4 sm:$0xff]  }
  0x17   :  { %4955 = vmatpush1.bf16.msra.mxu0 %v6829_v22  ;;  %v6861_v44 = vld [vmem:[%s10749_s1 + $0x184] ss:$16 sps:$4 sm:$0xff]   ;;  %v6865_v46 = vld [vmem:[%s10749_s1 + $0x180] ss:$16 sps:$4 sm:$0xff]  }
  0x18   :  { %4996 = vmatpush1.bf16.msra.mxu1 %v6830_v23  ;;  %4956 = vmatprep.subr.bf16.mxu0 %v6831_v24  ;;  %v6863_v45 = vld [vmem:[%s10749_s1 + $0x384] ss:$16 sps:$4 sm:$0xff]   ;;  %v6866_v47 = vld [vmem:[%s10749_s1 + $0x380] ss:$16 sps:$4 sm:$0xff]  }
  0x19   :  { %4997 = vmatprep.subr.bf16.mxu1 %v6833_v25  ;;  %v7805_v48 = vld [vmem:[%s10750_s0] sm:$0xff] }
  0x1a   :  { %v6867_v49 = vld [vmem:[%s10749_s1 + $0x164] ss:$16 sps:$4 sm:$0xff]   ;;  %v164_v55 = vunpack.c.h.bf16 %v7805_v48  ;;  %v6871_v19 = vld [vmem:[%s10749_s1 + $0x160] ss:$16 sps:$4 sm:$0xff]  }
  0x1b   :  { %4957 = vmatpush1.bf16.msra.mxu0 %v6835_v26  ;;  %v6869_v50 = vld [vmem:[%s10749_s1 + $0x364] ss:$16 sps:$4 sm:$0xff]   ;;  %v6872_v20 = vld [vmem:[%s10749_s1 + $0x360] ss:$16 sps:$4 sm:$0xff]  }
  0x1c   :  { %4998 = vmatpush1.bf16.msra.mxu1 %v6836_v27  ;;  %4958 = vmatprep.subr.bf16.mxu0 %v6837_v28  ;;  %v7816_v51 = vld [vmem:[%s10750_s0 + $0x40] sm:$0xff] }
  0x1d   :  { %4999 = vmatprep.subr.bf16.mxu1 %v6839_v29  ;;  %v7821_v52 = vld [vmem:[%s10750_s0 + $0x80] sm:$0xff]  ;;  %v180_v60 = vunpack.c.h.bf16 %v7816_v51 }
  0x1e   :  { %v7826_v53 = vld [vmem:[%s10750_s0 + $0xc0] sm:$0xff]  ;;  %v196_v62 = vunpack.c.h.bf16 %v7821_v52 }
  0x1f   :  { %4959 = vmatpush1.bf16.msra.mxu0 %v6841_v30  ;;  %v7833_v56 = vld [vmem:[%s10750_s0 + $0x100] sm:$0xff]  ;;  %v212_v3 = vunpack.c.h.bf16 %v7826_v53 }
  0x20   :  { %5000 = vmatpush1.bf16.msra.mxu1 %v6842_v31  ;;  %4960 = vmatprep.subr.bf16.mxu0 %v6843_v32  ;;  %v7838_v57 = vld [vmem:[%s10750_s0 + $0x140] sm:$0xff]  ;;  %v228_v5 = vunpack.c.h.bf16 %v7833_v56  ;;  %v7929_v32 = vld [vmem:[%s10750_s0 + $0x8] sm:$0xff] }
  0x21   :  { %5001 = vmatprep.subr.bf16.mxu1 %v6845_v33  ;;  %v7843_v58 = vld [vmem:[%s10750_s0 + $0x180] sm:$0xff]  ;;  %v244_v10 = vunpack.c.h.bf16 %v7838_v57 }
  0x22   :  { %v7852_v63 = vld [vmem:[%s10750_s0 + $0x1c0] sm:$0xff]  ;;  %v260_v12 = vunpack.c.h.bf16 %v7843_v58 }
  0x23   :  { %4961 = vmatpush2.bf16.msra.mxu0 %v6847_v34  ;;  %v7857_v0 = vld [vmem:[%s10750_s0 + $0x200] sm:$0xff]  ;;  %v276_v16 = vunpack.c.h.bf16 %v7852_v63 }
  0x24   :  { %5002 = vmatpush2.bf16.msra.mxu1 %v6848_v35  ;;  %4962 = vmatprep.subr.bf16.mxu0 %v6849_v36  ;;  %v7862_v1 = vld [vmem:[%s10750_s0 + $0x240] sm:$0xff]  ;;  %v292_v18 = vunpack.c.h.bf16 %v7857_v0 }
  0x25   :  { %5003 = vmatprep.subr.bf16.mxu1 %v6851_v37  ;;  %v7871_v6 = vld [vmem:[%s10750_s0 + $0x280] sm:$0xff]  ;;  %v308_v23 = vunpack.c.h.bf16 %v7862_v1 }
  0x26   :  { %v7876_v7 = vld [vmem:[%s10750_s0 + $0x2c0] sm:$0xff]  ;;  %v324_v25 = vunpack.c.h.bf16 %v7871_v6 }
  0x27   :  { %4963 = vmatpush2.bf16.msra.mxu0 %v6853_v38  ;;  %v7881_v8 = vld [vmem:[%s10750_s0 + $0x300] sm:$0xff]  ;;  %v340_v29 = vunpack.c.h.bf16 %v7876_v7 }
  0x28   :  { %5004 = vmatpush2.bf16.msra.mxu1 %v6854_v39  ;;  %4964 = vmatprep.subr.bf16.mxu0 %v6855_v40  ;;  %v7890_v13 = vld [vmem:[%s10750_s0 + $0x340] sm:$0xff]  ;;  %v356_v31 = vunpack.c.h.bf16 %v7881_v8  ;;  %v426_v39 = vadd.f32 %v180_v60, %v164_v55  ;;  %v538_v40 = vadd.f32 %v212_v3, %v196_v62 }
  0x29   :  { %5005 = vmatprep.subr.bf16.mxu1 %v6857_v41  ;;  %v7895_v14 = vld [vmem:[%s10750_s0 + $0x380] sm:$0xff]  ;;  %v372_v34 = vunpack.c.h.bf16 %v7890_v13  ;;  %v986_v60 = vadd.f32 %v340_v29, %v324_v25 }
  0x2a   :  { %v7910_v21 = vld [vmem:[%s10750_s0 + $0x3c0] sm:$0xff]  ;;  %v388_v36 = vunpack.c.h.bf16 %v7895_v14  ;;  %v539_v55 = vrot.slane %v538_v40, 4 }
  0x2b   :  { %4965 = vmatpush2.bf16.msra.mxu0 %v6859_v42  ;;  %v6873_v26 = vld [vmem:[%s10749_s1 + $0x144] ss:$16 sps:$4 sm:$0xff]   ;;  %v404_v38 = vunpack.c.h.bf16 %v7910_v21  ;;  %v6877_v41 = vld [vmem:[%s10749_s1 + $0x140] ss:$16 sps:$4 sm:$0xff]   ;;  %v1098_v62 = vadd.f32 %v372_v34, %v356_v31 }
  0x2c   :  { %5006 = vmatpush2.bf16.msra.mxu1 %v6860_v43  ;;  %4966 = vmatprep.subr.bf16.mxu0 %v6861_v44  ;;  %v6875_v27 = vld [vmem:[%s10749_s1 + $0x344] ss:$16 sps:$4 sm:$0xff]   ;;  %v6878_v42 = vld [vmem:[%s10749_s1 + $0x340] ss:$16 sps:$4 sm:$0xff]   ;;  %v650_v44 = vadd.f32 %v244_v10, %v228_v5  ;;  %v540_v5 = vadd.f32 %v539_v55, %v538_v40  ;;  %v987_v10 = vrot.slane %v986_v60, 4 }
  0x2d   :  { %5007 = vmatprep.subr.bf16.mxu1 %v6863_v45  ;;  %v6879_v43 = vld [vmem:[%s10749_s1 + $0x124] ss:$16 sps:$4 sm:$0xff]   ;;  %v762_v45 = vadd.f32 %v276_v16, %v260_v12  ;;  %v1210_v37 = vadd.f32 %v404_v38, %v388_v36  ;;  %v1099_v12 = vrot.slane %v1098_v62, 4  ;;  %v6883_v16 = vld [vmem:[%s10749_s1 + $0x120] ss:$16 sps:$4 sm:$0xff]  }
  0x2e   :  { %v651_v3 = vrot.slane %v650_v44, 4  ;;  %v6885_v29 = vld [vmem:[%s10749_s1 + $0x104] ss:$16 sps:$4 sm:$0xff]   ;;  %v541_v36 = vrot.slane %v540_v5, 2  ;;  %v988_v38 = vadd.f32 %v987_v10, %v986_v60  ;;  %v6890_v55 = vld [vmem:[%s10749_s1 + $0x300] ss:$16 sps:$4 sm:$0xff]  }
  0x2f   :  { %4967 = vmatpush2.bf16.msra.mxu0 %v6865_v46  ;;  %v874_v46 = vadd.f32 %v308_v23, %v292_v18  ;;  %v6884_v18 = vld [vmem:[%s10749_s1 + $0x320] ss:$16 sps:$4 sm:$0xff]   ;;  %v6887_v31 = vld [vmem:[%s10749_s1 + $0x304] ss:$16 sps:$4 sm:$0xff]  }
  0x30   :  { %5008 = vmatpush2.bf16.msra.mxu1 %v6866_v47  ;;  %4968 = vmatprep.subr.bf16.mxu0 %v6867_v49  ;;  %v6881_v49 = vld [vmem:[%s10749_s1 + $0x324] ss:$16 sps:$4 sm:$0xff]   ;;  %v652_v23 = vadd.f32 %v651_v3, %v650_v44 }
  0x31   :  { %5009 = vmatprep.subr.bf16.mxu1 %v6869_v50  ;;  %v427_v50 = vrot.slane %v426_v39, 4  ;;  %v6893_v10 = vld [vmem:[%s10749_s1 + $0x4e4] ss:$16 sps:$4 sm:$0xff]  }
  0x32   :  { %v653_v40 = vrot.slane %v652_v23, 2 }
  0x33   :  { %4969 = vmatpush2.bf16.msra.mxu0 %v6871_v19  ;;  %v763_v19 = vrot.slane %v762_v45, 4  ;;  %v428_v35 = vadd.f32 %v427_v50, %v426_v39  ;;  %v1100_v39 = vadd.f32 %v1099_v12, %v1098_v62  ;;  %v6889_v50 = vld [vmem:[%s10749_s1 + $0x100] ss:$16 sps:$4 sm:$0xff]  }
  0x34   :  { %5010 = vmatpush2.bf16.msra.mxu1 %v6872_v20  ;;  %4970 = vmatprep.subr.bf16.mxu0 %v6873_v26  ;;  %v875_v20 = vrot.slane %v874_v46, 4  ;;  %v654_v60 = vadd.f32 %v653_v40, %v652_v23  ;;  %v6896_v23 = vld [vmem:[%s10749_s1 + $0x6e4] ss:$16 sps:$4 sm:$0xff]  }
  0x35   :  { %5011 = vmatprep.subr.bf16.mxu1 %v6875_v27  ;;  %v764_v25 = vadd.f32 %v763_v19, %v762_v45  ;;  %v1211_v27 = vrot.slane %v1210_v37, 4  ;;  %v429_v34 = vrot.slane %v428_v35, 2 }
  0x36   :  { %v876_v26 = vadd.f32 %v875_v20, %v874_v46  ;;  %v989_v46 = vrot.slane %v988_v38, 2  ;;  %v655_v12 = vrot.slane %v654_v60, 1 }
  0x37   :  { %4971 = vmatpush2.bf16.msra.mxu0 %v6877_v41  ;;  %v765_v41 = vrot.slane %v764_v25, 2  ;;  %v1212_v44 = vadd.f32 %v1211_v27, %v1210_v37  ;;  %v430_v45 = vadd.f32 %v429_v34, %v428_v35 }
  0x38   :  { %5012 = vmatpush2.bf16.msra.mxu1 %v6878_v42  ;;  %4972 = vmatprep.subr.bf16.mxu0 %v6879_v43  ;;  %v877_v42 = vrot.slane %v876_v26, 2  ;;  %v542_v43 = vadd.f32 %v541_v36, %v540_v5  ;;  %v990_v20 = vadd.f32 %v989_v46, %v988_v38  ;;  %v656_v34 = vadd.f32 %v655_v12, %v654_v60  ;;  %v7982_v60 = vld [vmem:[%s10750_s0 + $0x88] sm:$0xff] }
  0x39   :  { %5013 = vmatprep.subr.bf16.mxu1 %v6881_v49  ;;  %v1101_v49 = vrot.slane %v1100_v39, 2  ;;  %v766_v62 = vadd.f32 %v765_v41, %v764_v25  ;;  %v1213_v37 = vrot.slane %v1212_v44, 2  ;;  %v431_v35 = vrot.slane %v430_v45, 1 }
  0x3a   :  { %v878_v3 = vadd.f32 %v877_v42, %v876_v26  ;;  %v543_v19 = vrot.slane %v542_v43, 1 }
  0x3b   :  { %4973 = vmatpush2.bf16.msra.mxu0 %v6883_v16  ;;  %v1102_v5 = vadd.f32 %v1101_v49, %v1100_v39  ;;  %v767_v16 = vrot.slane %v766_v62, 1  ;;  %v1214_v27 = vadd.f32 %v1213_v37, %v1212_v44  ;;  %v432_v25 = vadd.f32 %v431_v35, %v430_v45 }
  0x3c   :  { %5014 = vmatpush2.bf16.msra.mxu1 %v6884_v18  ;;  %4974 = vmatprep.subr.bf16.mxu0 %v6885_v29  ;;  %v879_v18 = vrot.slane %v878_v3, 1  ;;  %v544_v26 = vadd.f32 %v543_v19, %v542_v43  ;;  %v991_v29 = vrot.slane %v990_v20, 1  ;;  %v1348_v49 = vpack.c.bf16 %v656_v34, %v656_v34 }
  0x3d   :  { %5015 = vmatprep.subr.bf16.mxu1 %v6887_v31  ;;  %v1103_v31 = vrot.slane %v1102_v5, 1  ;;  %v768_v36 = vadd.f32 %v767_v16, %v766_v62  ;;  %v1215_v39 = vrot.slane %v1214_v27, 1  ;;  %v1316_v42 = vpack.c.bf16 %v432_v25, %v432_v25 }
  0x3e   :  { %v880_v38 = vadd.f32 %v879_v18, %v878_v3  ;;  %v992_v40 = vadd.f32 %v991_v29, %v990_v20  ;;  %v1332_v44 = vpack.c.bf16 %v544_v26, %v544_v26  ;;  %v2138_v3 = vunpack.c.l.b16 %v1348_v49  ;;  %v8000_v29 = vld [vmem:[%s10750_s0 + $0x148] sm:$0xff] }
  0x3f   :  { %4975 = vmatpush2.bf16.msra.mxu0 %v6889_v50  ;;  %v1104_v41 = vadd.f32 %v1103_v31, %v1102_v5  ;;  %v1216_v46 = vadd.f32 %v1215_v39, %v1214_v27  ;;  %v1364_v37 = vpack.c.bf16 %v768_v36, %v768_v36  ;;  %v2106_v19 = vunpack.c.l.b16 %v1316_v42  ;;  %v7993_v27 = vld [vmem:[%s10750_s0 + $0x108] sm:$0xff] }
  0x40   :  { %5016 = vmatpush2.bf16.msra.mxu1 %v6890_v55  ;;  %5026 = vmatprep.subr.bf16.mxu0 %v6893_v10  ;;  %v1380_v45 = vpack.c.bf16 %v880_v38, %v880_v38  ;;  %v1396_v43 = vpack.c.bf16 %v992_v40, %v992_v40  ;;  %v2122_v50 = vunpack.c.l.b16 %v1332_v44  ;;  %v7977_v55 = vld [vmem:[%s10750_s0 + $0x48] sm:$0xff]  ;;  %v198_v42 = vunpack.c.h.bf16 %v7982_v60 }
  0x41   :  { %5067 = vmatprep.subr.bf16.mxu1 %v6896_v23  ;;  %v1412_v35 = vpack.c.bf16 %v1104_v41, %v1104_v41  ;;  %v1428_v62 = vpack.c.bf16 %v1216_v46, %v1216_v46  ;;  %v2154_v20 = vunpack.c.l.b16 %v1364_v37  ;;  %v7987_v10 = vld [vmem:[%s10750_s0 + $0xc8] sm:$0xff]  ;;  %v166_v23 = vunpack.c.h.bf16 %v7929_v32 }
  0x42   :  { %v2170_v5 = vunpack.c.l.b16 %v1380_v45  ;;  %v2186_v12 = vunpack.c.l.b16 %v1396_v43  ;;  %v2247_v18 = vsel %vm2233_vm0, %v2122_v50, %v2106_v19  ;;  %v8005_v31 = vld [vmem:[%s10750_s0 + $0x188] sm:$0xff]  ;;  %v182_v36 = vunpack.c.h.bf16 %v7977_v55 }
  0x43   :  { %v2202_v16 = vunpack.c.l.b16 %v1412_v35  ;;  %v2218_v25 = vunpack.c.l.b16 %v1428_v62  ;;  %v2248_v26 = vsel %vm2235_vm1, %v2138_v3, %v2247_v18  ;;  %v8013_v39 = vld [vmem:[%s10750_s0 + $0x1c8] sm:$0xff]  ;;  %v214_v37 = vunpack.c.h.bf16 %v7987_v10 }
  0x44   :  { %v2249_v38 = vsel %vm2237_vm2, %v2154_v20, %v2248_v26  ;;  %v8018_v40 = vld [vmem:[%s10750_s0 + $0x208] sm:$0xff]  ;;  %v230_v43 = vunpack.c.h.bf16 %v7993_v27  ;;  %v246_v62 = vunpack.c.h.bf16 %v8000_v29  ;;  %v262_v18 = vunpack.c.h.bf16 %v8005_v31 }
  0x45   :  { %v2250_v46 = vsel %vm2239_vm3, %v2170_v5, %v2249_v38  ;;  %v8027_v49 = vld [vmem:[%s10750_s0 + $0x248] sm:$0xff]  ;;  %v278_v38 = vunpack.c.h.bf16 %v8013_v39  ;;  %v294_v50 = vunpack.c.h.bf16 %v8018_v40  ;;  %v440_v24 = vadd.f32 %v182_v36, %v166_v23 }
  0x46   :  { %v2251_v35 = vsel %vm2241_vm4, %v2186_v12, %v2250_v46  ;;  %v8036_v19 = vld [vmem:[%s10750_s0 + $0x288] sm:$0xff]  ;;  %v552_v22 = vadd.f32 %v214_v37, %v198_v42  ;;  %v664_v17 = vadd.f32 %v246_v62, %v230_v43 }
  0x47   :  { %v2252_v20 = vsel %vm2243_vm5, %v2202_v16, %v2251_v35  ;;  %v8045_v5 = vld [vmem:[%s10750_s0 + $0x2c8] sm:$0xff]  ;;  %v326_v41 = vunpack.c.h.bf16 %v8036_v19  ;;  %v776_v47 = vadd.f32 %v278_v38, %v262_v18  ;;  %v441_v9 = vrot.slane %v440_v24, 4 }
  0x48   :  { %v8050_v12 = vld [vmem:[%s10750_s0 + $0x308] sm:$0xff]  ;;  %v2253_v46 = vsel %vm2245_vm6, %v2218_v25, %v2252_v20  ;;  %v310_v20 = vunpack.c.h.bf16 %v8027_v49  ;;  %v342_v3 = vunpack.c.h.bf16 %v8045_v5  ;;  %v553_v4 = vrot.slane %v552_v22, 4 }
  0x49   :  { %10781 = vst [vmem:[#allocation3_spill] sm:$0xff] %v8050_v12  ;;  %v8059_v16 = vld [vmem:[%s10750_s0 + $0x348] sm:$0xff]  ;;  %v8069_v45 = vpack.c.b16 %v2253_v46, %v2253_v46  ;;  %v358_v46 = vunpack.c.h.bf16 %v8050_v12  ;;  %v665_v61 = vrot.slane %v664_v17, 4  ;;  %v777_v59 = vrot.slane %v776_v47, 4 }
  0x4a   :  { %10782 = vst [vmem:[#allocation4_spill] sm:$0xff] %v8059_v16  ;;  %v8064_v35 = vld [vmem:[%s10750_s0 + $0x388] sm:$0xff]  ;;  %v374_v33 = vunpack.c.h.bf16 %v8059_v16  ;;  %v888_v15 = vadd.f32 %v310_v20, %v294_v50  ;;  %v1000_v11 = vadd.f32 %v342_v3, %v326_v41 }
  0x4b   :  { %10783 = vst [vmem:[#allocation5_spill] sm:$0xff] %v8064_v35  ;;  %10784 = vst [vmem:[#allocation6_spill] sm:$0xff] %v8069_v45  ;;  %v8074_v25 = vld [vmem:[%s10750_s0 + $0x3c8] sm:$0xff]  ;;  %4976 = vmatprep.mubr.bf16.mxu0 %v8069_v45  ;;  %v390_v44 = vunpack.c.h.bf16 %v8064_v35  ;;  %v442_v45 = vadd.f32 %v441_v9, %v440_v24  ;;  %v554_v35 = vadd.f32 %v553_v4, %v552_v22 }
  0x4c   :  { %10785 = vst [vmem:[#allocation7_spill] sm:$0xff] %v8074_v25  ;;  %v406_v34 = vunpack.c.h.bf16 %v8074_v25  ;;  %v1112_v2 = vadd.f32 %v374_v33, %v358_v46  ;;  %v889_v54 = vrot.slane %v888_v15, 4  ;;  %v1001_v30 = vrot.slane %v1000_v11, 4 }
  0x4d   :  { %v666_v12 = vadd.f32 %v665_v61, %v664_v17  ;;  %v778_v25 = vadd.f32 %v777_v59, %v776_v47  ;;  %v443_v42 = vrot.slane %v442_v45, 2  ;;  %v555_v37 = vrot.slane %v554_v35, 2 }
  0x4e   :  { %v1224_v26 = vadd.f32 %v406_v34, %v390_v44  ;;  %v1113_v16 = vrot.slane %v1112_v2, 4  ;;  %v890_v23 = vadd.f32 %v889_v54, %v888_v15  ;;  %v1002_v36 = vadd.f32 %v1001_v30, %v1000_v11 }
  0x4f   :  { %v667_v50 = vrot.slane %v666_v12, 2  ;;  %v779_v62 = vrot.slane %v778_v25, 2  ;;  %v444_v44 = vadd.f32 %v443_v42, %v442_v45  ;;  %v556_v3 = vadd.f32 %v555_v37, %v554_v35 }
  0x50   :  { %v1225_v28 = vrot.slane %v1224_v26, 4  ;;  %v1114_v43 = vadd.f32 %v1113_v16, %v1112_v2  ;;  %v891_v33 = vrot.slane %v890_v23, 2  ;;  %v1003_v34 = vrot.slane %v1002_v36, 2 }
  0x51   :  { %v668_v9 = vadd.f32 %v667_v50, %v666_v12  ;;  %v780_v4 = vadd.f32 %v779_v62, %v778_v25  ;;  %v445_v61 = vrot.slane %v444_v44, 1  ;;  %v557_v59 = vrot.slane %v556_v3, 1 }
  0x52   :  { %v1226_v41 = vadd.f32 %v1225_v28, %v1224_v26  ;;  %v1115_v18 = vrot.slane %v1114_v43, 2  ;;  %v892_v22 = vadd.f32 %v891_v33, %v890_v23  ;;  %v1004_v24 = vadd.f32 %v1003_v34, %v1002_v36 }
  0x53   :  { %v669_v15 = vrot.slane %v668_v9, 1  ;;  %v781_v17 = vrot.slane %v780_v4, 1  ;;  %v446_v30 = vadd.f32 %v445_v61, %v444_v44  ;;  %v558_v47 = vadd.f32 %v557_v59, %v556_v3 }
  0x54   :  { %v1227_v38 = vrot.slane %v1226_v41, 2  ;;  %v1116_v54 = vadd.f32 %v1115_v18, %v1114_v43  ;;  %v893_v2 = vrot.slane %v892_v22, 1  ;;  %v1005_v28 = vrot.slane %v1004_v24, 1 }
  0x55   :  { %v670_v45 = vadd.f32 %v669_v15, %v668_v9  ;;  %v782_v35 = vadd.f32 %v781_v17, %v780_v4  ;;  %v1318_v23 = vpack.c.bf16 %v446_v30, %v446_v30  ;;  %v1334_v36 = vpack.c.bf16 %v558_v47, %v558_v47 }
  0x56   :  { %v1228_v11 = vadd.f32 %v1227_v38, %v1226_v41  ;;  %v1117_v26 = vrot.slane %v1116_v54, 1  ;;  %v894_v20 = vadd.f32 %v893_v2, %v892_v22  ;;  %v1006_v46 = vadd.f32 %v1005_v28, %v1004_v24 }
  0x57   :  { %v1350_v42 = vpack.c.bf16 %v670_v45, %v670_v45  ;;  %v1366_v37 = vpack.c.bf16 %v782_v35, %v782_v35  ;;  %v2108_v33 = vunpack.c.l.b16 %v1318_v23  ;;  %v2124_v34 = vunpack.c.l.b16 %v1334_v36 }
  0x58   :  { %v1229_v16 = vrot.slane %v1228_v11, 1  ;;  %v1118_v12 = vadd.f32 %v1117_v26, %v1116_v54  ;;  %v1382_v43 = vpack.c.bf16 %v894_v20, %v894_v20  ;;  %v1398_v41 = vpack.c.bf16 %v1006_v46, %v1006_v46 }
  0x59   :  { %v2140_v44 = vunpack.c.l.b16 %v1350_v42  ;;  %v2156_v3 = vunpack.c.l.b16 %v1366_v37  ;;  %v2261_v22 = vsel %vm2233_vm0, %v2124_v34, %v2108_v33  ;;  %v10786_v24 = vunpack.c.l.bf16 %v7805_v48 }
  0x5a   :  { %v1230_v25 = vadd.f32 %v1229_v16, %v1228_v11  ;;  %v1414_v50 = vpack.c.bf16 %v1118_v12, %v1118_v12  ;;  %v2172_v18 = vunpack.c.l.b16 %v1382_v43  ;;  %v2188_v38 = vunpack.c.l.b16 %v1398_v41 }
  0x5b   :  { %v10787_v61 = vunpack.c.l.bf16 %v7816_v51  ;;  %v2262_v54 = vsel %vm2235_vm1, %v2140_v44, %v2261_v22  ;;  %v10788_v11 = vunpack.c.l.bf16 %v7821_v52  ;;  %v10789_v15 = vunpack.c.l.bf16 %v7826_v53 }
  0x5c   :  { %v1430_v62 = vpack.c.bf16 %v1230_v25, %v1230_v25  ;;  %v2204_v9 = vunpack.c.l.b16 %v1414_v50  ;;  %v10790_v2 = vunpack.c.l.bf16 %v7833_v56  ;;  %v10791_v28 = vunpack.c.l.bf16 %v7838_v57 }
  0x5d   :  { %v419_v59 = vadd.f32 %v10787_v61, %v10786_v24  ;;  %v531_v17 = vadd.f32 %v10789_v15, %v10788_v11  ;;  %v10792_v47 = vunpack.c.l.bf16 %v7843_v58  ;;  %v10793_v26 = vunpack.c.l.bf16 %v7852_v63 }
  0x5e   :  { %v2220_v4 = vunpack.c.l.b16 %v1430_v62  ;;  %v643_v30 = vadd.f32 %v10791_v28, %v10790_v2  ;;  %v2263_v51 = vsel %vm2237_vm2, %v2156_v3, %v2262_v54  ;;  %v10794_v45 = vunpack.c.l.bf16 %v7857_v0 }
  0x5f   :  { %v755_v48 = vadd.f32 %v10793_v26, %v10792_v47  ;;  %v420_v16 = vrot.slane %v419_v59, 4  ;;  %v10795_v52 = vunpack.c.l.bf16 %v7862_v1  ;;  %v10796_v53 = vunpack.c.l.bf16 %v7871_v6 }
  0x60   :  { %v10797_v56 = vunpack.c.l.bf16 %v7876_v7  ;;  %v2264_v57 = vsel %vm2239_vm3, %v2172_v18, %v2263_v51  ;;  %v532_v46 = vrot.slane %v531_v17, 4  ;;  %v644_v58 = vrot.slane %v643_v30, 4 }
  0x61   :  { %v867_v35 = vadd.f32 %v10795_v52, %v10794_v45  ;;  %v756_v12 = vrot.slane %v755_v48, 4  ;;  %v2265_v63 = vsel %vm2241_vm4, %v2188_v38, %v2264_v57  ;;  %v421_v25 = vadd.f32 %v420_v16, %v419_v59 }
  0x62   :  { %v979_v20 = vadd.f32 %v10797_v56, %v10796_v53  ;;  %v2266_v0 = vsel %vm2243_vm5, %v2204_v9, %v2265_v63  ;;  %v533_v42 = vadd.f32 %v532_v46, %v531_v17  ;;  %v645_v1 = vadd.f32 %v644_v58, %v643_v30 }
  0x63   :  { %v868_v23 = vrot.slane %v867_v35, 4  ;;  %v757_v37 = vadd.f32 %v756_v12, %v755_v48  ;;  %v2267_v6 = vsel %vm2245_vm6, %v2220_v4, %v2266_v0  ;;  %v422_v43 = vrot.slane %v421_v25, 2 }
  0x64   :  { %v980_v36 = vrot.slane %v979_v20, 4  ;;  %v8121_v50 = vpack.c.b16 %v2267_v6, %v2267_v6  ;;  %v534_v62 = vrot.slane %v533_v42, 2  ;;  %v646_v33 = vrot.slane %v645_v1, 2 }
  0x65   :  { %v869_v7 = vadd.f32 %v868_v23, %v867_v35  ;;  %v758_v34 = vrot.slane %v757_v37, 2  ;;  %v423_v44 = vadd.f32 %v422_v43, %v421_v25  ;;  %v10799_v38 = vunpack.c.l.bf16 %v7881_v8 }
  0x66   :  { %v981_v41 = vadd.f32 %v980_v36, %v979_v20  ;;  %10798 = vst [vmem:[#allocation8_spill] sm:$0xff] %v8121_v50  ;;  %v10800_v9 = vunpack.c.l.bf16 %v7890_v13  ;;  %5017 = vmatprep.mubr.bf16.mxu1 %v8121_v50  ;;  %v535_v24 = vadd.f32 %v534_v62, %v533_v42  ;;  %v647_v4 = vadd.f32 %v646_v33, %v645_v1 }
  0x67   :  { %v870_v3 = vrot.slane %v869_v7, 2  ;;  %v759_v61 = vadd.f32 %v758_v34, %v757_v37  ;;  %v10801_v59 = vunpack.c.l.bf16 %v7895_v14  ;;  %v10802_v54 = vunpack.c.l.bf16 %v7910_v21 }
  0x68   :  { %v982_v18 = vrot.slane %v981_v41, 2  ;;  %v1091_v22 = vadd.f32 %v10800_v9, %v10799_v38  ;;  %v424_v15 = vrot.slane %v423_v44, 1  ;;  %v536_v30 = vrot.slane %v535_v24, 1 }
  0x69   :  { %v1203_v11 = vadd.f32 %v10802_v54, %v10801_v59  ;;  %v871_v17 = vadd.f32 %v870_v3, %v869_v7  ;;  %v648_v47 = vrot.slane %v647_v4, 1  ;;  %v760_v8 = vrot.slane %v759_v61, 1 }
  0x6a   :  { %v983_v2 = vadd.f32 %v982_v18, %v981_v41  ;;  %v1092_v28 = vrot.slane %v1091_v22, 4  ;;  %v425_v13 = vadd.f32 %v424_v15, %v423_v44  ;;  %v537_v45 = vadd.f32 %v536_v30, %v535_v24 }
  0x6b   :  { %v1204_v26 = vrot.slane %v1203_v11, 4  ;;  %v872_v48 = vrot.slane %v871_v17, 1  ;;  %v649_v52 = vadd.f32 %v648_v47, %v647_v4  ;;  %v761_v35 = vadd.f32 %v760_v8, %v759_v61 }
  0x6c   :  { %v984_v51 = vrot.slane %v983_v2, 1  ;;  %v1093_v16 = vadd.f32 %v1092_v28, %v1091_v22  ;;  %v1315_v20 = vpack.c.bf16 %v425_v13, %v425_v13  ;;  %v1331_v46 = vpack.c.bf16 %v537_v45, %v537_v45 }
  0x6d   :  { %v1205_v53 = vadd.f32 %v1204_v26, %v1203_v11  ;;  %v873_v14 = vadd.f32 %v872_v48, %v871_v17  ;;  %v1347_v58 = vpack.c.bf16 %v649_v52, %v649_v52  ;;  %v1363_v12 = vpack.c.bf16 %v761_v35, %v761_v35 }
  0x6e   :  { %v985_v56 = vadd.f32 %v984_v51, %v983_v2  ;;  %v1094_v21 = vrot.slane %v1093_v16, 2  ;;  %v2105_v36 = vunpack.c.l.b16 %v1315_v20  ;;  %v2121_v42 = vunpack.c.l.b16 %v1331_v46 }
  0x6f   :  { %v1206_v57 = vrot.slane %v1205_v53, 2  ;;  %v1379_v25 = vpack.c.bf16 %v873_v14, %v873_v14  ;;  %v2137_v1 = vunpack.c.l.b16 %v1347_v58  ;;  %v2153_v37 = vunpack.c.l.b16 %v1363_v12 }
  0x70   :  { %v1095_v63 = vadd.f32 %v1094_v21, %v1093_v16  ;;  %v1395_v23 = vpack.c.bf16 %v985_v56, %v985_v56  ;;  %v10803_v41 = vunpack.c.l.bf16 %v7929_v32  ;;  %v10804_v62 = vunpack.c.l.bf16 %v7977_v55 }
  0x71   :  { %v1207_v0 = vadd.f32 %v1206_v57, %v1205_v53  ;;  %v2169_v43 = vunpack.c.l.b16 %v1379_v25  ;;  %v2234_v44 = vsel %vm2233_vm0, %v2121_v42, %v2105_v36  ;;  %v10805_v3 = vunpack.c.l.bf16 %v7982_v60 }
  0x72   :  { %v1096_v6 = vrot.slane %v1095_v63, 1  ;;  %v2185_v7 = vunpack.c.l.b16 %v1395_v23  ;;  %v433_v33 = vadd.f32 %v10804_v62, %v10803_v41  ;;  %v10806_v18 = vunpack.c.l.bf16 %v7987_v10 }
  0x73   :  { %v1208_v34 = vrot.slane %v1207_v0, 1  ;;  %v10807_v9 = vunpack.c.l.bf16 %v7993_v27  ;;  %v10808_v22 = vunpack.c.l.bf16 %v8000_v29  ;;  %v2236_v61 = vsel %vm2235_vm1, %v2137_v1, %v2234_v44  ;;  %v10816_v1 = vld [vmem:[#allocation3_spill] sm:$0xff] }
  0x74   :  { %v545_v38 = vadd.f32 %v10806_v18, %v10805_v3  ;;  %v1097_v4 = vadd.f32 %v1096_v6, %v1095_v63  ;;  %v434_v32 = vrot.slane %v433_v33, 4  ;;  %v10809_v55 = vunpack.c.l.bf16 %v8005_v31  ;;  %v10818_v6 = vld [vmem:[#allocation4_spill] sm:$0xff]  ;;  %v10822_v3 = vld [vmem:[#allocation7_spill] sm:$0xff] }
  0x75   :  { %v657_v24 = vadd.f32 %v10808_v22, %v10807_v9  ;;  %v10810_v59 = vunpack.c.l.bf16 %v8013_v39  ;;  %v1209_v11 = vadd.f32 %v1208_v34, %v1207_v0  ;;  %v2238_v60 = vsel %vm2237_vm2, %v2153_v37, %v2236_v61  ;;  %v10820_v34 = vld [vmem:[#allocation5_spill] sm:$0xff] }
  0x76   :  { %v546_v15 = vrot.slane %v545_v38, 4  ;;  %v1411_v17 = vpack.c.bf16 %v1097_v4, %v1097_v4  ;;  %v2240_v27 = vsel %vm2239_vm3, %v2169_v43, %v2238_v60  ;;  %v435_v2 = vadd.f32 %v434_v32, %v433_v33  ;;  %v6897_v9 = vld [vmem:[%s10749_s1 + $0x4c0] ss:$16 sps:$4 sm:$0xff]   ;;  %v6905_v32 = vld [vmem:[%s10749_s1 + $0x4a4] ss:$16 sps:$4 sm:$0xff]  }
  0x77   :  { %v769_v54 = vadd.f32 %v10810_v59, %v10809_v55  ;;  %v658_v10 = vrot.slane %v657_v24, 4  ;;  %v1427_v28 = vpack.c.bf16 %v1209_v11, %v1209_v11  ;;  %v2242_v30 = vsel %vm2241_vm4, %v2185_v7, %v2240_v27  ;;  %v8189_v55 = vld [vmem:[%s10750_s0 + $0x10] sm:$0xff] }
  0x78   :  { %v547_v47 = vadd.f32 %v546_v15, %v545_v38  ;;  %v2201_v26 = vunpack.c.l.b16 %v1411_v17  ;;  %v436_v31 = vrot.slane %v435_v2, 2  ;;  %v10811_v39 = vunpack.c.l.bf16 %v8018_v40 }
  0x79   :  { %v770_v29 = vrot.slane %v769_v54, 4  ;;  %v659_v8 = vadd.f32 %v658_v10, %v657_v24  ;;  %v10812_v48 = vunpack.c.l.bf16 %v8027_v49  ;;  %v2217_v16 = vunpack.c.l.b16 %v1427_v28  ;;  %v6891_v49 = vld [vmem:[%s10749_s1 + $0x4e0] ss:$16 sps:$4 sm:$0xff]  }
  0x7a   :  { %v548_v45 = vrot.slane %v547_v47, 2  ;;  %v10813_v35 = vunpack.c.l.bf16 %v8036_v19  ;;  %v10814_v53 = vunpack.c.l.bf16 %v8045_v5  ;;  %v2244_v56 = vsel %vm2243_vm5, %v2201_v26, %v2242_v30  ;;  %v6899_v19 = vld [vmem:[%s10749_s1 + $0x4c4] ss:$16 sps:$4 sm:$0xff]  }
  0x7b   :  { %v771_v13 = vadd.f32 %v770_v29, %v769_v54  ;;  %v881_v51 = vadd.f32 %v10812_v48, %v10811_v39  ;;  %v660_v52 = vrot.slane %v659_v8, 2  ;;  %v437_v21 = vadd.f32 %v436_v31, %v435_v2  ;;  %v6911_v39 = vld [vmem:[%s10749_s1 + $0x484] ss:$16 sps:$4 sm:$0xff]  }
  0x7c   :  { %v993_v14 = vadd.f32 %v10814_v53, %v10813_v35  ;;  %v2246_v46 = vsel %vm2245_vm6, %v2217_v16, %v2244_v56  ;;  %v549_v58 = vadd.f32 %v548_v45, %v547_v47  ;;  %v10817_v37 = vunpack.c.l.bf16 %v10816_v1  ;;  %v6903_v47 = vld [vmem:[%s10749_s1 + $0x4a0] ss:$16 sps:$4 sm:$0xff]  }
  0x7d   :  { %v772_v20 = vrot.slane %v771_v13, 2  ;;  %v882_v57 = vrot.slane %v881_v51, 4  ;;  %v661_v40 = vadd.f32 %v660_v52, %v659_v8  ;;  %v8169_v5 = vpack.c.b16 %v2246_v46, %v2246_v46  ;;  %v8200_v48 = vld [vmem:[%s10750_s0 + $0x50] sm:$0xff] }
  0x7e   :  { %v994_v12 = vrot.slane %v993_v14, 4  ;;  %v438_v63 = vrot.slane %v437_v21, 1  ;;  %v550_v36 = vrot.slane %v549_v58, 1  ;;  %v10819_v43 = vunpack.c.l.bf16 %v10818_v6 }
  0x7f   :  { %10815 = vst [vmem:[#allocation9_spill] sm:$0xff] %v8169_v5  ;;  %v773_v25 = vadd.f32 %v772_v20, %v771_v13  ;;  %v883_v23 = vadd.f32 %v882_v57, %v881_v51  ;;  %v662_v0 = vrot.slane %v661_v40, 1  ;;  %4977 = vmatmul.mubr.bf16.vlgmr.msra.gmra.mxu0 %v8169_v5  ;;  %v10821_v44 = vunpack.c.l.bf16 %v10820_v34  ;;  %v8205_v51 = vld [vmem:[%s10750_s0 + $0x90] sm:$0xff] }
  0x80   :  { %v995_v42 = vadd.f32 %v994_v12, %v993_v14  ;;  %v1105_v7 = vadd.f32 %v10819_v43, %v10817_v37  ;;  %v439_v41 = vadd.f32 %v438_v63, %v437_v21  ;;  %v10823_v18 = vunpack.c.l.bf16 %v10822_v3  ;;  %5027 = vmatpush1.bf16.msra.mxu0 %v6891_v49  ;;  %v6909_v21 = vld [vmem:[%s10749_s1 + $0x480] ss:$16 sps:$4 sm:$0xff]  }
  0x81   :  { %v774_v62 = vrot.slane %v773_v25, 1  ;;  %v884_v33 = vrot.slane %v883_v23, 2  ;;  %v551_v22 = vadd.f32 %v550_v36, %v549_v58  ;;  %v663_v24 = vadd.f32 %v662_v0, %v661_v40  ;;  %5028 = vmatprep.subr.bf16.mxu0 %v6899_v19  ;;  %v6917_v40 = vld [vmem:[%s10749_s1 + $0x464] ss:$16 sps:$4 sm:$0xff]   ;;  %v6915_v34 = vld [vmem:[%s10749_s1 + $0x460] ss:$16 sps:$4 sm:$0xff]  }
  0x82   :  { %v1217_v38 = vadd.f32 %v10823_v18, %v10821_v44  ;;  %v996_v4 = vrot.slane %v995_v42, 2  ;;  %v1106_v61 = vrot.slane %v1105_v7, 4  ;;  %v1317_v60 = vpack.c.bf16 %v439_v41, %v439_v41  ;;  %v8220_v12 = vld [vmem:[%s10750_s0 + $0xd0] sm:$0xff] }
  0x83   :  { %v775_v59 = vadd.f32 %v774_v62, %v773_v25  ;;  %v885_v54 = vadd.f32 %v884_v33, %v883_v23  ;;  %v1333_v17 = vpack.c.bf16 %v551_v22, %v551_v22  ;;  %v1349_v27 = vpack.c.bf16 %v663_v24, %v663_v24  ;;  %v8225_v49 = vld [vmem:[%s10750_s0 + $0x110] sm:$0xff] }
  0x84   :  { %v1218_v11 = vrot.slane %v1217_v38, 4  ;;  %v997_v15 = vadd.f32 %v996_v4, %v995_v42  ;;  %v1107_v10 = vadd.f32 %v1106_v61, %v1105_v7  ;;  %v2107_v30 = vunpack.c.l.b16 %v1317_v60  ;;  %5029 = vmatpush1.bf16.msra.mxu0 %v6897_v9  ;;  %v8230_v19 = vld [vmem:[%s10750_s0 + $0x150] sm:$0xff] }
  0x85   :  { %v886_v2 = vrot.slane %v885_v54, 1  ;;  %v1365_v28 = vpack.c.bf16 %v775_v59, %v775_v59  ;;  %v2123_v31 = vunpack.c.l.b16 %v1333_v17  ;;  %v2139_v13 = vunpack.c.l.b16 %v1349_v27  ;;  %5030 = vmatprep.subr.bf16.mxu0 %v6905_v32  ;;  %v8237_v0 = vld [vmem:[%s10750_s0 + $0x190] sm:$0xff] }
  0x86   :  { %v1219_v29 = vadd.f32 %v1218_v11, %v1217_v38  ;;  %v998_v8 = vrot.slane %v997_v15, 1  ;;  %v1108_v26 = vrot.slane %v1107_v10, 2  ;;  %v168_v20 = vunpack.c.h.bf16 %v8189_v55  ;;  %v8242_v42 = vld [vmem:[%s10750_s0 + $0x1d0] sm:$0xff] }
  0x87   :  { %v887_v16 = vadd.f32 %v886_v2, %v885_v54  ;;  %v2155_v52 = vunpack.c.l.b16 %v1365_v28  ;;  %v2254_v56 = vsel %vm2233_vm0, %v2123_v31, %v2107_v30  ;;  %v184_v1 = vunpack.c.h.bf16 %v8200_v48  ;;  %v8248_v43 = vld [vmem:[%s10750_s0 + $0x210] sm:$0xff] }
  0x88   :  { %v1220_v45 = vrot.slane %v1219_v29, 2  ;;  %v999_v53 = vadd.f32 %v998_v8, %v997_v15  ;;  %v1109_v14 = vadd.f32 %v1108_v26, %v1107_v10  ;;  %v2255_v58 = vsel %vm2235_vm1, %v2139_v13, %v2254_v56  ;;  %5031 = vmatpush1.bf16.msra.mxu0 %v6903_v47  ;;  %v6923_v9 = vld [vmem:[%s10749_s1 + $0x444] ss:$16 sps:$4 sm:$0xff]   ;;  %v6921_v30 = vld [vmem:[%s10749_s1 + $0x440] ss:$16 sps:$4 sm:$0xff]  }
  0x89   :  { %v1381_v46 = vpack.c.bf16 %v887_v16, %v887_v16  ;;  %v2256_v36 = vsel %vm2237_vm2, %v2155_v52, %v2255_v58  ;;  %5032 = vmatprep.subr.bf16.mxu0 %v6911_v39  ;;  %v200_v41 = vunpack.c.h.bf16 %v8205_v51  ;;  %v216_v3 = vunpack.c.h.bf16 %v8220_v12  ;;  %v8264_v22 = vld [vmem:[%s10750_s0 + $0x250] sm:$0xff] }
  0x8a   :  { %v1221_v57 = vadd.f32 %v1220_v45, %v1219_v29  ;;  %v1110_v25 = vrot.slane %v1109_v14, 1  ;;  %v1397_v23 = vpack.c.bf16 %v999_v53, %v999_v53  ;;  %v8269_v24 = vld [vmem:[%s10750_s0 + $0x290] sm:$0xff]  ;;  %v232_v32 = vunpack.c.h.bf16 %v8225_v49 }
  0x8b   :  { %v2171_v6 = vunpack.c.l.b16 %v1381_v46  ;;  %v8274_v4 = vld [vmem:[%s10750_s0 + $0x2d0] sm:$0xff]  ;;  %v248_v10 = vunpack.c.h.bf16 %v8230_v19  ;;  %v264_v2 = vunpack.c.h.bf16 %v8237_v0  ;;  %v280_v47 = vunpack.c.h.bf16 %v8242_v42 }
  0x8c   :  { %v1222_v37 = vrot.slane %v1221_v57, 1  ;;  %v1111_v62 = vadd.f32 %v1110_v25, %v1109_v14  ;;  %v2187_v33 = vunpack.c.l.b16 %v1397_v23  ;;  %5033 = vmatpush1.bf16.msra.mxu0 %v6909_v21  ;;  %v8282_v11 = vld [vmem:[%s10750_s0 + $0x310] sm:$0xff]  ;;  %v296_v26 = vunpack.c.h.bf16 %v8248_v43 }
  0x8d   :  { %v2257_v38 = vsel %vm2239_vm3, %v2171_v6, %v2256_v36  ;;  %v8287_v60 = vld [vmem:[%s10750_s0 + $0x350] sm:$0xff]  ;;  %5034 = vmatprep.subr.bf16.mxu0 %v6917_v40  ;;  %v312_v53 = vunpack.c.h.bf16 %v8264_v22  ;;  %v344_v58 = vunpack.c.h.bf16 %v8274_v4  ;;  %v8329_v40 = vld [vmem:[%s10750_s0 + $0x18] sm:$0xff]  ;;  %v360_v36 = vunpack.c.h.bf16 %v8282_v11 }
  0x8e   :  { %v1223_v18 = vadd.f32 %v1222_v37, %v1221_v57  ;;  %v1413_v59 = vpack.c.bf16 %v1111_v62, %v1111_v62  ;;  %v2258_v54 = vsel %vm2241_vm4, %v2187_v33, %v2257_v38  ;;  %v6894_v13 = vld [vmem:[%s10749_s1 + $0x6e0] ss:$16 sps:$4 sm:$0xff]   ;;  %v6929_v39 = vld [vmem:[%s10749_s1 + $0x424] ss:$16 sps:$4 sm:$0xff]   ;;  %v328_v57 = vunpack.c.h.bf16 %v8269_v24  ;;  %v8531_v33 = vld [vmem:[%s10750_s0 + $0x3d8] sm:$0xff] }
  0x8f   :  { %v8309_v16 = vld [vmem:[%s10750_s0 + $0x390] sm:$0xff]  ;;  %v376_v62 = vunpack.c.h.bf16 %v8287_v60  ;;  %10827 = vst [vmem:[#allocation7_spill] sm:$0xff] %v8531_v33 }
  0x90   :  { %v1429_v17 = vpack.c.bf16 %v1223_v18, %v1223_v18  ;;  %v2203_v28 = vunpack.c.l.b16 %v1413_v59  ;;  %v8314_v45 = vld [vmem:[%s10750_s0 + $0x3d0] sm:$0xff]  ;;  %5035 = vmatpush1.bf16.msra.mxu0 %v6915_v34  ;;  %v392_v34 = vunpack.c.h.bf16 %v8309_v16 }
  0x91   :  { %v6902_v21 = vld [vmem:[%s10749_s1 + $0x6c4] ss:$16 sps:$4 sm:$0xff]   ;;  %5036 = vmatprep.subr.bf16.mxu0 %v6923_v9  ;;  %v6900_v18 = vld [vmem:[%s10749_s1 + $0x6c0] ss:$16 sps:$4 sm:$0xff]   ;;  %v408_v59 = vunpack.c.h.bf16 %v8314_v45  ;;  %v902_v9 = vadd.f32 %v312_v53, %v296_v26 }
  0x92   :  { %v2219_v31 = vunpack.c.l.b16 %v1429_v17  ;;  %v2259_v56 = vsel %vm2243_vm5, %v2203_v28, %v2258_v54  ;;  %v6927_v38 = vld [vmem:[%s10749_s1 + $0x420] ss:$16 sps:$4 sm:$0xff]   ;;  %v454_v54 = vadd.f32 %v184_v1, %v168_v20  ;;  %v566_v17 = vadd.f32 %v216_v3, %v200_v41  ;;  %v6908_v28 = vld [vmem:[%s10749_s1 + $0x6a4] ss:$16 sps:$4 sm:$0xff]  }
  0x93   :  { %v1014_v41 = vadd.f32 %v344_v58, %v328_v57  ;;  %v1126_v3 = vadd.f32 %v376_v62, %v360_v36  ;;  %v903_v46 = vrot.slane %v902_v9, 4 }
  0x94   :  { %v2260_v25 = vsel %vm2245_vm6, %v2219_v31, %v2259_v56  ;;  %5037 = vmatpush1.bf16.msra.mxu0 %v6921_v30  ;;  %v6935_v31 = vld [vmem:[%s10749_s1 + $0x404] ss:$16 sps:$4 sm:$0xff]   ;;  %v678_v56 = vadd.f32 %v248_v10, %v232_v32  ;;  %v455_v20 = vrot.slane %v454_v54, 4  ;;  %v567_v1 = vrot.slane %v566_v17, 4  ;;  %v6933_v32 = vld [vmem:[%s10749_s1 + $0x400] ss:$16 sps:$4 sm:$0xff]  }
  0x95   :  { %v8335_v6 = vpack.c.b16 %v2260_v25, %v2260_v25  ;;  %v790_v25 = vadd.f32 %v280_v47, %v264_v2  ;;  %5038 = vmatprep.subr.bf16.mxu0 %v6929_v39  ;;  %v1238_v30 = vadd.f32 %v408_v59, %v392_v34  ;;  %v1015_v8 = vrot.slane %v1014_v41, 4  ;;  %v6941_v39 = vld [vmem:[%s10749_s1 + $0x5e4] ss:$16 sps:$4 sm:$0xff]   ;;  %v6939_v59 = vld [vmem:[%s10749_s1 + $0x5e0] ss:$16 sps:$4 sm:$0xff]  }
  0x96   :  { %v679_v37 = vrot.slane %v678_v56, 4  ;;  %v456_v14 = vadd.f32 %v455_v20, %v454_v54  ;;  %v568_v52 = vadd.f32 %v567_v1, %v566_v17  ;;  %v1127_v29 = vrot.slane %v1126_v3, 4  ;;  %v6920_v20 = vld [vmem:[%s10749_s1 + $0x664] ss:$16 sps:$4 sm:$0xff]  }
  0x97   :  { %10824 = vst [vmem:[#allocation3_spill] sm:$0xff] %v8335_v6  ;;  %5018 = vmatmul.mubr.bf16.vlgmr.msra.gmra.mxu1 %v8335_v6  ;;  %v791_v23 = vrot.slane %v790_v25, 4  ;;  %v904_v47 = vadd.f32 %v903_v46, %v902_v9  ;;  %v1239_v26 = vrot.slane %v1238_v30, 4  ;;  %v1016_v57 = vadd.f32 %v1015_v8, %v1014_v41  ;;  %v6914_v46 = vld [vmem:[%s10749_s1 + $0x684] ss:$16 sps:$4 sm:$0xff]  }
  0x98   :  { %5068 = vmatpush1.bf16.msra.mxu1 %v6894_v13  ;;  %5039 = vmatpush1.bf16.msra.mxu0 %v6927_v38  ;;  %v680_v10 = vadd.f32 %v679_v37, %v678_v56  ;;  %v6906_v13 = vld [vmem:[%s10749_s1 + $0x6a0] ss:$16 sps:$4 sm:$0xff]   ;;  %v457_v53 = vrot.slane %v456_v14, 2  ;;  %v1128_v58 = vadd.f32 %v1127_v29, %v1126_v3 }
  0x99   :  { %5069 = vmatprep.subr.bf16.mxu1 %v6902_v21  ;;  %v792_v2 = vadd.f32 %v791_v23, %v790_v25  ;;  %5040 = vmatprep.subr.bf16.mxu0 %v6935_v31  ;;  %v569_v21 = vrot.slane %v568_v52, 2  ;;  %v905_v37 = vrot.slane %v904_v47, 2  ;;  %v1240_v62 = vadd.f32 %v1239_v26, %v1238_v30  ;;  %v6945_v26 = vld [vmem:[%s10749_s1 + $0x5c0] ss:$16 sps:$4 sm:$0xff]  }
  0x9a   :  { %v681_v23 = vrot.slane %v680_v10, 2  ;;  %v458_v34 = vadd.f32 %v457_v53, %v456_v14  ;;  %v1017_v38 = vrot.slane %v1016_v57, 2  ;;  %v1129_v9 = vrot.slane %v1128_v58, 2 }
  0x9b   :  { %v793_v36 = vrot.slane %v792_v2, 2  ;;  %v906_v54 = vadd.f32 %v905_v37, %v904_v47  ;;  %v1241_v17 = vrot.slane %v1240_v62, 2  ;;  %v170_v37 = vunpack.c.h.bf16 %v8329_v40 }
  0x9c   :  { %5070 = vmatpush1.bf16.msra.mxu1 %v6900_v18  ;;  %v570_v18 = vadd.f32 %v569_v21, %v568_v52  ;;  %5041 = vmatpush1.bf16.msra.mxu0 %v6933_v32  ;;  %v682_v8 = vadd.f32 %v681_v23, %v680_v10  ;;  %v6947_v52 = vld [vmem:[%s10749_s1 + $0x5c4] ss:$16 sps:$4 sm:$0xff]   ;;  %v459_v14 = vrot.slane %v458_v34, 1  ;;  %v1018_v56 = vadd.f32 %v1017_v38, %v1016_v57  ;;  %v6918_v57 = vld [vmem:[%s10749_s1 + $0x660] ss:$16 sps:$4 sm:$0xff]  }
  0x9d   :  { %5071 = vmatprep.subr.bf16.mxu1 %v6908_v28  ;;  %v794_v29 = vadd.f32 %v793_v36, %v792_v2  ;;  %v6912_v28 = vld [vmem:[%s10749_s1 + $0x680] ss:$16 sps:$4 sm:$0xff]   ;;  %5042 = vmatprep.subr.bf16.mxu0 %v6941_v39  ;;  %v1130_v25 = vadd.f32 %v1129_v9, %v1128_v58  ;;  %v907_v3 = vrot.slane %v906_v54, 1  ;;  %v1242_v30 = vadd.f32 %v1241_v17, %v1240_v62  ;;  %v6953_v58 = vld [vmem:[%s10749_s1 + $0x5a4] ss:$16 sps:$4 sm:$0xff]  }
  0x9e   :  { %v571_v31 = vrot.slane %v570_v18, 1  ;;  %v683_v1 = vrot.slane %v682_v8, 1  ;;  %v460_v32 = vadd.f32 %v459_v14, %v458_v34  ;;  %v1019_v2 = vrot.slane %v1018_v56, 1  ;;  %v6926_v62 = vld [vmem:[%s10749_s1 + $0x644] ss:$16 sps:$4 sm:$0xff]  }
  0x9f   :  { %v795_v41 = vrot.slane %v794_v29, 1  ;;  %v1131_v47 = vrot.slane %v1130_v25, 1  ;;  %v908_v53 = vadd.f32 %v907_v3, %v906_v54  ;;  %v1243_v21 = vrot.slane %v1242_v30, 1  ;;  %v6951_v14 = vld [vmem:[%s10749_s1 + $0x5a0] ss:$16 sps:$4 sm:$0xff]  }
  0xa0   :  { %5072 = vmatpush1.bf16.msra.mxu1 %v6906_v13  ;;  %v572_v10 = vadd.f32 %v571_v31, %v570_v18  ;;  %5043 = vmatpush2.bf16.msra.mxu0 %v6939_v59  ;;  %v684_v13 = vadd.f32 %v683_v1, %v682_v8  ;;  %v1320_v36 = vpack.c.bf16 %v460_v32, %v460_v32  ;;  %v8400_v59 = vld [vmem:[%s10750_s0 + $0x58] sm:$0xff] }
  0xa1   :  { %5073 = vmatprep.subr.bf16.mxu1 %v6914_v46  ;;  %v796_v39 = vadd.f32 %v795_v41, %v794_v29  ;;  %5044 = vmatprep.subr.bf16.mxu0 %v6947_v52  ;;  %v1020_v46 = vadd.f32 %v1019_v2, %v1018_v56  ;;  %v1132_v23 = vadd.f32 %v1131_v47, %v1130_v25  ;;  %v6924_v52 = vld [vmem:[%s10749_s1 + $0x640] ss:$16 sps:$4 sm:$0xff]   ;;  %v8416_v1 = vld [vmem:[%s10750_s0 + $0xd8] sm:$0xff]  ;;  %v6959_v41 = vld [vmem:[%s10749_s1 + $0x584] ss:$16 sps:$4 sm:$0xff]  }
  0xa2   :  { %v1244_v34 = vadd.f32 %v1243_v21, %v1242_v30  ;;  %v1336_v18 = vpack.c.bf16 %v572_v10, %v572_v10  ;;  %v1352_v38 = vpack.c.bf16 %v684_v13, %v684_v13  ;;  %v1384_v8 = vpack.c.bf16 %v908_v53, %v908_v53  ;;  %v8424_v10 = vld [vmem:[%s10750_s0 + $0x118] sm:$0xff]  ;;  %v6957_v13 = vld [vmem:[%s10749_s1 + $0x580] ss:$16 sps:$4 sm:$0xff]  }
  0xa3   :  { %v1368_v9 = vpack.c.bf16 %v796_v39, %v796_v39  ;;  %v1400_v29 = vpack.c.bf16 %v1020_v46, %v1020_v46  ;;  %v1416_v54 = vpack.c.bf16 %v1132_v23, %v1132_v23  ;;  %v2110_v17 = vunpack.c.l.b16 %v1320_v36  ;;  %v8429_v2 = vld [vmem:[%s10750_s0 + $0x158] sm:$0xff]  ;;  %v6930_v46 = vld [vmem:[%s10749_s1 + $0x620] ss:$16 sps:$4 sm:$0xff]   ;;  %v6965_v23 = vld [vmem:[%s10749_s1 + $0x564] ss:$16 sps:$4 sm:$0xff]  }
  0xa4   :  { %5074 = vmatpush1.bf16.msra.mxu1 %v6912_v28  ;;  %v8405_v28 = vld [vmem:[%s10750_s0 + $0x98] sm:$0xff]  ;;  %5045 = vmatpush2.bf16.msra.mxu0 %v6945_v26  ;;  %v1432_v31 = vpack.c.bf16 %v1244_v34, %v1244_v34  ;;  %v2126_v56 = vunpack.c.l.b16 %v1336_v18  ;;  %v2142_v25 = vunpack.c.l.b16 %v1352_v38  ;;  %v2174_v3 = vunpack.c.l.b16 %v1384_v8  ;;  %v6932_v26 = vld [vmem:[%s10749_s1 + $0x624] ss:$16 sps:$4 sm:$0xff]  }
  0xa5   :  { %5075 = vmatprep.subr.bf16.mxu1 %v6920_v20  ;;  %v2158_v20 = vunpack.c.l.b16 %v1368_v9  ;;  %5046 = vmatprep.subr.bf16.mxu0 %v6953_v58  ;;  %v2190_v30 = vunpack.c.l.b16 %v1400_v29  ;;  %v2206_v32 = vunpack.c.l.b16 %v1416_v54  ;;  %v8442_v21 = vld [vmem:[%s10750_s0 + $0x198] sm:$0xff]  ;;  %v202_v18 = vunpack.c.h.bf16 %v8405_v28  ;;  %v6938_v8 = vld [vmem:[%s10749_s1 + $0x604] ss:$16 sps:$4 sm:$0xff]  }
  0xa6   :  { %v2222_v39 = vunpack.c.l.b16 %v1432_v31  ;;  %v2275_v53 = vsel %vm2233_vm0, %v2126_v56, %v2110_v17  ;;  %v8461_v34 = vld [vmem:[%s10750_s0 + $0x218] sm:$0xff]  ;;  %v218_v9 = vunpack.c.h.bf16 %v8416_v1  ;;  %v266_v58 = vunpack.c.h.bf16 %v8442_v21  ;;  %v6936_v56 = vld [vmem:[%s10749_s1 + $0x600] ss:$16 sps:$4 sm:$0xff]  }
  0xa7   :  { %v2276_v36 = vsel %vm2235_vm1, %v2142_v25, %v2275_v53  ;;  %v8473_v54 = vld [vmem:[%s10750_s0 + $0x258] sm:$0xff]  ;;  %v6963_v25 = vld [vmem:[%s10749_s1 + $0x560] ss:$16 sps:$4 sm:$0xff]  }
  0xa8   :  { %5076 = vmatpush1.bf16.msra.mxu1 %v6918_v57  ;;  %v186_v57 = vunpack.c.h.bf16 %v8400_v59  ;;  %5047 = vmatpush2.bf16.msra.mxu0 %v6951_v14  ;;  %v2277_v29 = vsel %vm2237_vm2, %v2158_v20, %v2276_v36  ;;  %v8478_v17 = vld [vmem:[%s10750_s0 + $0x298] sm:$0xff]  ;;  %v234_v14 = vunpack.c.h.bf16 %v8424_v10  ;;  %v250_v36 = vunpack.c.h.bf16 %v8429_v2 }
  0xa9   :  { %5077 = vmatprep.subr.bf16.mxu1 %v6926_v62  ;;  %v8456_v62 = vld [vmem:[%s10750_s0 + $0x1d8] sm:$0xff]  ;;  %5048 = vmatprep.subr.bf16.mxu0 %v6959_v41  ;;  %v2278_v20 = vsel %vm2239_vm3, %v2174_v3, %v2277_v29  ;;  %v298_v29 = vunpack.c.h.bf16 %v8461_v34  ;;  %v314_v47 = vunpack.c.h.bf16 %v8473_v54  ;;  %v330_v15 = vunpack.c.h.bf16 %v8478_v17  ;;  %v6977_v41 = vld [vmem:[%s10749_s1 + $0x524] ss:$16 sps:$4 sm:$0xff]  }
  0xaa   :  { %v8483_v31 = vld [vmem:[%s10750_s0 + $0x2d8] sm:$0xff]  ;;  %v282_v3 = vunpack.c.h.bf16 %v8456_v62  ;;  %v468_v27 = vadd.f32 %v186_v57, %v170_v37  ;;  %v692_v35 = vadd.f32 %v250_v36, %v234_v14  ;;  %v6975_v57 = vld [vmem:[%s10749_s1 + $0x520] ss:$16 sps:$4 sm:$0xff]  }
  0xab   :  { %v8492_v53 = vld [vmem:[%s10750_s0 + $0x318] sm:$0xff]  ;;  %v346_v44 = vunpack.c.h.bf16 %v8483_v31 }
  0xac   :  { %5078 = vmatpush1.bf16.msra.mxu1 %v6924_v52  ;;  %v2279_v52 = vsel %vm2241_vm4, %v2190_v30, %v2278_v20  ;;  %v8514_v30 = vld [vmem:[%s10750_s0 + $0x358] sm:$0xff]  ;;  %5049 = vmatpush2.bf16.msra.mxu0 %v6957_v13  ;;  %v6950_v13 = vld [vmem:[%s10749_s1 + $0x7c4] ss:$16 sps:$4 sm:$0xff]   ;;  %v804_v6 = vadd.f32 %v282_v3, %v266_v58  ;;  %v469_v5 = vrot.slane %v468_v27, 4 }
  0xad   :  { %5079 = vmatprep.subr.bf16.mxu1 %v6932_v26  ;;  %v6971_v26 = vld [vmem:[%s10749_s1 + $0x544] ss:$16 sps:$4 sm:$0xff]   ;;  %v2280_v38 = vsel %vm2243_vm5, %v2206_v32, %v2279_v52  ;;  %10825 = vst [vmem:[#allocation4_spill] sm:$0xff] %v8514_v30  ;;  %v8519_v20 = vld [vmem:[%s10750_s0 + $0x398] sm:$0xff]  ;;  %5050 = vmatprep.subr.bf16.mxu0 %v6965_v23  ;;  %v378_v7 = vunpack.c.h.bf16 %v8514_v30  ;;  %v6969_v23 = vld [vmem:[%s10749_s1 + $0x540] ss:$16 sps:$4 sm:$0xff]  }
  0xae   :  { %10826 = vst [vmem:[#allocation5_spill] sm:$0xff] %v8519_v20  ;;  %v6944_v32 = vld [vmem:[%s10749_s1 + $0x7e4] ss:$16 sps:$4 sm:$0xff]   ;;  %v2281_v52 = vsel %vm2245_vm6, %v2222_v39, %v2280_v38  ;;  %v362_v39 = vunpack.c.h.bf16 %v8492_v53  ;;  %v394_v63 = vunpack.c.h.bf16 %v8519_v20  ;;  %v580_v38 = vadd.f32 %v218_v9, %v202_v18 }
  0xaf   :  { %v8536_v61 = vpack.c.b16 %v2281_v52, %v2281_v52  ;;  %v410_v52 = vunpack.c.h.bf16 %v8531_v33  ;;  %v693_v18 = vrot.slane %v692_v35, 4  ;;  %v805_v9 = vrot.slane %v804_v6, 4 }
  0xb0   :  { %5080 = vmatpush1.bf16.msra.mxu1 %v6930_v46  ;;  %v6942_v46 = vld [vmem:[%s10749_s1 + $0x7e0] ss:$16 sps:$4 sm:$0xff]   ;;  %5051 = vmatpush2.bf16.msra.mxu0 %v6963_v25  ;;  %v581_v50 = vrot.slane %v580_v38, 4  ;;  %v1140_v33 = vadd.f32 %v378_v7, %v362_v39 }
  0xb1   :  { %10828 = vst [vmem:[#allocation10_spill] sm:$0xff] %v8536_v61  ;;  %5081 = vmatprep.subr.bf16.mxu1 %v6938_v8  ;;  %5058 = vmatprep.mubr.bf16.mxu0 %v8536_v61  ;;  %v916_v8 = vadd.f32 %v314_v47, %v298_v29  ;;  %v1028_v61 = vadd.f32 %v346_v44, %v330_v15  ;;  %v6948_v47 = vld [vmem:[%s10749_s1 + $0x7c0] ss:$16 sps:$4 sm:$0xff]   ;;  %v6983_v44 = vld [vmem:[%s10749_s1 + $0x504] ss:$16 sps:$4 sm:$0xff]  }
  0xb2   :  { %5052 = vmatprep.subr.bf16.mxu0 %v6971_v26  ;;  %v1252_v37 = vadd.f32 %v410_v52, %v394_v63  ;;  %v470_v15 = vadd.f32 %v469_v5, %v468_v27  ;;  %v582_v7 = vadd.f32 %v581_v50, %v580_v38  ;;  %v1141_v63 = vrot.slane %v1140_v33, 4  ;;  %v6981_v50 = vld [vmem:[%s10749_s1 + $0x500] ss:$16 sps:$4 sm:$0xff]  }
  0xb3   :  { %v917_v25 = vrot.slane %v916_v8, 4  ;;  %v1029_v20 = vrot.slane %v1028_v61, 4  ;;  %v694_v14 = vadd.f32 %v693_v18, %v692_v35  ;;  %v806_v36 = vadd.f32 %v805_v9, %v804_v6  ;;  %v6954_v35 = vld [vmem:[%s10749_s1 + $0x7a0] ss:$16 sps:$4 sm:$0xff]  }
  0xb4   :  { %5082 = vmatpush1.bf16.msra.mxu1 %v6936_v56  ;;  %v1253_v58 = vrot.slane %v1252_v37, 4  ;;  %v6956_v56 = vld [vmem:[%s10749_s1 + $0x7a4] ss:$16 sps:$4 sm:$0xff]   ;;  %5053 = vmatpush2.bf16.msra.mxu0 %v6969_v23  ;;  %v471_v26 = vrot.slane %v470_v15, 2  ;;  %v1142_v39 = vadd.f32 %v1141_v63, %v1140_v33 }
  0xb5   :  { %5083 = vmatprep.subr.bf16.mxu1 %v6944_v32  ;;  %v918_v3 = vadd.f32 %v917_v25, %v916_v8  ;;  %v1030_v29 = vadd.f32 %v1029_v20, %v1028_v61  ;;  %5054 = vmatprep.subr.bf16.mxu0 %v6977_v41  ;;  %v583_v32 = vrot.slane %v582_v7, 2  ;;  %v695_v5 = vrot.slane %v694_v14, 2  ;;  %v6962_v33 = vld [vmem:[%s10749_s1 + $0x784] ss:$16 sps:$4 sm:$0xff]  }
  0xb6   :  { %v1254_v52 = vadd.f32 %v1253_v58, %v1252_v37  ;;  %v807_v27 = vrot.slane %v806_v36, 2  ;;  %v472_v61 = vadd.f32 %v471_v26, %v470_v15  ;;  %v1143_v41 = vrot.slane %v1142_v39, 2  ;;  %v6989_v15 = vld [vmem:[%s10749_s1 + $0x8e4] ss:$16 sps:$4 sm:$0xff]  }
  0xb7   :  { %v919_v38 = vrot.slane %v918_v3, 2  ;;  %v1031_v30 = vrot.slane %v1030_v29, 2  ;;  %v584_v6 = vadd.f32 %v583_v32, %v582_v7 }
  0xb8   :  { %5084 = vmatpush2.bf16.msra.mxu1 %v6942_v46  ;;  %v1255_v20 = vrot.slane %v1254_v52, 2  ;;  %5055 = vmatpush2.bf16.msra.mxu0 %v6975_v57  ;;  %v808_v46 = vadd.f32 %v807_v27, %v806_v36  ;;  %v473_v37 = vrot.slane %v472_v61, 1  ;;  %v1144_v9 = vadd.f32 %v1143_v41, %v1142_v39  ;;  %v6960_v57 = vld [vmem:[%s10749_s1 + $0x780] ss:$16 sps:$4 sm:$0xff]   ;;  %v6968_v36 = vld [vmem:[%s10749_s1 + $0x764] ss:$16 sps:$4 sm:$0xff]  }
  0xb9   :  { %5085 = vmatprep.subr.bf16.mxu1 %v6950_v13  ;;  %v696_v13 = vadd.f32 %v695_v5, %v694_v14  ;;  %v920_v23 = vadd.f32 %v919_v38, %v918_v3  ;;  %v1032_v8 = vadd.f32 %v1031_v30, %v1030_v29  ;;  %5056 = vmatprep.subr.bf16.mxu0 %v6983_v44  ;;  %v585_v18 = vrot.slane %v584_v6, 1 }
  0xba   :  { %v1256_v25 = vadd.f32 %v1255_v20, %v1254_v52  ;;  %v809_v63 = vrot.slane %v808_v46, 1  ;;  %v474_v30 = vadd.f32 %v473_v37, %v472_v61  ;;  %v1145_v44 = vrot.slane %v1144_v9, 1  ;;  %v6966_v20 = vld [vmem:[%s10749_s1 + $0x760] ss:$16 sps:$4 sm:$0xff]  }
  0xbb   :  { %v697_v7 = vrot.slane %v696_v13, 1  ;;  %v921_v58 = vrot.slane %v920_v23, 1  ;;  %v1033_v26 = vrot.slane %v1032_v8, 1 }
  0xbc   :  { %5086 = vmatpush2.bf16.msra.mxu1 %v6948_v47  ;;  %v586_v47 = vadd.f32 %v585_v18, %v584_v6  ;;  %v1257_v14 = vrot.slane %v1256_v25, 1  ;;  %5057 = vmatpush2.bf16.msra.mxu0 %v6981_v50  ;;  %v810_v29 = vadd.f32 %v809_v63, %v808_v46  ;;  %v1146_v39 = vadd.f32 %v1145_v44, %v1144_v9 }
  0xbd   :  { %5087 = vmatprep.subr.bf16.mxu1 %v6956_v56  ;;  %v698_v3 = vadd.f32 %v697_v7, %v696_v13  ;;  %v922_v56 = vadd.f32 %v921_v58, %v920_v23  ;;  %v1034_v32 = vadd.f32 %v1033_v26, %v1032_v8  ;;  %v1322_v5 = vpack.c.bf16 %v474_v30, %v474_v30 }
  0xbe   :  { %v1258_v52 = vadd.f32 %v1257_v14, %v1256_v25  ;;  %v1338_v27 = vpack.c.bf16 %v586_v47, %v586_v47  ;;  %v1370_v61 = vpack.c.bf16 %v810_v29, %v810_v29  ;;  %v1418_v37 = vpack.c.bf16 %v1146_v39, %v1146_v39  ;;  %5108 = vmatprep.subr.bf16.mxu0 %v6989_v15 }
  0xbf   :  { %v1354_v38 = vpack.c.bf16 %v698_v3, %v698_v3  ;;  %v1386_v6 = vpack.c.bf16 %v922_v56, %v922_v56  ;;  %v1402_v41 = vpack.c.bf16 %v1034_v32, %v1034_v32  ;;  %v2112_v13 = vunpack.c.l.b16 %v1322_v5 }
  0xc0   :  { %5088 = vmatpush2.bf16.msra.mxu1 %v6954_v35  ;;  %v1434_v50 = vpack.c.bf16 %v1258_v52, %v1258_v52  ;;  %v2128_v46 = vunpack.c.l.b16 %v1338_v27  ;;  %v6974_v35 = vld [vmem:[%s10749_s1 + $0x744] ss:$16 sps:$4 sm:$0xff]   ;;  %v2160_v8 = vunpack.c.l.b16 %v1370_v61  ;;  %v2208_v9 = vunpack.c.l.b16 %v1418_v37 }
  0xc1   :  { %5089 = vmatprep.subr.bf16.mxu1 %v6962_v33  ;;  %v2144_v23 = vunpack.c.l.b16 %v1354_v38  ;;  %v2176_v33 = vunpack.c.l.b16 %v1386_v6  ;;  %v2192_v18 = vunpack.c.l.b16 %v1402_v41  ;;  %v10829_v63 = vunpack.c.l.bf16 %v8189_v55 }
  0xc2   :  { %v2224_v25 = vunpack.c.l.b16 %v1434_v50  ;;  %v2289_v7 = vsel %vm2233_vm0, %v2128_v46, %v2112_v13  ;;  %v10830_v58 = vunpack.c.l.bf16 %v8200_v48  ;;  %v10831_v30 = vunpack.c.l.bf16 %v8205_v51  ;;  %v6972_v48 = vld [vmem:[%s10749_s1 + $0x740] ss:$16 sps:$4 sm:$0xff]  }
  0xc3   :  { %v2290_v15 = vsel %vm2235_vm1, %v2144_v23, %v2289_v7  ;;  %v10832_v47 = vunpack.c.l.bf16 %v8220_v12  ;;  %v10833_v14 = vunpack.c.l.bf16 %v8225_v49  ;;  %v10835_v29 = vunpack.c.l.bf16 %v8237_v0 }
  0xc4   :  { %5090 = vmatpush2.bf16.msra.mxu1 %v6960_v57  ;;  %v447_v26 = vadd.f32 %v10830_v58, %v10829_v63  ;;  %v10834_v57 = vunpack.c.l.bf16 %v8230_v19  ;;  %v10836_v55 = vunpack.c.l.bf16 %v8242_v42  ;;  %v10837_v12 = vunpack.c.l.bf16 %v8248_v43  ;;  %v6980_v42 = vld [vmem:[%s10749_s1 + $0x724] ss:$16 sps:$4 sm:$0xff]  }
  0xc5   :  { %5091 = vmatprep.subr.bf16.mxu1 %v6968_v36  ;;  %v559_v44 = vadd.f32 %v10832_v47, %v10831_v30  ;;  %v2291_v36 = vsel %vm2237_vm2, %v2160_v8, %v2290_v15  ;;  %v10838_v32 = vunpack.c.l.bf16 %v8264_v22  ;;  %v10839_v19 = vunpack.c.l.bf16 %v8269_v24  ;;  %v8638_v24 = vld [vmem:[%s10750_s0 + $0x20] sm:$0xff] }
  0xc6   :  { %v671_v3 = vadd.f32 %v10834_v57, %v10833_v14  ;;  %v783_v56 = vadd.f32 %v10836_v55, %v10835_v29  ;;  %v448_v51 = vrot.slane %v447_v26, 4  ;;  %v10840_v39 = vunpack.c.l.bf16 %v8274_v4 }
  0xc7   :  { %v895_v49 = vadd.f32 %v10838_v32, %v10837_v12  ;;  %v2292_v52 = vsel %vm2239_vm3, %v2176_v33, %v2291_v36  ;;  %v560_v5 = vrot.slane %v559_v44, 4  ;;  %v6986_v33 = vld [vmem:[%s10749_s1 + $0x704] ss:$16 sps:$4 sm:$0xff]   ;;  %v10842_v15 = vunpack.c.l.bf16 %v8282_v11 }
  0xc8   :  { %v1007_v0 = vadd.f32 %v10840_v39, %v10839_v19  ;;  %v672_v27 = vrot.slane %v671_v3, 4  ;;  %v784_v38 = vrot.slane %v783_v56, 4  ;;  %5092 = vmatpush2.bf16.msra.mxu1 %v6966_v20  ;;  %v2293_v43 = vsel %vm2241_vm4, %v2192_v18, %v2292_v52  ;;  %v6978_v20 = vld [vmem:[%s10749_s1 + $0x720] ss:$16 sps:$4 sm:$0xff]  }
  0xc9   :  { %v449_v61 = vadd.f32 %v448_v51, %v447_v26  ;;  %v896_v22 = vrot.slane %v895_v49, 4  ;;  %5093 = vmatprep.subr.bf16.mxu1 %v6974_v35  ;;  %v2294_v4 = vsel %vm2243_vm5, %v2208_v9, %v2293_v43  ;;  %v561_v41 = vadd.f32 %v560_v5, %v559_v44 }
  0xca   :  { %v1008_v6 = vrot.slane %v1007_v0, 4  ;;  %v673_v37 = vadd.f32 %v672_v27, %v671_v3  ;;  %v785_v50 = vadd.f32 %v784_v38, %v783_v56  ;;  %v2295_v13 = vsel %vm2245_vm6, %v2224_v25, %v2294_v4  ;;  %v6984_v3 = vld [vmem:[%s10749_s1 + $0x700] ss:$16 sps:$4 sm:$0xff]  }
  0xcb   :  { %v450_v46 = vrot.slane %v449_v61, 2  ;;  %v897_v23 = vadd.f32 %v896_v22, %v895_v49  ;;  %v8648_v18 = vpack.c.b16 %v2295_v13, %v2295_v13  ;;  %v562_v35 = vrot.slane %v561_v41, 2  ;;  %v6992_v49 = vld [vmem:[%s10749_s1 + $0xae4] ss:$16 sps:$4 sm:$0xff]  }
  0xcc   :  { %v1009_v8 = vadd.f32 %v1008_v6, %v1007_v0  ;;  %v674_v9 = vrot.slane %v673_v37, 2  ;;  %v786_v7 = vrot.slane %v785_v50, 2  ;;  %5094 = vmatpush2.bf16.msra.mxu1 %v6972_v48  ;;  %v10843_v25 = vunpack.c.l.bf16 %v8287_v60 }
  0xcd   :  { %10841 = vst [vmem:[#allocation11_spill] sm:$0xff] %v8648_v18  ;;  %v451_v63 = vadd.f32 %v450_v46, %v449_v61  ;;  %v898_v58 = vrot.slane %v897_v23, 2  ;;  %5095 = vmatprep.subr.bf16.mxu1 %v6980_v42  ;;  %5099 = vmatprep.mubr.bf16.mxu1 %v8648_v18  ;;  %v563_v47 = vadd.f32 %v562_v35, %v561_v41  ;;  %v10844_v51 = vunpack.c.l.bf16 %v8309_v16 }
  0xce   :  { %v1010_v26 = vrot.slane %v1009_v8, 2  ;;  %v1119_v30 = vadd.f32 %v10843_v25, %v10842_v15  ;;  %v675_v44 = vadd.f32 %v674_v9, %v673_v37  ;;  %v787_v14 = vadd.f32 %v786_v7, %v785_v50 }
  0xcf   :  { %v452_v29 = vrot.slane %v451_v63, 1  ;;  %v899_v55 = vadd.f32 %v898_v58, %v897_v23  ;;  %v564_v11 = vrot.slane %v563_v47, 1  ;;  %v10845_v12 = vunpack.c.l.bf16 %v8314_v45 }
  0xd0   :  { %v1011_v56 = vadd.f32 %v1010_v26, %v1009_v8  ;;  %v1120_v48 = vrot.slane %v1119_v30, 4  ;;  %v676_v36 = vrot.slane %v675_v44, 1  ;;  %v788_v60 = vrot.slane %v787_v14, 1  ;;  %5096 = vmatpush2.bf16.msra.mxu1 %v6978_v20 }
  0xd1   :  { %v1231_v32 = vadd.f32 %v10845_v12, %v10844_v51  ;;  %v453_v19 = vadd.f32 %v452_v29, %v451_v63  ;;  %v900_v39 = vrot.slane %v899_v55, 1  ;;  %5097 = vmatprep.subr.bf16.mxu1 %v6986_v33  ;;  %v565_v52 = vadd.f32 %v564_v11, %v563_v47 }
  0xd2   :  { %v1012_v0 = vrot.slane %v1011_v56, 1  ;;  %v1121_v42 = vadd.f32 %v1120_v48, %v1119_v30  ;;  %v677_v5 = vadd.f32 %v676_v36, %v675_v44  ;;  %v789_v27 = vadd.f32 %v788_v60, %v787_v14 }
  0xd3   :  { %v1232_v38 = vrot.slane %v1231_v32, 4  ;;  %v901_v43 = vadd.f32 %v900_v39, %v899_v55  ;;  %v1319_v22 = vpack.c.bf16 %v453_v19, %v453_v19  ;;  %v1335_v6 = vpack.c.bf16 %v565_v52, %v565_v52 }
  0xd4   :  { %v1013_v61 = vadd.f32 %v1012_v0, %v1011_v56  ;;  %v1122_v16 = vrot.slane %v1121_v42, 2  ;;  %v1351_v4 = vpack.c.bf16 %v677_v5, %v677_v5  ;;  %v1367_v41 = vpack.c.bf16 %v789_v27, %v789_v27  ;;  %5098 = vmatpush2.bf16.msra.mxu1 %v6984_v3 }
  0xd5   :  { %v1233_v45 = vadd.f32 %v1232_v38, %v1231_v32  ;;  %v1383_v50 = vpack.c.bf16 %v901_v43, %v901_v43  ;;  %v2109_v13 = vunpack.c.l.b16 %v1319_v22  ;;  %v2125_v23 = vunpack.c.l.b16 %v1335_v6  ;;  %5149 = vmatprep.subr.bf16.mxu1 %v6992_v49 }
  0xd6   :  { %v1123_v37 = vadd.f32 %v1122_v16, %v1121_v42  ;;  %v1399_v20 = vpack.c.bf16 %v1013_v61, %v1013_v61  ;;  %v2141_v8 = vunpack.c.l.b16 %v1351_v4  ;;  %v2157_v33 = vunpack.c.l.b16 %v1367_v41 }
  0xd7   :  { %v1234_v46 = vrot.slane %v1233_v45, 2  ;;  %v2173_v9 = vunpack.c.l.b16 %v1383_v50  ;;  %v10846_v63 = vunpack.c.l.bf16 %v8329_v40  ;;  %v10847_v58 = vunpack.c.l.bf16 %v8400_v59 }
  0xd8   :  { %v1124_v35 = vrot.slane %v1123_v37, 1  ;;  %v2189_v7 = vunpack.c.l.b16 %v1399_v20  ;;  %v2268_v25 = vsel %vm2233_vm0, %v2125_v23, %v2109_v13  ;;  %v10848_v30 = vunpack.c.l.bf16 %v8405_v28 }
  0xd9   :  { %v461_v26 = vadd.f32 %v10847_v58, %v10846_v63  ;;  %v1235_v15 = vadd.f32 %v1234_v46, %v1233_v45  ;;  %v10849_v47 = vunpack.c.l.bf16 %v8416_v1  ;;  %v10850_v14 = vunpack.c.l.bf16 %v8424_v10  ;;  %v6987_v63 = vld [vmem:[%s10749_s1 + $0x8e0] ss:$16 sps:$4 sm:$0xff]   ;;  %v6995_v58 = vld [vmem:[%s10749_s1 + $0x8c4] ss:$16 sps:$4 sm:$0xff]  }
  0xda   :  { %v10851_v3 = vunpack.c.l.bf16 %v8429_v2  ;;  %v1125_v55 = vadd.f32 %v1124_v35, %v1123_v37  ;;  %v2269_v56 = vsel %vm2235_vm1, %v2141_v8, %v2268_v25  ;;  %v10852_v59 = vunpack.c.l.bf16 %v8442_v21  ;;  %v10859_v8 = vld [vmem:[#allocation4_spill] sm:$0xff] }
  0xdb   :  { %v573_v44 = vadd.f32 %v10849_v47, %v10848_v30  ;;  %v462_v40 = vrot.slane %v461_v26, 4  ;;  %v10853_v48 = vunpack.c.l.bf16 %v8456_v62  ;;  %v1236_v36 = vrot.slane %v1235_v15, 1 }
  0xdc   :  { %v685_v29 = vadd.f32 %v10851_v3, %v10850_v14  ;;  %v2270_v28 = vsel %vm2237_vm2, %v2157_v33, %v2269_v56  ;;  %v1415_v51 = vpack.c.bf16 %v1125_v55, %v1125_v55  ;;  %v10854_v62 = vunpack.c.l.bf16 %v8461_v34  ;;  %v10862_v55 = vld [vmem:[#allocation5_spill] sm:$0xff] }
  0xdd   :  { %v797_v11 = vadd.f32 %v10853_v48, %v10852_v59  ;;  %v574_v60 = vrot.slane %v573_v44, 4  ;;  %v2271_v10 = vsel %vm2239_vm3, %v2173_v9, %v2270_v28  ;;  %v463_v12 = vadd.f32 %v462_v40, %v461_v26  ;;  %v10864_v40 = vld [vmem:[#allocation7_spill] sm:$0xff] }
  0xde   :  { %v686_v1 = vrot.slane %v685_v29, 4  ;;  %v1237_v32 = vadd.f32 %v1236_v36, %v1235_v15  ;;  %v2272_v49 = vsel %vm2241_vm4, %v2189_v7, %v2271_v10  ;;  %v2205_v0 = vunpack.c.l.b16 %v1415_v51  ;;  %v6993_v36 = vld [vmem:[%s10749_s1 + $0x8c0] ss:$16 sps:$4 sm:$0xff]   ;;  %v7001_v28 = vld [vmem:[%s10749_s1 + $0x8a4] ss:$16 sps:$4 sm:$0xff]  }
  0xdf   :  { %v798_v2 = vrot.slane %v797_v11, 4  ;;  %v575_v19 = vadd.f32 %v574_v60, %v573_v44  ;;  %v464_v21 = vrot.slane %v463_v12, 2  ;;  %v10855_v52 = vunpack.c.l.bf16 %v8473_v54 }
  0xe0   :  { %v687_v39 = vadd.f32 %v686_v1, %v685_v29  ;;  %v1431_v27 = vpack.c.bf16 %v1237_v32, %v1237_v32  ;;  %v10856_v61 = vunpack.c.l.bf16 %v8478_v17  ;;  %v10857_v16 = vunpack.c.l.bf16 %v8483_v31 }
  0xe1   :  { %v799_v42 = vadd.f32 %v798_v2, %v797_v11  ;;  %v909_v5 = vadd.f32 %v10855_v52, %v10854_v62  ;;  %v576_v38 = vrot.slane %v575_v19, 2  ;;  %v2273_v45 = vsel %vm2243_vm5, %v2205_v0, %v2272_v49  ;;  %v6999_v62 = vld [vmem:[%s10749_s1 + $0x8a0] ss:$16 sps:$4 sm:$0xff]  }
  0xe2   :  { %v688_v43 = vrot.slane %v687_v39, 2  ;;  %v1021_v22 = vadd.f32 %v10857_v16, %v10856_v61  ;;  %v465_v6 = vadd.f32 %v464_v21, %v463_v12  ;;  %v2221_v37 = vunpack.c.l.b16 %v1431_v27  ;;  %v8723_v12 = vld [vmem:[%s10750_s0 + $0x60] sm:$0xff] }
  0xe3   :  { %v800_v4 = vrot.slane %v799_v42, 2  ;;  %v910_v41 = vrot.slane %v909_v5, 4  ;;  %v577_v50 = vadd.f32 %v576_v38, %v575_v19  ;;  %v10858_v23 = vunpack.c.l.bf16 %v8492_v53  ;;  %v7007_v38 = vld [vmem:[%s10749_s1 + $0x884] ss:$16 sps:$4 sm:$0xff]  }
  0xe4   :  { %v689_v20 = vadd.f32 %v688_v43, %v687_v39  ;;  %v1022_v34 = vrot.slane %v1021_v22, 4  ;;  %v466_v13 = vrot.slane %v465_v6, 1  ;;  %v10860_v33 = vunpack.c.l.bf16 %v10859_v8  ;;  %v8734_v43 = vld [vmem:[%s10750_s0 + $0xa0] sm:$0xff] }
  0xe5   :  { %v801_v54 = vadd.f32 %v800_v4, %v799_v42  ;;  %v911_v46 = vadd.f32 %v910_v41, %v909_v5  ;;  %v2274_v31 = vsel %vm2245_vm6, %v2221_v37, %v2273_v45  ;;  %v578_v35 = vrot.slane %v577_v50, 1  ;;  %v8739_v61 = vld [vmem:[%s10750_s0 + $0xe0] sm:$0xff] }
  0xe6   :  { %v1133_v17 = vadd.f32 %v10860_v33, %v10858_v23  ;;  %v690_v9 = vrot.slane %v689_v20, 1  ;;  %v1023_v7 = vadd.f32 %v1022_v34, %v1021_v22  ;;  %v8707_v26 = vpack.c.b16 %v2274_v31, %v2274_v31  ;;  %v8744_v16 = vld [vmem:[%s10750_s0 + $0x120] sm:$0xff] }
  0xe7   :  { %v467_v15 = vadd.f32 %v466_v13, %v465_v6  ;;  %v802_v53 = vrot.slane %v801_v54, 1  ;;  %v912_v25 = vrot.slane %v911_v46, 2  ;;  %v579_v30 = vadd.f32 %v578_v35, %v577_v50  ;;  %v8751_v41 = vld [vmem:[%s10750_s0 + $0x160] sm:$0xff] }
  0xe8   :  { %10861 = vst [vmem:[#allocation4_spill] sm:$0xff] %v8707_v26  ;;  %v691_v47 = vadd.f32 %v690_v9, %v689_v20  ;;  %v1024_v44 = vrot.slane %v1023_v7, 2  ;;  %v1134_v14 = vrot.slane %v1133_v17, 4  ;;  %5059 = vmatmul.mubr.bf16.vlgmr.msra.gmra.mxu0 %v8707_v26  ;;  %v10863_v56 = vunpack.c.l.bf16 %v10862_v55  ;;  %v8758_v13 = vld [vmem:[%s10750_s0 + $0x1a0] sm:$0xff] }
  0xe9   :  { %v803_v3 = vadd.f32 %v802_v53, %v801_v54  ;;  %v913_v29 = vadd.f32 %v912_v25, %v911_v46  ;;  %v10865_v59 = vunpack.c.l.bf16 %v10864_v40  ;;  %v1321_v11 = vpack.c.bf16 %v467_v15, %v467_v15  ;;  %5109 = vmatpush1.bf16.msra.mxu0 %v6987_v63  ;;  %v7005_v33 = vld [vmem:[%s10749_s1 + $0x880] ss:$16 sps:$4 sm:$0xff]   ;;  %v7013_v9 = vld [vmem:[%s10749_s1 + $0x864] ss:$16 sps:$4 sm:$0xff]  }
  0xea   :  { %v1025_v60 = vadd.f32 %v1024_v44, %v1023_v7  ;;  %v1135_v1 = vadd.f32 %v1134_v14, %v1133_v17  ;;  %v1337_v51 = vpack.c.bf16 %v579_v30, %v579_v30  ;;  %v1353_v10 = vpack.c.bf16 %v691_v47, %v691_v47  ;;  %5110 = vmatprep.subr.bf16.mxu0 %v6995_v58  ;;  %v8772_v7 = vld [vmem:[%s10750_s0 + $0x1e0] sm:$0xff] }
  0xeb   :  { %v1245_v48 = vadd.f32 %v10865_v59, %v10863_v56  ;;  %v914_v2 = vrot.slane %v913_v29, 1  ;;  %v1369_v49 = vpack.c.bf16 %v803_v3, %v803_v3  ;;  %v2111_v19 = vunpack.c.l.b16 %v1321_v11  ;;  %v8777_v63 = vld [vmem:[%s10750_s0 + $0x220] sm:$0xff] }
  0xec   :  { %v1026_v39 = vrot.slane %v1025_v60, 1  ;;  %v1136_v0 = vrot.slane %v1135_v1, 2  ;;  %v2127_v21 = vunpack.c.l.b16 %v1337_v51  ;;  %v2143_v42 = vunpack.c.l.b16 %v1353_v10  ;;  %v8782_v58 = vld [vmem:[%s10750_s0 + $0x260] sm:$0xff] }
  0xed   :  { %v1246_v32 = vrot.slane %v1245_v48, 4  ;;  %v915_v52 = vadd.f32 %v914_v2, %v913_v29  ;;  %v2159_v27 = vunpack.c.l.b16 %v1369_v49  ;;  %v172_v22 = vunpack.c.h.bf16 %v8638_v24  ;;  %5111 = vmatpush1.bf16.msra.mxu0 %v6993_v36  ;;  %v8789_v47 = vld [vmem:[%s10750_s0 + $0x2a0] sm:$0xff] }
  0xee   :  { %v1027_v45 = vadd.f32 %v1026_v39, %v1025_v60  ;;  %v1137_v6 = vadd.f32 %v1136_v0, %v1135_v1  ;;  %v2282_v4 = vsel %vm2233_vm0, %v2127_v21, %v2111_v19  ;;  %5112 = vmatprep.subr.bf16.mxu0 %v7001_v28  ;;  %v188_v54 = vunpack.c.h.bf16 %v8723_v12  ;;  %v8797_v55 = vld [vmem:[%s10750_s0 + $0x2e0] sm:$0xff] }
  0xef   :  { %v1247_v5 = vadd.f32 %v1246_v32, %v1245_v48  ;;  %v1385_v20 = vpack.c.bf16 %v915_v52, %v915_v52  ;;  %v2283_v34 = vsel %vm2235_vm1, %v2143_v42, %v2282_v4  ;;  %v204_v15 = vunpack.c.h.bf16 %v8734_v43  ;;  %v7011_v11 = vld [vmem:[%s10749_s1 + $0x860] ss:$16 sps:$4 sm:$0xff]   ;;  %v7019_v1 = vld [vmem:[%s10749_s1 + $0x844] ss:$16 sps:$4 sm:$0xff]  }
  0xf0   :  { %v1138_v46 = vrot.slane %v1137_v6, 1  ;;  %v1401_v23 = vpack.c.bf16 %v1027_v45, %v1027_v45  ;;  %v2284_v8 = vsel %vm2237_vm2, %v2159_v27, %v2283_v34  ;;  %v220_v44 = vunpack.c.h.bf16 %v8739_v61  ;;  %v8813_v51 = vld [vmem:[%s10750_s0 + $0x320] sm:$0xff] }
  0xf1   :  { %v1248_v50 = vrot.slane %v1247_v5, 2  ;;  %v2175_v35 = vunpack.c.l.b16 %v1385_v20  ;;  %5113 = vmatpush1.bf16.msra.mxu0 %v6999_v62  ;;  %v236_v56 = vunpack.c.h.bf16 %v8744_v16  ;;  %v252_v36 = vunpack.c.h.bf16 %v8751_v41  ;;  %v8818_v10 = vld [vmem:[%s10750_s0 + $0x360] sm:$0xff]  ;;  %v9039_v62 = vld [vmem:[%s10750_s0 + $0x3e8] sm:$0xff] }
  0xf2   :  { %v1139_v25 = vadd.f32 %v1138_v46, %v1137_v6  ;;  %v2191_v30 = vunpack.c.l.b16 %v1401_v23  ;;  %5114 = vmatprep.subr.bf16.mxu0 %v7007_v38  ;;  %v8823_v2 = vld [vmem:[%s10750_s0 + $0x3a0] sm:$0xff]  ;;  %v268_v32 = vunpack.c.h.bf16 %v8758_v13  ;;  %v284_v19 = vunpack.c.h.bf16 %v8772_v7  ;;  %10868 = vst [vmem:[#allocation12_spill] sm:$0xff] %v9039_v62 }
  0xf3   :  { %v1249_v31 = vadd.f32 %v1248_v50, %v1247_v5  ;;  %v2285_v29 = vsel %vm2239_vm3, %v2175_v35, %v2284_v8  ;;  %v8831_v0 = vld [vmem:[%s10750_s0 + $0x3e0] sm:$0xff]  ;;  %v300_v42 = vunpack.c.h.bf16 %v8777_v63  ;;  %v316_v5 = vunpack.c.h.bf16 %v8782_v58 }
  0xf4   :  { %v1417_v59 = vpack.c.bf16 %v1139_v25, %v1139_v25  ;;  %v2286_v48 = vsel %vm2241_vm4, %v2191_v30, %v2285_v29  ;;  %v332_v38 = vunpack.c.h.bf16 %v8789_v47  ;;  %v348_v4 = vunpack.c.h.bf16 %v8797_v55  ;;  %v6990_v34 = vld [vmem:[%s10749_s1 + $0xae0] ss:$16 sps:$4 sm:$0xff]   ;;  %v7025_v35 = vld [vmem:[%s10749_s1 + $0x824] ss:$16 sps:$4 sm:$0xff]  }
  0xf5   :  { %v1250_v3 = vrot.slane %v1249_v31, 1  ;;  %5115 = vmatpush1.bf16.msra.mxu0 %v7005_v33  ;;  %v7017_v46 = vld [vmem:[%s10749_s1 + $0x840] ss:$16 sps:$4 sm:$0xff]   ;;  %v364_v23 = vunpack.c.h.bf16 %v8813_v51  ;;  %v380_v33 = vunpack.c.h.bf16 %v8818_v10  ;;  %v396_v25 = vunpack.c.h.bf16 %v8823_v2  ;;  %v7040_v14 = vld [vmem:[%s10749_s1 + $0xbe4] ss:$16 sps:$4 sm:$0xff]  }
  0xf6   :  { %v2207_v39 = vunpack.c.l.b16 %v1417_v59  ;;  %5116 = vmatprep.subr.bf16.mxu0 %v7013_v9  ;;  %v482_v59 = vadd.f32 %v188_v54, %v172_v22  ;;  %v1042_v9 = vadd.f32 %v348_v4, %v332_v38  ;;  %v7065_v28 = vld [vmem:[%s10749_s1 + $0x940] ss:$16 sps:$4 sm:$0xff]  }
  0xf7   :  { %v1251_v60 = vadd.f32 %v1250_v3, %v1249_v31  ;;  %v6998_v31 = vld [vmem:[%s10749_s1 + $0xac4] ss:$16 sps:$4 sm:$0xff]   ;;  %v412_v3 = vunpack.c.h.bf16 %v8831_v0  ;;  %v1154_v6 = vadd.f32 %v380_v33, %v364_v23 }
  0xf8   :  { %v2287_v45 = vsel %vm2243_vm5, %v2207_v39, %v2286_v48  ;;  %v594_v48 = vadd.f32 %v220_v44, %v204_v15  ;;  %v818_v39 = vadd.f32 %v284_v19, %v268_v32  ;;  %v483_v8 = vrot.slane %v482_v59, 4  ;;  %v6996_v44 = vld [vmem:[%s10749_s1 + $0xac0] ss:$16 sps:$4 sm:$0xff]  }
  0xf9   :  { %v1433_v52 = vpack.c.bf16 %v1251_v60, %v1251_v60  ;;  %5117 = vmatpush1.bf16.msra.mxu0 %v7011_v11  ;;  %v706_v11 = vadd.f32 %v252_v36, %v236_v56  ;;  %v1043_v54 = vrot.slane %v1042_v9, 4  ;;  %v1266_v15 = vadd.f32 %v412_v3, %v396_v25  ;;  %v7031_v56 = vld [vmem:[%s10749_s1 + $0x804] ss:$16 sps:$4 sm:$0xff]   ;;  %v7002_v3 = vld [vmem:[%s10749_s1 + $0xaa0] ss:$16 sps:$4 sm:$0xff]  }
  0xfa   :  { %5118 = vmatprep.subr.bf16.mxu0 %v7019_v1  ;;  %v595_v50 = vrot.slane %v594_v48, 4  ;;  %v7023_v1 = vld [vmem:[%s10749_s1 + $0x820] ss:$16 sps:$4 sm:$0xff]   ;;  %v484_v36 = vadd.f32 %v483_v8, %v482_v59 }
  0xfb   :  { %v2223_v20 = vunpack.c.l.b16 %v1433_v52  ;;  %v930_v52 = vadd.f32 %v316_v5, %v300_v42  ;;  %v707_v30 = vrot.slane %v706_v11, 4  ;;  %v1155_v42 = vrot.slane %v1154_v6, 4  ;;  %v7004_v5 = vld [vmem:[%s10749_s1 + $0xaa4] ss:$16 sps:$4 sm:$0xff]  }
  0xfc   :  { %v596_v32 = vadd.f32 %v595_v50, %v594_v48  ;;  %v7029_v50 = vld [vmem:[%s10749_s1 + $0x800] ss:$16 sps:$4 sm:$0xff]  }
  0xfd   :  { %v2288_v29 = vsel %vm2245_vm6, %v2223_v20, %v2287_v45  ;;  %5119 = vmatpush1.bf16.msra.mxu0 %v7017_v46  ;;  %v819_v45 = vrot.slane %v818_v39, 4  ;;  %v931_v22 = vrot.slane %v930_v52, 4  ;;  %v708_v19 = vadd.f32 %v707_v30, %v706_v11  ;;  %v7010_v11 = vld [vmem:[%s10749_s1 + $0xa84] ss:$16 sps:$4 sm:$0xff]  }
  0xfe   :  { %v8867_v60 = vpack.c.b16 %v2288_v29, %v2288_v29  ;;  %5120 = vmatprep.subr.bf16.mxu0 %v7025_v35  ;;  %v1044_v20 = vadd.f32 %v1043_v54, %v1042_v9  ;;  %v485_v46 = vrot.slane %v484_v36, 2  ;;  %v597_v23 = vrot.slane %v596_v32, 2  ;;  %v7037_v9 = vld [vmem:[%s10749_s1 + $0x9e4] ss:$16 sps:$4 sm:$0xff]  }
  0xff   :  { %v820_v38 = vadd.f32 %v819_v45, %v818_v39  ;;  %v932_v4 = vadd.f32 %v931_v22, %v930_v52  ;;  %v709_v33 = vrot.slane %v708_v19, 2  ;;  %v1156_v35 = vadd.f32 %v1155_v42, %v1154_v6 }
 0x100   :  { %10866 = vst [vmem:[#allocation5_spill] sm:$0xff] %v8867_v60  ;;  %5100 = vmatmul.mubr.bf16.vlgmr.msra.gmra.mxu1 %v8867_v60  ;;  %v486_v6 = vadd.f32 %v485_v46, %v484_v36  ;;  %v598_v29 = vadd.f32 %v597_v23, %v596_v32  ;;  %v7016_v23 = vld [vmem:[%s10749_s1 + $0xa64] ss:$16 sps:$4 sm:$0xff]  }
 0x101   :  { %5150 = vmatpush1.bf16.msra.mxu1 %v6990_v34  ;;  %v1267_v34 = vrot.slane %v1266_v15, 4  ;;  %5121 = vmatpush1.bf16.msra.mxu0 %v7023_v1  ;;  %v821_v8 = vrot.slane %v820_v38, 2  ;;  %v933_v25 = vrot.slane %v932_v4, 2  ;;  %v710_v59 = vadd.f32 %v709_v33, %v708_v19 }
 0x102   :  { %5151 = vmatprep.subr.bf16.mxu1 %v6998_v31  ;;  %v1045_v31 = vrot.slane %v1044_v20, 2  ;;  %5122 = vmatprep.subr.bf16.mxu0 %v7031_v56  ;;  %v1157_v48 = vrot.slane %v1156_v35, 2  ;;  %v487_v22 = vrot.slane %v486_v6, 1  ;;  %v599_v54 = vrot.slane %v598_v29, 1  ;;  %v7035_v56 = vld [vmem:[%s10749_s1 + $0x9e0] ss:$16 sps:$4 sm:$0xff]  }
 0x103   :  { %v1268_v30 = vadd.f32 %v1267_v34, %v1266_v15  ;;  %v822_v39 = vadd.f32 %v821_v8, %v820_v38  ;;  %v934_v52 = vadd.f32 %v933_v25, %v932_v4  ;;  %v711_v15 = vrot.slane %v710_v59, 1  ;;  %v7043_v38 = vld [vmem:[%s10749_s1 + $0x9c4] ss:$16 sps:$4 sm:$0xff]  }
 0x104   :  { %v1046_v1 = vadd.f32 %v1045_v31, %v1044_v20  ;;  %v488_v4 = vadd.f32 %v487_v22, %v486_v6  ;;  %v600_v20 = vadd.f32 %v599_v54, %v598_v29 }
 0x105   :  { %5152 = vmatpush1.bf16.msra.mxu1 %v6996_v44  ;;  %v1269_v45 = vrot.slane %v1268_v30, 2  ;;  %v1158_v44 = vadd.f32 %v1157_v48, %v1156_v35  ;;  %5123 = vmatpush1.bf16.msra.mxu0 %v7029_v50  ;;  %v823_v36 = vrot.slane %v822_v39, 1  ;;  %v935_v32 = vrot.slane %v934_v52, 1 }
 0x106   :  { %5153 = vmatprep.subr.bf16.mxu1 %v7004_v5  ;;  %v1047_v19 = vrot.slane %v1046_v1, 1  ;;  %v7008_v5 = vld [vmem:[%s10749_s1 + $0xa80] ss:$16 sps:$4 sm:$0xff]   ;;  %5124 = vmatprep.subr.bf16.mxu0 %v7037_v9  ;;  %v712_v34 = vadd.f32 %v711_v15, %v710_v59  ;;  %v1324_v31 = vpack.c.bf16 %v488_v4, %v488_v4  ;;  %v8923_v15 = vld [vmem:[%s10750_s0 + $0x68] sm:$0xff] }
 0x107   :  { %v1270_v42 = vadd.f32 %v1269_v45, %v1268_v30  ;;  %v1159_v46 = vrot.slane %v1158_v44, 1  ;;  %v824_v33 = vadd.f32 %v823_v36, %v822_v39  ;;  %v936_v35 = vadd.f32 %v935_v32, %v934_v52  ;;  %v7041_v9 = vld [vmem:[%s10749_s1 + $0x9c0] ss:$16 sps:$4 sm:$0xff]   ;;  %v7049_v52 = vld [vmem:[%s10749_s1 + $0x9a4] ss:$16 sps:$4 sm:$0xff]  }
 0x108   :  { %v1048_v50 = vadd.f32 %v1047_v19, %v1046_v1  ;;  %v1340_v30 = vpack.c.bf16 %v600_v20, %v600_v20  ;;  %v7014_v39 = vld [vmem:[%s10749_s1 + $0xa60] ss:$16 sps:$4 sm:$0xff]   ;;  %v2114_v45 = vunpack.c.l.b16 %v1324_v31  ;;  %v7055_v20 = vld [vmem:[%s10749_s1 + $0x984] ss:$16 sps:$4 sm:$0xff]   ;;  %v8962_v31 = vld [vmem:[%s10750_s0 + $0x168] sm:$0xff] }
 0x109   :  { %5154 = vmatpush1.bf16.msra.mxu1 %v7002_v3  ;;  %v1271_v8 = vrot.slane %v1270_v42, 1  ;;  %v1160_v25 = vadd.f32 %v1159_v46, %v1158_v44  ;;  %v1356_v3 = vpack.c.bf16 %v712_v34, %v712_v34  ;;  %5125 = vmatpush2.bf16.msra.mxu0 %v7035_v56  ;;  %v1372_v29 = vpack.c.bf16 %v824_v33, %v824_v33  ;;  %v7022_v44 = vld [vmem:[%s10749_s1 + $0xa44] ss:$16 sps:$4 sm:$0xff]   ;;  %v7047_v4 = vld [vmem:[%s10749_s1 + $0x9a0] ss:$16 sps:$4 sm:$0xff]  }
 0x10a   :  { %5155 = vmatprep.subr.bf16.mxu1 %v7010_v11  ;;  %v1388_v59 = vpack.c.bf16 %v936_v35, %v936_v35  ;;  %v1404_v48 = vpack.c.bf16 %v1048_v50, %v1048_v50  ;;  %v8912_v11 = vld [vmem:[%s10750_s0 + $0x28] sm:$0xff]  ;;  %5126 = vmatprep.subr.bf16.mxu0 %v7043_v38  ;;  %v2130_v22 = vunpack.c.l.b16 %v1340_v30  ;;  %v7020_v38 = vld [vmem:[%s10749_s1 + $0xa40] ss:$16 sps:$4 sm:$0xff]   ;;  %v7028_v50 = vld [vmem:[%s10749_s1 + $0xa24] ss:$16 sps:$4 sm:$0xff]   ;;  %v254_v33 = vunpack.c.h.bf16 %v8962_v31 }
 0x10b   :  { %v1272_v6 = vadd.f32 %v1271_v8, %v1270_v42  ;;  %v1420_v1 = vpack.c.bf16 %v1160_v25, %v1160_v25  ;;  %v2146_v54 = vunpack.c.l.b16 %v1356_v3  ;;  %v2162_v36 = vunpack.c.l.b16 %v1372_v29  ;;  %v8931_v42 = vld [vmem:[%s10750_s0 + $0xa8] sm:$0xff] }
 0x10c   :  { %v2178_v32 = vunpack.c.l.b16 %v1388_v59  ;;  %v2194_v19 = vunpack.c.l.b16 %v1404_v48  ;;  %v2303_v46 = vsel %vm2233_vm0, %v2130_v22, %v2114_v45  ;;  %v174_v35 = vunpack.c.h.bf16 %v8912_v11  ;;  %v8967_v30 = vld [vmem:[%s10750_s0 + $0x1a8] sm:$0xff]  ;;  %v7053_v22 = vld [vmem:[%s10749_s1 + $0x980] ss:$16 sps:$4 sm:$0xff]   ;;  %v7061_v45 = vld [vmem:[%s10749_s1 + $0x964] ss:$16 sps:$4 sm:$0xff]  }
 0x10d   :  { %5156 = vmatpush1.bf16.msra.mxu1 %v7008_v5  ;;  %v1436_v56 = vpack.c.bf16 %v1272_v6, %v1272_v6  ;;  %v8936_v5 = vld [vmem:[%s10750_s0 + $0xe8] sm:$0xff]  ;;  %v2210_v34 = vunpack.c.l.b16 %v1420_v1  ;;  %5127 = vmatpush2.bf16.msra.mxu0 %v7041_v9  ;;  %v2304_v25 = vsel %vm2235_vm1, %v2146_v54, %v2303_v46  ;;  %v190_v6 = vunpack.c.h.bf16 %v8923_v15 }
 0x10e   :  { %5157 = vmatprep.subr.bf16.mxu1 %v7016_v23  ;;  %v8951_v23 = vld [vmem:[%s10750_s0 + $0x128] sm:$0xff]  ;;  %5128 = vmatprep.subr.bf16.mxu0 %v7049_v52  ;;  %v2305_v29 = vsel %vm2237_vm2, %v2162_v36, %v2304_v25  ;;  %v206_v52 = vunpack.c.h.bf16 %v8931_v42  ;;  %v222_v36 = vunpack.c.h.bf16 %v8936_v5  ;;  %v270_v21 = vunpack.c.h.bf16 %v8967_v30 }
 0x10f   :  { %v2226_v8 = vunpack.c.l.b16 %v1436_v56  ;;  %v8972_v3 = vld [vmem:[%s10750_s0 + $0x1e8] sm:$0xff]  ;;  %v2306_v54 = vsel %vm2239_vm3, %v2178_v32, %v2305_v29  ;;  %v238_v25 = vunpack.c.h.bf16 %v8951_v23  ;;  %v496_v37 = vadd.f32 %v190_v6, %v174_v35  ;;  %v7046_v35 = vld [vmem:[%s10749_s1 + $0xbc4] ss:$16 sps:$4 sm:$0xff]  }
 0x110   :  { %v8980_v59 = vld [vmem:[%s10750_s0 + $0x228] sm:$0xff]  ;;  %v2307_v32 = vsel %vm2241_vm4, %v2194_v19, %v2306_v54  ;;  %v7034_v54 = vld [vmem:[%s10749_s1 + $0xa04] ss:$16 sps:$4 sm:$0xff]   ;;  %v286_v49 = vunpack.c.h.bf16 %v8972_v3  ;;  %v608_v57 = vadd.f32 %v222_v36, %v206_v52 }
 0x111   :  { %5158 = vmatpush1.bf16.msra.mxu1 %v7014_v39  ;;  %v8985_v48 = vld [vmem:[%s10750_s0 + $0x268] sm:$0xff]  ;;  %5129 = vmatpush2.bf16.msra.mxu0 %v7047_v4  ;;  %v2308_v27 = vsel %vm2243_vm5, %v2210_v34, %v2307_v32  ;;  %v302_v4 = vunpack.c.h.bf16 %v8980_v59  ;;  %v7067_v34 = vld [vmem:[%s10749_s1 + $0x944] ss:$16 sps:$4 sm:$0xff]   ;;  %v720_v60 = vadd.f32 %v254_v33, %v238_v25 }
 0x112   :  { %v8990_v1 = vld [vmem:[%s10750_s0 + $0x2a8] sm:$0xff]  ;;  %5159 = vmatprep.subr.bf16.mxu1 %v7022_v44  ;;  %v7026_v44 = vld [vmem:[%s10749_s1 + $0xa20] ss:$16 sps:$4 sm:$0xff]   ;;  %5130 = vmatprep.subr.bf16.mxu0 %v7055_v20  ;;  %v2309_v19 = vsel %vm2245_vm6, %v2226_v8, %v2308_v27  ;;  %v318_v40 = vunpack.c.h.bf16 %v8985_v48  ;;  %v609_v17 = vrot.slane %v608_v57, 4  ;;  %v7073_v33 = vld [vmem:[%s10749_s1 + $0x924] ss:$16 sps:$4 sm:$0xff]  }
 0x113   :  { %v9002_v56 = vld [vmem:[%s10750_s0 + $0x2e8] sm:$0xff]  ;;  %v9048_v32 = vpack.c.b16 %v2309_v19, %v2309_v19  ;;  %v334_v9 = vunpack.c.h.bf16 %v8990_v1  ;;  %v7059_v27 = vld [vmem:[%s10749_s1 + $0x960] ss:$16 sps:$4 sm:$0xff]  }
 0x114   :  { %v9017_v29 = vld [vmem:[%s10750_s0 + $0x328] sm:$0xff]  ;;  %v944_v53 = vadd.f32 %v318_v40, %v302_v4  ;;  %v610_v52 = vadd.f32 %v609_v17, %v608_v57 }
 0x115   :  { %v9022_v46 = vld [vmem:[%s10750_s0 + $0x368] sm:$0xff]  ;;  %5160 = vmatpush1.bf16.msra.mxu1 %v7020_v38  ;;  %10869 = vst [vmem:[#allocation13_spill] sm:$0xff] %v9048_v32  ;;  %v7032_v38 = vld [vmem:[%s10749_s1 + $0xa00] ss:$16 sps:$4 sm:$0xff]   ;;  %v366_v19 = vunpack.c.h.bf16 %v9017_v29  ;;  %5131 = vmatpush2.bf16.msra.mxu0 %v7053_v22  ;;  %v414_v22 = vunpack.c.h.bf16 %v9039_v62 }
 0x116   :  { %v9027_v39 = vld [vmem:[%s10750_s0 + $0x3a8] sm:$0xff]  ;;  %5161 = vmatprep.subr.bf16.mxu1 %v7028_v50  ;;  %v350_v50 = vunpack.c.h.bf16 %v9002_v56  ;;  %5140 = vmatprep.mubr.bf16.mxu0 %v9048_v32  ;;  %v382_v20 = vunpack.c.h.bf16 %v9022_v46  ;;  %v832_v32 = vadd.f32 %v286_v49, %v270_v21  ;;  %v721_v49 = vrot.slane %v720_v60, 4 }
 0x117   :  { %10867 = vst [vmem:[#allocation7_spill] sm:$0xff] %v9027_v39  ;;  %v398_v8 = vunpack.c.h.bf16 %v9027_v39  ;;  %5132 = vmatprep.subr.bf16.mxu0 %v7061_v45  ;;  %v7038_v45 = vld [vmem:[%s10749_s1 + $0xbe0] ss:$16 sps:$4 sm:$0xff]   ;;  %v945_v21 = vrot.slane %v944_v53, 4  ;;  %v611_v17 = vrot.slane %v610_v52, 2 }
 0x118   :  { %v1056_v26 = vadd.f32 %v350_v50, %v334_v9  ;;  %v1168_v18 = vadd.f32 %v382_v20, %v366_v19  ;;  %v833_v40 = vrot.slane %v832_v32, 4  ;;  %v722_v4 = vadd.f32 %v721_v49, %v720_v60 }
 0x119   :  { %5162 = vmatpush1.bf16.msra.mxu1 %v7026_v44  ;;  %v497_v44 = vrot.slane %v496_v37, 4  ;;  %v1280_v62 = vadd.f32 %v414_v22, %v398_v8  ;;  %5133 = vmatpush2.bf16.msra.mxu0 %v7059_v27  ;;  %v946_v20 = vadd.f32 %v945_v21, %v944_v53  ;;  %v7044_v8 = vld [vmem:[%s10749_s1 + $0xbc0] ss:$16 sps:$4 sm:$0xff]   ;;  %v612_v22 = vadd.f32 %v611_v17, %v610_v52  ;;  %v7058_v52 = vld [vmem:[%s10749_s1 + $0xb84] ss:$16 sps:$4 sm:$0xff]  }
 0x11a   :  { %5163 = vmatprep.subr.bf16.mxu1 %v7034_v54  ;;  %v1057_v9 = vrot.slane %v1056_v26, 4  ;;  %5134 = vmatprep.subr.bf16.mxu0 %v7067_v34  ;;  %v1169_v36 = vrot.slane %v1168_v18, 4  ;;  %v7071_v54 = vld [vmem:[%s10749_s1 + $0x920] ss:$16 sps:$4 sm:$0xff]   ;;  %v834_v27 = vadd.f32 %v833_v40, %v832_v32  ;;  %v723_v60 = vrot.slane %v722_v4, 2 }
 0x11b   :  { %v498_v6 = vadd.f32 %v497_v44, %v496_v37  ;;  %v1281_v25 = vrot.slane %v1280_v62, 4  ;;  %v7079_v37 = vld [vmem:[%s10749_s1 + $0x904] ss:$16 sps:$4 sm:$0xff]  }
 0x11c   :  { %v1058_v50 = vadd.f32 %v1057_v9, %v1056_v26  ;;  %v1170_v34 = vadd.f32 %v1169_v36, %v1168_v18  ;;  %v835_v53 = vrot.slane %v834_v27, 2  ;;  %v947_v26 = vrot.slane %v946_v20, 2  ;;  %v7077_v18 = vld [vmem:[%s10749_s1 + $0x900] ss:$16 sps:$4 sm:$0xff]  }
 0x11d   :  { %5164 = vmatpush1.bf16.msra.mxu1 %v7032_v38  ;;  %v499_v57 = vrot.slane %v498_v6, 2  ;;  %v7052_v38 = vld [vmem:[%s10749_s1 + $0xba4] ss:$16 sps:$4 sm:$0xff]   ;;  %5135 = vmatpush2.bf16.msra.mxu0 %v7065_v28  ;;  %v7050_v28 = vld [vmem:[%s10749_s1 + $0xba0] ss:$16 sps:$4 sm:$0xff]  }
 0x11e   :  { %5165 = vmatprep.subr.bf16.mxu1 %v7040_v14  ;;  %v1282_v14 = vadd.f32 %v1281_v25, %v1280_v62  ;;  %v1059_v32 = vrot.slane %v1058_v50, 2  ;;  %5136 = vmatprep.subr.bf16.mxu0 %v7073_v33  ;;  %v1171_v44 = vrot.slane %v1170_v34, 2  ;;  %v724_v62 = vadd.f32 %v723_v60, %v722_v4 }
 0x11f   :  { %v500_v19 = vadd.f32 %v499_v57, %v498_v6  ;;  %v836_v40 = vadd.f32 %v835_v53, %v834_v27  ;;  %v948_v21 = vadd.f32 %v947_v26, %v946_v20 }
 0x120   :  { %v1283_v49 = vrot.slane %v1282_v14, 2  ;;  %v1060_v9 = vadd.f32 %v1059_v32, %v1058_v50  ;;  %v1172_v33 = vadd.f32 %v1171_v44, %v1170_v34  ;;  %v725_v25 = vrot.slane %v724_v62, 1  ;;  %v7056_v32 = vld [vmem:[%s10749_s1 + $0xb80] ss:$16 sps:$4 sm:$0xff]  }
 0x121   :  { %5166 = vmatpush2.bf16.msra.mxu1 %v7038_v45  ;;  %v501_v36 = vrot.slane %v500_v19, 1  ;;  %v613_v45 = vrot.slane %v612_v22, 1  ;;  %5137 = vmatpush2.bf16.msra.mxu0 %v7071_v54  ;;  %v837_v4 = vrot.slane %v836_v40, 1  ;;  %v949_v27 = vrot.slane %v948_v21, 1 }
 0x122   :  { %5167 = vmatprep.subr.bf16.mxu1 %v7046_v35  ;;  %v1284_v6 = vadd.f32 %v1283_v49, %v1282_v14  ;;  %v7085_v35 = vld [vmem:[%s10749_s1 + $0xce4] ss:$16 sps:$4 sm:$0xff]   ;;  %v1061_v20 = vrot.slane %v1060_v9, 1  ;;  %5138 = vmatprep.subr.bf16.mxu0 %v7079_v37  ;;  %v1173_v17 = vrot.slane %v1172_v33, 1  ;;  %v726_v14 = vadd.f32 %v725_v25, %v724_v62  ;;  %v7062_v25 = vld [vmem:[%s10749_s1 + $0xb60] ss:$16 sps:$4 sm:$0xff]  }
 0x123   :  { %v502_v50 = vadd.f32 %v501_v36, %v500_v19  ;;  %v614_v57 = vadd.f32 %v613_v45, %v612_v22  ;;  %v838_v60 = vadd.f32 %v837_v4, %v836_v40  ;;  %v950_v53 = vadd.f32 %v949_v27, %v948_v21 }
 0x124   :  { %v1285_v34 = vrot.slane %v1284_v6, 1  ;;  %v1062_v26 = vadd.f32 %v1061_v20, %v1060_v9  ;;  %v1174_v54 = vadd.f32 %v1173_v17, %v1172_v33  ;;  %v1358_v37 = vpack.c.bf16 %v726_v14, %v726_v14 }
 0x125   :  { %5168 = vmatpush2.bf16.msra.mxu1 %v7044_v8  ;;  %v1326_v49 = vpack.c.bf16 %v502_v50, %v502_v50  ;;  %v1342_v39 = vpack.c.bf16 %v614_v57, %v614_v57  ;;  %v7064_v8 = vld [vmem:[%s10749_s1 + $0xb64] ss:$16 sps:$4 sm:$0xff]   ;;  %5139 = vmatpush2.bf16.msra.mxu0 %v7077_v18  ;;  %v1374_v19 = vpack.c.bf16 %v838_v60, %v838_v60  ;;  %v10871_v20 = vunpack.c.l.bf16 %v8723_v12 }
 0x126   :  { %5169 = vmatprep.subr.bf16.mxu1 %v7052_v38  ;;  %v1286_v44 = vadd.f32 %v1285_v34, %v1284_v6  ;;  %v1390_v38 = vpack.c.bf16 %v950_v53, %v950_v53  ;;  %v1406_v22 = vpack.c.bf16 %v1062_v26, %v1062_v26  ;;  %v1422_v62 = vpack.c.bf16 %v1174_v54, %v1174_v54 }
 0x127   :  { %v2116_v21 = vunpack.c.l.b16 %v1326_v49  ;;  %v2132_v9 = vunpack.c.l.b16 %v1342_v39  ;;  %5190 = vmatprep.subr.bf16.mxu0 %v7085_v35  ;;  %v2148_v36 = vunpack.c.l.b16 %v1358_v37  ;;  %v2164_v45 = vunpack.c.l.b16 %v1374_v19  ;;  %v7070_v39 = vld [vmem:[%s10749_s1 + $0xb44] ss:$16 sps:$4 sm:$0xff]  }
 0x128   :  { %v1438_v40 = vpack.c.bf16 %v1286_v44, %v1286_v44  ;;  %v2180_v33 = vunpack.c.l.b16 %v1390_v38  ;;  %v2196_v6 = vunpack.c.l.b16 %v1406_v22  ;;  %v2212_v18 = vunpack.c.l.b16 %v1422_v62 }
 0x129   :  { %5170 = vmatpush2.bf16.msra.mxu1 %v7050_v28  ;;  %v2317_v27 = vsel %vm2233_vm0, %v2132_v9, %v2116_v21  ;;  %v10870_v28 = vunpack.c.l.bf16 %v8638_v24  ;;  %v10873_v57 = vunpack.c.l.bf16 %v8739_v61  ;;  %v10874_v34 = vunpack.c.l.bf16 %v8744_v16 }
 0x12a   :  { %5171 = vmatprep.subr.bf16.mxu1 %v7058_v52  ;;  %v2228_v4 = vunpack.c.l.b16 %v1438_v40  ;;  %v2318_v35 = vsel %vm2235_vm1, %v2148_v36, %v2317_v27  ;;  %v10872_v52 = vunpack.c.l.bf16 %v8734_v43  ;;  %v10875_v14 = vunpack.c.l.bf16 %v8751_v41 }
 0x12b   :  { %v475_v50 = vadd.f32 %v10871_v20, %v10870_v28  ;;  %v10876_v24 = vunpack.c.l.bf16 %v8758_v13  ;;  %v10877_v12 = vunpack.c.l.bf16 %v8772_v7  ;;  %v2319_v26 = vsel %vm2237_vm2, %v2164_v45, %v2318_v35  ;;  %v7074_v20 = vld [vmem:[%s10749_s1 + $0xb20] ss:$16 sps:$4 sm:$0xff]  }
 0x12c   :  { %v587_v17 = vadd.f32 %v10873_v57, %v10872_v52  ;;  %v699_v60 = vadd.f32 %v10875_v14, %v10874_v34  ;;  %v10878_v44 = vunpack.c.l.bf16 %v8777_v63  ;;  %v10879_v43 = vunpack.c.l.bf16 %v8782_v58 }
 0x12d   :  { %v811_v53 = vadd.f32 %v10877_v12, %v10876_v24  ;;  %5172 = vmatpush2.bf16.msra.mxu1 %v7056_v32  ;;  %v476_v54 = vrot.slane %v475_v50, 4  ;;  %v10880_v49 = vunpack.c.l.bf16 %v8789_v47  ;;  %v10881_v16 = vunpack.c.l.bf16 %v8797_v55  ;;  %v7068_v32 = vld [vmem:[%s10749_s1 + $0xb40] ss:$16 sps:$4 sm:$0xff]   ;;  %v7076_v47 = vld [vmem:[%s10749_s1 + $0xb24] ss:$16 sps:$4 sm:$0xff]  }
 0x12e   :  { %v923_v61 = vadd.f32 %v10879_v43, %v10878_v44  ;;  %5173 = vmatprep.subr.bf16.mxu1 %v7064_v8  ;;  %v2320_v13 = vsel %vm2239_vm3, %v2180_v33, %v2319_v26  ;;  %v588_v37 = vrot.slane %v587_v17, 4  ;;  %v700_v7 = vrot.slane %v699_v60, 4 }
 0x12f   :  { %v1035_v41 = vadd.f32 %v10881_v16, %v10880_v49  ;;  %v812_v19 = vrot.slane %v811_v53, 4  ;;  %v2321_v63 = vsel %vm2241_vm4, %v2196_v6, %v2320_v13  ;;  %v477_v38 = vadd.f32 %v476_v54, %v475_v50 }
 0x130   :  { %v924_v58 = vrot.slane %v923_v61, 4  ;;  %v2322_v55 = vsel %vm2243_vm5, %v2212_v18, %v2321_v63  ;;  %v589_v8 = vadd.f32 %v588_v37, %v587_v17  ;;  %v701_v62 = vadd.f32 %v700_v7, %v699_v60 }
 0x131   :  { %v1036_v22 = vrot.slane %v1035_v41, 4  ;;  %v813_v40 = vadd.f32 %v812_v19, %v811_v53  ;;  %5174 = vmatpush2.bf16.msra.mxu1 %v7062_v25  ;;  %v2323_v21 = vsel %vm2245_vm6, %v2228_v4, %v2322_v55  ;;  %v478_v9 = vrot.slane %v477_v38, 2  ;;  %v7088_v19 = vld [vmem:[%s10749_s1 + $0xee4] ss:$16 sps:$4 sm:$0xff]  }
 0x132   :  { %v925_v36 = vadd.f32 %v924_v58, %v923_v61  ;;  %5175 = vmatprep.subr.bf16.mxu1 %v7070_v39  ;;  %v9163_v33 = vpack.c.b16 %v2323_v21, %v2323_v21  ;;  %v590_v6 = vrot.slane %v589_v8, 2  ;;  %v702_v27 = vrot.slane %v701_v62, 2  ;;  %v7082_v39 = vld [vmem:[%s10749_s1 + $0xb04] ss:$16 sps:$4 sm:$0xff]   ;;  %v7080_v61 = vld [vmem:[%s10749_s1 + $0xb00] ss:$16 sps:$4 sm:$0xff]  }
 0x133   :  { %v1037_v45 = vadd.f32 %v1036_v22, %v1035_v41  ;;  %v814_v28 = vrot.slane %v813_v40, 2  ;;  %v479_v18 = vadd.f32 %v478_v9, %v477_v38  ;;  %v10883_v25 = vunpack.c.l.bf16 %v8813_v51 }
 0x134   :  { %10882 = vst [vmem:[#allocation14_spill] sm:$0xff] %v9163_v33  ;;  %v926_v50 = vrot.slane %v925_v36, 2  ;;  %v10884_v4 = vunpack.c.l.bf16 %v8818_v10  ;;  %5181 = vmatprep.mubr.bf16.mxu1 %v9163_v33  ;;  %v591_v57 = vadd.f32 %v590_v6, %v589_v8  ;;  %v703_v17 = vadd.f32 %v702_v27, %v701_v62 }
 0x135   :  { %v1038_v35 = vrot.slane %v1037_v45, 2  ;;  %v815_v34 = vadd.f32 %v814_v28, %v813_v40  ;;  %v10885_v14 = vunpack.c.l.bf16 %v8823_v2  ;;  %v10886_v60 = vunpack.c.l.bf16 %v8831_v0  ;;  %5176 = vmatpush2.bf16.msra.mxu1 %v7068_v32 }
 0x136   :  { %v1147_v52 = vadd.f32 %v10884_v4, %v10883_v25  ;;  %v480_v12 = vrot.slane %v479_v18, 1  ;;  %v927_v51 = vadd.f32 %v926_v50, %v925_v36  ;;  %5177 = vmatprep.subr.bf16.mxu1 %v7076_v47  ;;  %v592_v26 = vrot.slane %v591_v57, 1 }
 0x137   :  { %v1259_v24 = vadd.f32 %v10886_v60, %v10885_v14  ;;  %v1039_v53 = vadd.f32 %v1038_v35, %v1037_v45  ;;  %v704_v54 = vrot.slane %v703_v17, 1  ;;  %v816_v44 = vrot.slane %v815_v34, 1 }
 0x138   :  { %v1148_v10 = vrot.slane %v1147_v52, 4  ;;  %v481_v49 = vadd.f32 %v480_v12, %v479_v18  ;;  %v928_v16 = vrot.slane %v927_v51, 1  ;;  %v593_v0 = vadd.f32 %v592_v26, %v591_v57 }
 0x139   :  { %v1260_v43 = vrot.slane %v1259_v24, 4  ;;  %v1040_v2 = vrot.slane %v1039_v53, 1  ;;  %v705_v13 = vadd.f32 %v704_v54, %v703_v17  ;;  %v817_v37 = vadd.f32 %v816_v44, %v815_v34  ;;  %5178 = vmatpush2.bf16.msra.mxu1 %v7074_v20 }
 0x13a   :  { %v1149_v41 = vadd.f32 %v1148_v10, %v1147_v52  ;;  %v929_v32 = vadd.f32 %v928_v16, %v927_v51  ;;  %v1323_v58 = vpack.c.bf16 %v481_v49, %v481_v49  ;;  %5179 = vmatprep.subr.bf16.mxu1 %v7082_v39  ;;  %v1339_v47 = vpack.c.bf16 %v593_v0, %v593_v0 }
 0x13b   :  { %v1261_v7 = vadd.f32 %v1260_v43, %v1259_v24  ;;  %v1041_v63 = vadd.f32 %v1040_v2, %v1039_v53  ;;  %v1355_v55 = vpack.c.bf16 %v705_v13, %v705_v13  ;;  %v1371_v8 = vpack.c.bf16 %v817_v37, %v817_v37 }
 0x13c   :  { %v1150_v38 = vrot.slane %v1149_v41, 2  ;;  %v1387_v40 = vpack.c.bf16 %v929_v32, %v929_v32  ;;  %v2113_v9 = vunpack.c.l.b16 %v1323_v58  ;;  %v2129_v45 = vunpack.c.l.b16 %v1339_v47 }
 0x13d   :  { %v1262_v22 = vrot.slane %v1261_v7, 2  ;;  %v1403_v21 = vpack.c.bf16 %v1041_v63, %v1041_v63  ;;  %v2145_v6 = vunpack.c.l.b16 %v1355_v55  ;;  %v2161_v27 = vunpack.c.l.b16 %v1371_v8  ;;  %5180 = vmatpush2.bf16.msra.mxu1 %v7080_v61 }
 0x13e   :  { %v1151_v62 = vadd.f32 %v1150_v38, %v1149_v41  ;;  %v2177_v20 = vunpack.c.l.b16 %v1387_v40  ;;  %v10887_v50 = vunpack.c.l.bf16 %v8912_v11  ;;  %v10888_v35 = vunpack.c.l.bf16 %v8923_v15  ;;  %5231 = vmatprep.subr.bf16.mxu1 %v7088_v19 }
 0x13f   :  { %v1263_v36 = vadd.f32 %v1262_v22, %v1261_v7  ;;  %v2193_v18 = vunpack.c.l.b16 %v1403_v21  ;;  %v2296_v52 = vsel %vm2233_vm0, %v2129_v45, %v2113_v9  ;;  %v10889_v39 = vunpack.c.l.bf16 %v8931_v42 }
 0x140   :  { %v1152_v28 = vrot.slane %v1151_v62, 1  ;;  %v489_v25 = vadd.f32 %v10888_v35, %v10887_v50  ;;  %v10890_v57 = vunpack.c.l.bf16 %v8936_v5  ;;  %v10891_v34 = vunpack.c.l.bf16 %v8951_v23 }
 0x141   :  { %v1264_v4 = vrot.slane %v1263_v36, 1  ;;  %v10892_v14 = vunpack.c.l.bf16 %v8962_v31  ;;  %v2297_v11 = vsel %vm2235_vm1, %v2145_v6, %v2296_v52  ;;  %v10893_v15 = vunpack.c.l.bf16 %v8967_v30 }
 0x142   :  { %v601_v17 = vadd.f32 %v10890_v57, %v10889_v39  ;;  %v1153_v24 = vadd.f32 %v1152_v28, %v1151_v62  ;;  %v490_v12 = vrot.slane %v489_v25, 4  ;;  %v10894_v51 = vunpack.c.l.bf16 %v8972_v3  ;;  %v10904_v39 = vld [vmem:[#allocation12_spill] sm:$0xff] }
 0x143   :  { %v713_v60 = vadd.f32 %v10892_v14, %v10891_v34  ;;  %v1265_v10 = vadd.f32 %v1264_v4, %v1263_v36  ;;  %v2298_v42 = vsel %vm2237_vm2, %v2161_v27, %v2297_v11  ;;  %v10895_v3 = vunpack.c.l.bf16 %v8980_v59  ;;  %v7091_v36 = vld [vmem:[%s10749_s1 + $0xcc4] ss:$16 sps:$4 sm:$0xff]   ;;  %v9234_v34 = vpop.f32.mrf.mxu0 }
 0x144   :  { %v825_v53 = vadd.f32 %v10894_v51, %v10893_v15  ;;  %v602_v5 = vrot.slane %v601_v17, 4  ;;  %v1419_v54 = vpack.c.bf16 %v1153_v24, %v1153_v24  ;;  %v2299_v23 = vsel %vm2239_vm3, %v2177_v20, %v2298_v42  ;;  %v10902_v4 = vld [vmem:[#allocation7_spill] sm:$0xff] }
 0x145   :  { %v714_v26 = vrot.slane %v713_v60, 4  ;;  %v491_v31 = vadd.f32 %v490_v12, %v489_v25  ;;  %v1435_v43 = vpack.c.bf16 %v1265_v10, %v1265_v10  ;;  %v2300_v61 = vsel %vm2241_vm4, %v2193_v18, %v2299_v23  ;;  %v9242_v10 = vpop.f32.mrf.mxu0 }
 0x146   :  { %v826_v44 = vrot.slane %v825_v53, 4  ;;  %v603_v49 = vadd.f32 %v602_v5, %v601_v17  ;;  %v2209_v2 = vunpack.c.l.b16 %v1419_v54  ;;  %v10896_v0 = vunpack.c.l.bf16 %v8985_v48  ;;  %v7083_v48 = vld [vmem:[%s10749_s1 + $0xce0] ss:$16 sps:$4 sm:$0xff]  }
 0x147   :  { %v715_v16 = vadd.f32 %v714_v26, %v713_v60  ;;  %v492_v30 = vrot.slane %v491_v31, 2  ;;  %v2225_v37 = vunpack.c.l.b16 %v1435_v43  ;;  %v10897_v32 = vunpack.c.l.bf16 %v8990_v1 }
 0x148   :  { %v827_v41 = vadd.f32 %v826_v44, %v825_v53  ;;  %v937_v13 = vadd.f32 %v10896_v0, %v10895_v3  ;;  %v604_v7 = vrot.slane %v603_v49, 2  ;;  %v10898_v63 = vunpack.c.l.bf16 %v9002_v56  ;;  %v7097_v53 = vld [vmem:[%s10749_s1 + $0xca4] ss:$16 sps:$4 sm:$0xff]   ;;  %v7095_v3 = vld [vmem:[%s10749_s1 + $0xca0] ss:$16 sps:$4 sm:$0xff]  }
 0x149   :  { %v716_v19 = vrot.slane %v715_v16, 2  ;;  %v2301_v58 = vsel %vm2243_vm5, %v2209_v2, %v2300_v61  ;;  %v493_v22 = vadd.f32 %v492_v30, %v491_v31  ;;  %v10900_v28 = vunpack.c.l.bf16 %v9017_v29  ;;  %v9247_v61 = vld [vmem:[%s10750_s0 + $0x30] sm:$0xff] }
 0x14a   :  { %v1049_v38 = vadd.f32 %v10898_v63, %v10897_v32  ;;  %v828_v47 = vrot.slane %v827_v41, 2  ;;  %v938_v55 = vrot.slane %v937_v13, 4  ;;  %v2302_v8 = vsel %vm2245_vm6, %v2225_v37, %v2301_v58 }
 0x14b   :  { %v605_v62 = vadd.f32 %v604_v7, %v603_v49  ;;  %v717_v59 = vadd.f32 %v716_v19, %v715_v16  ;;  %v9220_v21 = vpack.c.b16 %v2302_v8, %v2302_v8  ;;  %v494_v1 = vrot.slane %v493_v22, 1  ;;  %v4982_v49 = vpop.f32.mrf.mxu0  ;;  %v7103_v7 = vld [vmem:[%s10749_s1 + $0xc84] ss:$16 sps:$4 sm:$0xff]  }
 0x14c   :  { %v1050_v40 = vrot.slane %v1049_v38, 4  ;;  %v829_v9 = vadd.f32 %v828_v47, %v827_v41  ;;  %v939_v56 = vadd.f32 %v938_v55, %v937_v13  ;;  %v10901_v20 = vunpack.c.l.bf16 %v9022_v46  ;;  %v7089_v46 = vld [vmem:[%s10749_s1 + $0xcc0] ss:$16 sps:$4 sm:$0xff]  }
 0x14d   :  { %10899 = vst [vmem:[#allocation15_spill] sm:$0xff] %v9220_v21  ;;  %v606_v45 = vrot.slane %v605_v62, 1  ;;  %v718_v6 = vrot.slane %v717_v59, 1  ;;  %5141 = vmatmul.mubr.bf16.vlgmr.msra.gmra.mxu0 %v9220_v21  ;;  %v495_v50 = vadd.f32 %v494_v1, %v493_v22  ;;  %v10903_v52 = vunpack.c.l.bf16 %v10902_v4  ;;  %v9258_v19 = vld [vmem:[%s10750_s0 + $0x70] sm:$0xff]  ;;  %v4983_v32 = vpop.f32.mrf.mxu0 }
 0x14e   :  { %v1051_v27 = vadd.f32 %v1050_v40, %v1049_v38  ;;  %v1161_v18 = vadd.f32 %v10901_v20, %v10900_v28  ;;  %v830_v35 = vrot.slane %v829_v9, 1  ;;  %v940_v25 = vrot.slane %v939_v56, 2  ;;  %5191 = vmatpush1.bf16.msra.mxu0 %v7083_v48  ;;  %v9264_v22 = vld [vmem:[%s10750_s0 + $0xb0] sm:$0xff] }
 0x14f   :  { %v10905_v57 = vunpack.c.l.bf16 %v10904_v39  ;;  %v607_v14 = vadd.f32 %v606_v45, %v605_v62  ;;  %v719_v60 = vadd.f32 %v718_v6, %v717_v59  ;;  %v1325_v51 = vpack.c.bf16 %v495_v50, %v495_v50  ;;  %5192 = vmatprep.subr.bf16.mxu0 %v7091_v36  ;;  %v9271_v59 = vld [vmem:[%s10750_s0 + $0xf0] sm:$0xff] }
 0x150   :  { %v1052_v24 = vrot.slane %v1051_v27, 2  ;;  %v1162_v11 = vrot.slane %v1161_v18, 4  ;;  %v831_v29 = vadd.f32 %v830_v35, %v829_v9  ;;  %v941_v12 = vadd.f32 %v940_v25, %v939_v56  ;;  %v7101_v56 = vld [vmem:[%s10749_s1 + $0xc80] ss:$16 sps:$4 sm:$0xff]   ;;  %v7109_v28 = vld [vmem:[%s10749_s1 + $0xc64] ss:$16 sps:$4 sm:$0xff]  }
 0x151   :  { %v1273_v17 = vadd.f32 %v10905_v57, %v10903_v52  ;;  %v1341_v26 = vpack.c.bf16 %v607_v14, %v607_v14  ;;  %v1357_v54 = vpack.c.bf16 %v719_v60, %v719_v60  ;;  %v2115_v43 = vunpack.c.l.b16 %v1325_v51  ;;  %v9281_v36 = vld [vmem:[%s10750_s0 + $0x130] sm:$0xff] }
 0x152   :  { %v1053_v42 = vadd.f32 %v1052_v24, %v1051_v27  ;;  %v1163_v5 = vadd.f32 %v1162_v11, %v1161_v18  ;;  %v942_v23 = vrot.slane %v941_v12, 1  ;;  %v1373_v44 = vpack.c.bf16 %v831_v29, %v831_v29  ;;  %5193 = vmatpush1.bf16.msra.mxu0 %v7089_v46  ;;  %v9290_v20 = vld [vmem:[%s10750_s0 + $0x170] sm:$0xff] }
 0x153   :  { %v1274_v15 = vrot.slane %v1273_v17, 4  ;;  %v2131_v30 = vunpack.c.l.b16 %v1341_v26  ;;  %v2147_v41 = vunpack.c.l.b16 %v1357_v54  ;;  %5194 = vmatprep.subr.bf16.mxu0 %v7097_v53  ;;  %v176_v40 = vunpack.c.h.bf16 %v9247_v61  ;;  %v9297_v4 = vld [vmem:[%s10750_s0 + $0x1b0] sm:$0xff] }
 0x154   :  { %v1054_v16 = vrot.slane %v1053_v42, 1  ;;  %v1164_v2 = vrot.slane %v1163_v5, 2  ;;  %v943_v0 = vadd.f32 %v942_v23, %v941_v12  ;;  %v2163_v37 = vunpack.c.l.b16 %v1373_v44  ;;  %v9305_v14 = vld [vmem:[%s10750_s0 + $0x1f0] sm:$0xff] }
 0x155   :  { %v1275_v31 = vadd.f32 %v1274_v15, %v1273_v17  ;;  %v2310_v58 = vsel %vm2233_vm0, %v2131_v30, %v2115_v43  ;;  %v192_v18 = vunpack.c.h.bf16 %v9258_v19  ;;  %v208_v52 = vunpack.c.h.bf16 %v9264_v22  ;;  %v9310_v60 = vld [vmem:[%s10750_s0 + $0x230] sm:$0xff] }
 0x156   :  { %v1055_v63 = vadd.f32 %v1054_v16, %v1053_v42  ;;  %v1165_v38 = vadd.f32 %v1164_v2, %v1163_v5  ;;  %v1389_v8 = vpack.c.bf16 %v943_v0, %v943_v0  ;;  %v2311_v62 = vsel %vm2235_vm1, %v2147_v41, %v2310_v58  ;;  %5195 = vmatpush1.bf16.msra.mxu0 %v7095_v3  ;;  %v7107_v12 = vld [vmem:[%s10749_s1 + $0xc60] ss:$16 sps:$4 sm:$0xff]   ;;  %v7115_v5 = vld [vmem:[%s10749_s1 + $0xc44] ss:$16 sps:$4 sm:$0xff]  }
 0x157   :  { %v1276_v13 = vrot.slane %v1275_v31, 2  ;;  %v2312_v9 = vsel %vm2237_vm2, %v2163_v37, %v2311_v62  ;;  %5196 = vmatprep.subr.bf16.mxu0 %v7103_v7  ;;  %v224_v24 = vunpack.c.h.bf16 %v9271_v59  ;;  %v9321_v15 = vld [vmem:[%s10750_s0 + $0x270] sm:$0xff]  ;;  %v240_v51 = vunpack.c.h.bf16 %v9281_v36 }
 0x158   :  { %v1166_v48 = vrot.slane %v1165_v38, 1  ;;  %v1405_v1 = vpack.c.bf16 %v1055_v63, %v1055_v63  ;;  %v2179_v27 = vunpack.c.l.b16 %v1389_v8  ;;  %v9331_v26 = vld [vmem:[%s10750_s0 + $0x2b0] sm:$0xff]  ;;  %v256_v23 = vunpack.c.h.bf16 %v9290_v20 }
 0x159   :  { %v1277_v55 = vadd.f32 %v1276_v13, %v1275_v31  ;;  %v9336_v54 = vld [vmem:[%s10750_s0 + $0x2f0] sm:$0xff]  ;;  %v272_v44 = vunpack.c.h.bf16 %v9297_v4  ;;  %v288_v2 = vunpack.c.h.bf16 %v9305_v14  ;;  %v304_v13 = vunpack.c.h.bf16 %v9310_v60  ;;  %v9581_v31 = vld [vmem:[%s10750_s0 + $0x3f8] sm:$0xff] }
 0x15a   :  { %v1167_v35 = vadd.f32 %v1166_v48, %v1165_v38  ;;  %v2195_v25 = vunpack.c.l.b16 %v1405_v1  ;;  %v2313_v17 = vsel %vm2239_vm3, %v2179_v27, %v2312_v9  ;;  %5197 = vmatpush1.bf16.msra.mxu0 %v7101_v56  ;;  %v9344_v49 = vld [vmem:[%s10750_s0 + $0x330] sm:$0xff]  ;;  %v320_v7 = vunpack.c.h.bf16 %v9321_v15 }
 0x15b   :  { %v1278_v6 = vrot.slane %v1277_v55, 1  ;;  %5198 = vmatprep.subr.bf16.mxu0 %v7109_v28  ;;  %v9352_v3 = vld [vmem:[%s10750_s0 + $0x370] sm:$0xff]  ;;  %v352_v9 = vunpack.c.h.bf16 %v9336_v54  ;;  %v418_v47 = vunpack.c.h.bf16 %v9581_v31 }
 0x15c   :  { %v1421_v46 = vpack.c.bf16 %v1167_v35, %v1167_v35  ;;  %v2314_v29 = vsel %vm2241_vm4, %v2195_v25, %v2313_v17  ;;  %v9357_v0 = vld [vmem:[%s10750_s0 + $0x3b0] sm:$0xff]  ;;  %v384_v25 = vunpack.c.h.bf16 %v9352_v3 }
 0x15d   :  { %v1279_v57 = vadd.f32 %v1278_v6, %v1277_v55  ;;  %v7113_v63 = vld [vmem:[%s10749_s1 + $0xc40] ss:$16 sps:$4 sm:$0xff]   ;;  %v336_v55 = vunpack.c.h.bf16 %v9331_v26  ;;  %v7121_v1 = vld [vmem:[%s10749_s1 + $0xc24] ss:$16 sps:$4 sm:$0xff]   ;;  %v368_v6 = vunpack.c.h.bf16 %v9344_v49 }
 0x15e   :  { %v2211_v43 = vunpack.c.l.b16 %v1421_v46  ;;  %5199 = vmatpush1.bf16.msra.mxu0 %v7107_v12  ;;  %v9369_v38 = vld [vmem:[%s10750_s0 + $0x3f0] sm:$0xff]  ;;  %v622_v12 = vadd.f32 %v224_v24, %v208_v52 }
 0x15f   :  { %v1437_v42 = vpack.c.bf16 %v1279_v57, %v1279_v57  ;;  %v7086_v48 = vld [vmem:[%s10749_s1 + $0xee0] ss:$16 sps:$4 sm:$0xff]   ;;  %5200 = vmatprep.subr.bf16.mxu0 %v7115_v5  ;;  %v7094_v28 = vld [vmem:[%s10749_s1 + $0xec4] ss:$16 sps:$4 sm:$0xff]   ;;  %v400_v57 = vunpack.c.h.bf16 %v9357_v0  ;;  %v416_v46 = vunpack.c.h.bf16 %v9369_v38  ;;  %v1182_v17 = vadd.f32 %v384_v25, %v368_v6 }
 0x160   :  { %v2315_v32 = vsel %vm2243_vm5, %v2211_v43, %v2314_v29  ;;  %v510_v29 = vadd.f32 %v192_v18, %v176_v40  ;;  %v734_v43 = vadd.f32 %v256_v23, %v240_v51  ;;  %v7092_v40 = vld [vmem:[%s10749_s1 + $0xec0] ss:$16 sps:$4 sm:$0xff]   ;;  %v7127_v18 = vld [vmem:[%s10749_s1 + $0xc04] ss:$16 sps:$4 sm:$0xff]   ;;  %v623_v24 = vrot.slane %v622_v12, 4 }
 0x161   :  { %v2227_v41 = vunpack.c.l.b16 %v1437_v42  ;;  %v7119_v42 = vld [vmem:[%s10749_s1 + $0xc20] ss:$16 sps:$4 sm:$0xff]   ;;  %v7100_v51 = vld [vmem:[%s10749_s1 + $0xea4] ss:$16 sps:$4 sm:$0xff]   ;;  %v1183_v35 = vrot.slane %v1182_v17, 4 }
 0x162   :  { %5201 = vmatpush1.bf16.msra.mxu0 %v7113_v63  ;;  %v511_v52 = vrot.slane %v510_v29, 4  ;;  %v1070_v63 = vadd.f32 %v352_v9, %v336_v55  ;;  %v735_v23 = vrot.slane %v734_v43, 4  ;;  %v7125_v55 = vld [vmem:[%s10749_s1 + $0xc00] ss:$16 sps:$4 sm:$0xff]  }
 0x163   :  { %v2316_v62 = vsel %vm2245_vm6, %v2227_v41, %v2315_v32  ;;  %v846_v41 = vadd.f32 %v288_v2, %v272_v44  ;;  %v958_v32 = vadd.f32 %v320_v7, %v304_v13  ;;  %5202 = vmatprep.subr.bf16.mxu0 %v7121_v1  ;;  %v1294_v13 = vadd.f32 %v416_v46, %v400_v57  ;;  %v7098_v57 = vld [vmem:[%s10749_s1 + $0xea0] ss:$16 sps:$4 sm:$0xff]   ;;  %v7133_v46 = vld [vmem:[%s10749_s1 + $0xde4] ss:$16 sps:$4 sm:$0xff]  }
 0x164   :  { %v9384_v27 = vpack.c.b16 %v2316_v62, %v2316_v62  ;;  %v9401_v62 = vpop.f32.mrf.mxu1  ;;  %v624_v1 = vadd.f32 %v623_v24, %v622_v12  ;;  %v1071_v5 = vrot.slane %v1070_v63, 4  ;;  %v736_v9 = vadd.f32 %v735_v23, %v734_v43  ;;  %v7106_v43 = vld [vmem:[%s10749_s1 + $0xe84] ss:$16 sps:$4 sm:$0xff]   ;;  %v7104_v8 = vld [vmem:[%s10749_s1 + $0xe80] ss:$16 sps:$4 sm:$0xff]  }
 0x165   :  { %v847_v44 = vrot.slane %v846_v41, 4  ;;  %v959_v2 = vrot.slane %v958_v32, 4  ;;  %v1295_v25 = vrot.slane %v1294_v13, 4  ;;  %v7161_v50 = vld [vmem:[%s10749_s1 + $0xd40] ss:$16 sps:$4 sm:$0xff]  }
 0x166   :  { %10906 = vst [vmem:[#allocation7_spill] sm:$0xff] %v9384_v27  ;;  %5182 = vmatmul.mubr.bf16.vlgmr.msra.gmra.mxu1 %v9384_v27  ;;  %v9412_v7 = vpop.f32.mrf.mxu1  ;;  %5203 = vmatpush1.bf16.msra.mxu0 %v7119_v42  ;;  %v625_v12 = vrot.slane %v624_v1, 2  ;;  %v1072_v42 = vadd.f32 %v1071_v5, %v1070_v63  ;;  %v7131_v5 = vld [vmem:[%s10749_s1 + $0xde0] ss:$16 sps:$4 sm:$0xff]  }
 0x167   :  { %5232 = vmatpush1.bf16.msra.mxu1 %v7086_v48  ;;  %10907 = vst [vmem:[#allocation12_spill] sm:$0xff] %v9412_v7  ;;  %v512_v48 = vadd.f32 %v511_v52, %v510_v29  ;;  %v848_v6 = vadd.f32 %v847_v44, %v846_v41  ;;  %5204 = vmatprep.subr.bf16.mxu0 %v7127_v18 }
 0x168   :  { %5233 = vmatprep.subr.bf16.mxu1 %v7094_v28  ;;  %v960_v28 = vadd.f32 %v959_v2, %v958_v32  ;;  %v5023_v56 = vpop.f32.mrf.mxu1  ;;  %v1184_v52 = vadd.f32 %v1183_v35, %v1182_v17  ;;  %v626_v18 = vadd.f32 %v625_v12, %v624_v1  ;;  %v1073_v44 = vrot.slane %v1072_v42, 2 }
 0x169   :  { %v513_v29 = vrot.slane %v512_v48, 2  ;;  %v737_v56 = vrot.slane %v736_v9, 2  ;;  %v849_v41 = vrot.slane %v848_v6, 2 }
 0x16a   :  { %v961_v32 = vrot.slane %v960_v28, 2  ;;  %v5024_v24 = vpop.f32.mrf.mxu1  ;;  %v1185_v2 = vrot.slane %v1184_v52, 2  ;;  %5205 = vmatpush1.bf16.msra.mxu0 %v7125_v55  ;;  %v627_v1 = vrot.slane %v626_v18, 1  ;;  %v1074_v55 = vadd.f32 %v1073_v44, %v1072_v42  ;;  %v7137_v42 = vld [vmem:[%s10749_s1 + $0xdc0] ss:$16 sps:$4 sm:$0xff]  }
 0x16b   :  { %5234 = vmatpush1.bf16.msra.mxu1 %v7092_v40  ;;  %v1296_v40 = vadd.f32 %v1295_v25, %v1294_v13  ;;  %v514_v23 = vadd.f32 %v513_v29, %v512_v48  ;;  %v738_v35 = vadd.f32 %v737_v56, %v736_v9  ;;  %v850_v17 = vadd.f32 %v849_v41, %v848_v6  ;;  %v7139_v13 = vld [vmem:[%s10749_s1 + $0xdc4] ss:$16 sps:$4 sm:$0xff]  }
 0x16c   :  { %5235 = vmatprep.subr.bf16.mxu1 %v7100_v51  ;;  %v962_v63 = vadd.f32 %v961_v32, %v960_v28  ;;  %5206 = vmatprep.subr.bf16.mxu0 %v7133_v46  ;;  %v1186_v25 = vadd.f32 %v1185_v2, %v1184_v52  ;;  %v7112_v9 = vld [vmem:[%s10749_s1 + $0xe64] ss:$16 sps:$4 sm:$0xff]   ;;  %v9441_v46 = vld [vmem:[%s10750_s0 + $0x38] sm:$0xff]  ;;  %v628_v56 = vadd.f32 %v627_v1, %v626_v18  ;;  %v1075_v41 = vrot.slane %v1074_v55, 1 }
 0x16d   :  { %v1297_v51 = vrot.slane %v1296_v40, 2  ;;  %v515_v48 = vrot.slane %v514_v23, 1  ;;  %v739_v6 = vrot.slane %v738_v35, 1  ;;  %v851_v28 = vrot.slane %v850_v17, 1 }
 0x16e   :  { %v1187_v32 = vrot.slane %v1186_v25, 1  ;;  %5207 = vmatpush2.bf16.msra.mxu0 %v7131_v5  ;;  %v1076_v18 = vadd.f32 %v1075_v41, %v1074_v55  ;;  %v9459_v55 = vld [vmem:[%s10750_s0 + $0x78] sm:$0xff] }
 0x16f   :  { %5236 = vmatpush1.bf16.msra.mxu1 %v7098_v57  ;;  %v963_v57 = vrot.slane %v962_v63, 1  ;;  %v1298_v29 = vadd.f32 %v1297_v51, %v1296_v40  ;;  %v516_v12 = vadd.f32 %v515_v48, %v514_v23  ;;  %v740_v52 = vadd.f32 %v739_v6, %v738_v35  ;;  %v7110_v40 = vld [vmem:[%s10749_s1 + $0xe60] ss:$16 sps:$4 sm:$0xff]   ;;  %5208 = vmatprep.subr.bf16.mxu0 %v7139_v13  ;;  %v7145_v23 = vld [vmem:[%s10749_s1 + $0xda4] ss:$16 sps:$4 sm:$0xff]   ;;  %v9472_v41 = vld [vmem:[%s10750_s0 + $0xf8] sm:$0xff] }
 0x170   :  { %5237 = vmatprep.subr.bf16.mxu1 %v7106_v43  ;;  %v852_v43 = vadd.f32 %v851_v28, %v850_v17  ;;  %v1188_v2 = vadd.f32 %v1187_v32, %v1186_v25  ;;  %v7118_v35 = vld [vmem:[%s10749_s1 + $0xe44] ss:$16 sps:$4 sm:$0xff]   ;;  %v1344_v17 = vpack.c.bf16 %v628_v56, %v628_v56  ;;  %v1408_v13 = vpack.c.bf16 %v1076_v18, %v1076_v18  ;;  %v7143_v25 = vld [vmem:[%s10749_s1 + $0xda0] ss:$16 sps:$4 sm:$0xff]   ;;  %v9467_v56 = vld [vmem:[%s10750_s0 + $0xb8] sm:$0xff] }
 0x171   :  { %v964_v24 = vadd.f32 %v963_v57, %v962_v63  ;;  %v1299_v44 = vrot.slane %v1298_v29, 1  ;;  %v1328_v5 = vpack.c.bf16 %v516_v12, %v516_v12  ;;  %v1360_v63 = vpack.c.bf16 %v740_v52, %v740_v52  ;;  %v7116_v32 = vld [vmem:[%s10749_s1 + $0xe40] ss:$16 sps:$4 sm:$0xff]  }
 0x172   :  { %v1376_v48 = vpack.c.bf16 %v852_v43, %v852_v43  ;;  %v1424_v6 = vpack.c.bf16 %v1188_v2, %v1188_v2  ;;  %5209 = vmatpush2.bf16.msra.mxu0 %v7137_v42  ;;  %v2134_v57 = vunpack.c.l.b16 %v1344_v17  ;;  %v7151_v42 = vld [vmem:[%s10749_s1 + $0xd84] ss:$16 sps:$4 sm:$0xff]   ;;  %v2198_v43 = vunpack.c.l.b16 %v1408_v13  ;;  %v9538_v17 = vld [vmem:[%s10750_s0 + $0x2b8] sm:$0xff] }
 0x173   :  { %5238 = vmatpush1.bf16.msra.mxu1 %v7104_v8  ;;  %v1300_v8 = vadd.f32 %v1299_v44, %v1298_v29  ;;  %v1392_v1 = vpack.c.bf16 %v964_v24, %v964_v24  ;;  %v2118_v28 = vunpack.c.l.b16 %v1328_v5  ;;  %v2150_v29 = vunpack.c.l.b16 %v1360_v63  ;;  %5210 = vmatprep.subr.bf16.mxu0 %v7145_v23  ;;  %v9483_v44 = vld [vmem:[%s10750_s0 + $0x138] sm:$0xff] }
 0x174   :  { %5239 = vmatprep.subr.bf16.mxu1 %v7112_v9  ;;  %v2166_v12 = vunpack.c.l.b16 %v1376_v48  ;;  %v2214_v24 = vunpack.c.l.b16 %v1424_v6  ;;  %v178_v18 = vunpack.c.h.bf16 %v9441_v46  ;;  %v9493_v5 = vld [vmem:[%s10750_s0 + $0x178] sm:$0xff]  ;;  %v210_v13 = vunpack.c.h.bf16 %v9467_v56 }
 0x175   :  { %v1440_v9 = vpack.c.bf16 %v1300_v8, %v1300_v8  ;;  %v2182_v52 = vunpack.c.l.b16 %v1392_v1  ;;  %v2331_v2 = vsel %vm2233_vm0, %v2134_v57, %v2118_v28  ;;  %v9498_v8 = vld [vmem:[%s10750_s0 + $0x1b8] sm:$0xff]  ;;  %v7149_v28 = vld [vmem:[%s10749_s1 + $0xd80] ss:$16 sps:$4 sm:$0xff]   ;;  %v242_v6 = vunpack.c.h.bf16 %v9483_v44 }
 0x176   :  { %v2332_v63 = vsel %vm2235_vm1, %v2150_v29, %v2331_v2  ;;  %v9506_v48 = vld [vmem:[%s10750_s0 + $0x1f8] sm:$0xff]  ;;  %5211 = vmatpush2.bf16.msra.mxu0 %v7143_v25  ;;  %v226_v2 = vunpack.c.h.bf16 %v9472_v41  ;;  %v274_v25 = vunpack.c.h.bf16 %v9498_v8  ;;  %v338_v11 = vunpack.c.h.bf16 %v9538_v17 }
 0x177   :  { %5240 = vmatpush1.bf16.msra.mxu1 %v7110_v40  ;;  %v7124_v40 = vld [vmem:[%s10749_s1 + $0xe24] ss:$16 sps:$4 sm:$0xff]   ;;  %v2230_v23 = vunpack.c.l.b16 %v1440_v9  ;;  %v2333_v9 = vsel %vm2237_vm2, %v2166_v12, %v2332_v63  ;;  %v9518_v57 = vld [vmem:[%s10750_s0 + $0x238] sm:$0xff]  ;;  %v7122_v12 = vld [vmem:[%s10749_s1 + $0xe20] ss:$16 sps:$4 sm:$0xff]   ;;  %5212 = vmatprep.subr.bf16.mxu0 %v7151_v42  ;;  %v290_v51 = vunpack.c.h.bf16 %v9506_v48 }
 0x178   :  { %5241 = vmatprep.subr.bf16.mxu1 %v7118_v35  ;;  %v194_v35 = vunpack.c.h.bf16 %v9459_v55  ;;  %v9523_v29 = vld [vmem:[%s10750_s0 + $0x278] sm:$0xff]  ;;  %v7157_v63 = vld [vmem:[%s10749_s1 + $0xd64] ss:$16 sps:$4 sm:$0xff]   ;;  %v2334_v1 = vsel %vm2239_vm3, %v2182_v52, %v2333_v9  ;;  %v306_v16 = vunpack.c.h.bf16 %v9518_v57  ;;  %v636_v27 = vadd.f32 %v226_v2, %v210_v13 }
 0x179   :  { %v7130_v42 = vld [vmem:[%s10749_s1 + $0xe04] ss:$16 sps:$4 sm:$0xff]   ;;  %v2335_v58 = vsel %vm2241_vm4, %v2198_v43, %v2334_v1  ;;  %v9550_v52 = vld [vmem:[%s10750_s0 + $0x2f8] sm:$0xff]  ;;  %v322_v53 = vunpack.c.h.bf16 %v9523_v29  ;;  %v860_v21 = vadd.f32 %v290_v51, %v274_v25 }
 0x17a   :  { %v9555_v9 = vld [vmem:[%s10750_s0 + $0x338] sm:$0xff]  ;;  %v2336_v37 = vsel %vm2243_vm5, %v2214_v24, %v2335_v58  ;;  %5213 = vmatpush2.bf16.msra.mxu0 %v7149_v28  ;;  %v7155_v58 = vld [vmem:[%s10749_s1 + $0xd60] ss:$16 sps:$4 sm:$0xff]   ;;  %v354_v39 = vunpack.c.h.bf16 %v9550_v52  ;;  %v637_v13 = vrot.slane %v636_v27, 4 }
 0x17b   :  { %5242 = vmatpush1.bf16.msra.mxu1 %v7116_v32  ;;  %v258_v32 = vunpack.c.h.bf16 %v9493_v5  ;;  %v9564_v43 = vld [vmem:[%s10750_s0 + $0x378] sm:$0xff]  ;;  %v2337_v24 = vsel %vm2245_vm6, %v2230_v23, %v2336_v37  ;;  %v7128_v28 = vld [vmem:[%s10749_s1 + $0xe00] ss:$16 sps:$4 sm:$0xff]   ;;  %5214 = vmatprep.subr.bf16.mxu0 %v7157_v63  ;;  %v7163_v37 = vld [vmem:[%s10749_s1 + $0xd44] ss:$16 sps:$4 sm:$0xff]   ;;  %v370_v30 = vunpack.c.h.bf16 %v9555_v9  ;;  %v972_v33 = vadd.f32 %v322_v53, %v306_v16 }
 0x17c   :  { %5243 = vmatprep.subr.bf16.mxu1 %v7124_v40  ;;  %v9569_v1 = vld [vmem:[%s10750_s0 + $0x3b8] sm:$0xff]  ;;  %v9592_v23 = vpack.c.b16 %v2337_v24, %v2337_v24  ;;  %v386_v45 = vunpack.c.h.bf16 %v9564_v43  ;;  %v1084_v7 = vadd.f32 %v354_v39, %v338_v11  ;;  %v7134_v40 = vld [vmem:[%s10749_s1 + $0xfe0] ss:$16 sps:$4 sm:$0xff]   ;;  %v7142_v53 = vld [vmem:[%s10749_s1 + $0xfc4] ss:$16 sps:$4 sm:$0xff]   ;;  %v861_v11 = vrot.slane %v860_v21, 4 }
 0x17d   :  { %v402_v24 = vunpack.c.h.bf16 %v9569_v1  ;;  %v748_v63 = vadd.f32 %v258_v32, %v242_v6  ;;  %v973_v16 = vrot.slane %v972_v33, 4  ;;  %v638_v25 = vadd.f32 %v637_v13, %v636_v27  ;;  %v7175_v27 = vld [vmem:[%s10749_s1 + $0xd04] ss:$16 sps:$4 sm:$0xff]  }
 0x17e   :  { %10908 = vst [vmem:[#allocation16_spill] sm:$0xff] %v9592_v23  ;;  %5222 = vmatprep.mubr.bf16.mxu0 %v9592_v23  ;;  %5215 = vmatpush2.bf16.msra.mxu0 %v7155_v58  ;;  %v1196_v2 = vadd.f32 %v386_v45, %v370_v30  ;;  %v1085_v51 = vrot.slane %v1084_v7, 4 }
 0x17f   :  { %5244 = vmatpush1.bf16.msra.mxu1 %v7122_v12  ;;  %v7136_v12 = vld [vmem:[%s10749_s1 + $0xfe4] ss:$16 sps:$4 sm:$0xff]   ;;  %5216 = vmatprep.subr.bf16.mxu0 %v7163_v37  ;;  %v1308_v58 = vadd.f32 %v418_v47, %v402_v24  ;;  %v749_v39 = vrot.slane %v748_v63, 4  ;;  %v7167_v37 = vld [vmem:[%s10749_s1 + $0xd20] ss:$16 sps:$4 sm:$0xff]   ;;  %v862_v47 = vadd.f32 %v861_v11, %v860_v21  ;;  %v974_v30 = vadd.f32 %v973_v16, %v972_v33 }
 0x180   :  { %5245 = vmatprep.subr.bf16.mxu1 %v7130_v42  ;;  %v524_v42 = vadd.f32 %v194_v35, %v178_v18  ;;  %v7169_v18 = vld [vmem:[%s10749_s1 + $0xd24] ss:$16 sps:$4 sm:$0xff]   ;;  %v1197_v32 = vrot.slane %v1196_v2, 4  ;;  %v7140_v24 = vld [vmem:[%s10749_s1 + $0xfc0] ss:$16 sps:$4 sm:$0xff]  }
 0x181   :  { %v750_v45 = vadd.f32 %v749_v39, %v748_v63  ;;  %v7148_v33 = vld [vmem:[%s10749_s1 + $0xfa4] ss:$16 sps:$4 sm:$0xff]  }
 0x182   :  { %v525_v35 = vrot.slane %v524_v42, 4  ;;  %5217 = vmatpush2.bf16.msra.mxu0 %v7161_v50  ;;  %v639_v50 = vrot.slane %v638_v25, 2 }
 0x183   :  { %5246 = vmatpush1.bf16.msra.mxu1 %v7128_v28  ;;  %v1309_v28 = vrot.slane %v1308_v58, 4  ;;  %5218 = vmatprep.subr.bf16.mxu0 %v7169_v18  ;;  %v751_v21 = vrot.slane %v750_v45, 2 }
 0x184   :  { %5247 = vmatprep.subr.bf16.mxu1 %v7136_v12  ;;  %v526_v6 = vadd.f32 %v525_v35, %v524_v42  ;;  %v1086_v12 = vadd.f32 %v1085_v51, %v1084_v7  ;;  %v1198_v35 = vadd.f32 %v1197_v32, %v1196_v2  ;;  %v863_v7 = vrot.slane %v862_v47, 2  ;;  %v7173_v51 = vld [vmem:[%s10749_s1 + $0xd00] ss:$16 sps:$4 sm:$0xff]  }
 0x185   :  { %v1310_v13 = vadd.f32 %v1309_v28, %v1308_v58  ;;  %v640_v11 = vadd.f32 %v639_v50, %v638_v25  ;;  %v752_v2 = vadd.f32 %v751_v21, %v750_v45  ;;  %v7146_v28 = vld [vmem:[%s10749_s1 + $0xfa0] ss:$16 sps:$4 sm:$0xff]  }
 0x186   :  { %v527_v42 = vrot.slane %v526_v6, 2  ;;  %v1087_v63 = vrot.slane %v1086_v12, 2  ;;  %v1199_v18 = vrot.slane %v1198_v35, 2  ;;  %5219 = vmatpush2.bf16.msra.mxu0 %v7167_v37  ;;  %v864_v58 = vadd.f32 %v863_v7, %v862_v47  ;;  %v7154_v37 = vld [vmem:[%s10749_s1 + $0xf84] ss:$16 sps:$4 sm:$0xff]  }
 0x187   :  { %5248 = vmatpush2.bf16.msra.mxu1 %v7134_v40  ;;  %v975_v40 = vrot.slane %v974_v30, 2  ;;  %v1311_v16 = vrot.slane %v1310_v13, 2  ;;  %5220 = vmatprep.subr.bf16.mxu0 %v7175_v27  ;;  %v753_v50 = vrot.slane %v752_v2, 1  ;;  %v7181_v27 = vld [vmem:[%s10749_s1 + $0xec] ss:$16 sps:$4 sm:$0xff]  }
 0x188   :  { %5249 = vmatprep.subr.bf16.mxu1 %v7142_v53  ;;  %v528_v39 = vadd.f32 %v527_v42, %v526_v6  ;;  %v1088_v32 = vadd.f32 %v1087_v63, %v1086_v12  ;;  %v641_v6 = vrot.slane %v640_v11, 1  ;;  %v1200_v25 = vadd.f32 %v1199_v18, %v1198_v35  ;;  %v7152_v63 = vld [vmem:[%s10749_s1 + $0xf80] ss:$16 sps:$4 sm:$0xff]  }
 0x189   :  { %v976_v53 = vadd.f32 %v975_v40, %v974_v30  ;;  %v1312_v42 = vadd.f32 %v1311_v16, %v1310_v13  ;;  %v865_v45 = vrot.slane %v864_v58, 1  ;;  %v754_v35 = vadd.f32 %v753_v50, %v752_v2 }
 0x18a   :  { %v529_v23 = vrot.slane %v528_v39, 1  ;;  %v1089_v30 = vrot.slane %v1088_v32, 1  ;;  %v1201_v21 = vrot.slane %v1200_v25, 1  ;;  %5221 = vmatpush2.bf16.msra.mxu0 %v7173_v51 }
 0x18b   :  { %5250 = vmatpush2.bf16.msra.mxu1 %v7140_v24  ;;  %v977_v47 = vrot.slane %v976_v53, 1  ;;  %v642_v24 = vadd.f32 %v641_v6, %v640_v11  ;;  %v1313_v7 = vrot.slane %v1312_v42, 1  ;;  %v866_v13 = vadd.f32 %v865_v45, %v864_v58  ;;  %v7160_v11 = vld [vmem:[%s10749_s1 + $0xf64] ss:$16 sps:$4 sm:$0xff]   ;;  %5272 = vmatprep.subr.bf16.mxu0 %v7181_v27 }
 0x18c   :  { %5251 = vmatprep.subr.bf16.mxu1 %v7148_v33  ;;  %v530_v12 = vadd.f32 %v529_v23, %v528_v39  ;;  %v1090_v40 = vadd.f32 %v1089_v30, %v1088_v32  ;;  %v1202_v18 = vadd.f32 %v1201_v21, %v1200_v25  ;;  %v1362_v6 = vpack.c.bf16 %v754_v35, %v754_v35 }
 0x18d   :  { %v978_v33 = vadd.f32 %v977_v47, %v976_v53  ;;  %v1314_v16 = vadd.f32 %v1313_v7, %v1312_v42  ;;  %v1346_v39 = vpack.c.bf16 %v642_v24, %v642_v24  ;;  %v1378_v51 = vpack.c.bf16 %v866_v13, %v866_v13  ;;  %v7166_v7 = vld [vmem:[%s10749_s1 + $0xf44] ss:$16 sps:$4 sm:$0xff]  }
 0x18e   :  { %v1330_v23 = vpack.c.bf16 %v530_v12, %v530_v12  ;;  %v1410_v58 = vpack.c.bf16 %v1090_v40, %v1090_v40  ;;  %v1426_v53 = vpack.c.bf16 %v1202_v18, %v1202_v18  ;;  %v2152_v45 = vunpack.c.l.b16 %v1362_v6 }
 0x18f   :  { %5252 = vmatpush2.bf16.msra.mxu1 %v7146_v28  ;;  %v1394_v2 = vpack.c.bf16 %v978_v33, %v978_v33  ;;  %v1442_v32 = vpack.c.bf16 %v1314_v16, %v1314_v16  ;;  %v2136_v50 = vunpack.c.l.b16 %v1346_v39  ;;  %v2168_v47 = vunpack.c.l.b16 %v1378_v51 }
 0x190   :  { %5253 = vmatprep.subr.bf16.mxu1 %v7154_v37  ;;  %v2120_v28 = vunpack.c.l.b16 %v1330_v23  ;;  %v2200_v42 = vunpack.c.l.b16 %v1410_v58  ;;  %v7158_v37 = vld [vmem:[%s10749_s1 + $0xf60] ss:$16 sps:$4 sm:$0xff]   ;;  %v2216_v30 = vunpack.c.l.b16 %v1426_v53  ;;  %v1957_v21 = vlaneseq }
 0x191   :  { %v2184_v25 = vunpack.c.l.b16 %v1394_v2  ;;  %v2232_v12 = vunpack.c.l.b16 %v1442_v32  ;;  %v10909_v35 = vunpack.c.l.bf16 %v9247_v61  ;;  %v10910_v13 = vunpack.c.l.bf16 %v9258_v19 }
 0x192   :  { %v2345_v24 = vsel %vm2233_vm0, %v2136_v50, %v2120_v28  ;;  %v10911_v40 = vunpack.c.l.bf16 %v9264_v22  ;;  %v10913_v16 = vunpack.c.l.bf16 %v9281_v36  ;;  %v10914_v23 = vunpack.c.l.bf16 %v9290_v20  ;;  %v9686_v36 = vld [vmem:[%s10751_s2] sm:$0xf]  ;;  %v7172_v50 = vld [vmem:[%s10749_s1 + $0xf24] ss:$16 sps:$4 sm:$0xff]  }
 0x193   :  { %5254 = vmatpush2.bf16.msra.mxu1 %v7152_v63  ;;  %v2346_v27 = vsel %vm2235_vm1, %v2152_v45, %v2345_v24  ;;  %v503_v33 = vadd.f32 %v10910_v13, %v10909_v35  ;;  %v10912_v63 = vunpack.c.l.bf16 %v9271_v59  ;;  %v9672_v6 = vshrl.u32 %v1957_v21, 7 }
 0x194   :  { %5255 = vmatprep.subr.bf16.mxu1 %v7160_v11  ;;  %v727_v39 = vadd.f32 %v10914_v23, %v10913_v16  ;;  %v2347_v11 = vsel %vm2237_vm2, %v2168_v47, %v2346_v27  ;;  %v10915_v51 = vunpack.c.l.bf16 %v9297_v4  ;;  %v10916_v61 = vunpack.c.l.bf16 %v9305_v14  ;;  %v7164_v4 = vld [vmem:[%s10749_s1 + $0xf40] ss:$16 sps:$4 sm:$0xff]  }
 0x195   :  { %v615_v18 = vadd.f32 %v10912_v63, %v10911_v40  ;;  %v10917_v2 = vunpack.c.l.bf16 %v9310_v60  ;;  %v10918_v22 = vunpack.c.l.bf16 %v9321_v15  ;;  %v2348_v58 = vsel %vm2239_vm3, %v2184_v25, %v2347_v11  ;;  %v7170_v63 = vld [vmem:[%s10749_s1 + $0xf20] ss:$16 sps:$4 sm:$0xff]  }
 0x196   :  { %v839_v19 = vadd.f32 %v10916_v61, %v10915_v51  ;;  %v504_v20 = vrot.slane %v503_v33, 4  ;;  %v728_v32 = vrot.slane %v727_v39, 4  ;;  %v2349_v14 = vsel %vm2241_vm4, %v2200_v42, %v2348_v58 }
 0x197   :  { %v951_v59 = vadd.f32 %v10918_v22, %v10917_v2  ;;  %v616_v53 = vrot.slane %v615_v18, 4  ;;  %5256 = vmatpush2.bf16.msra.mxu1 %v7158_v37  ;;  %v1959_v60 = vsub.s32 0, %v9672_v6  ;;  %v2350_v45 = vsel %vm2243_vm5, %v2216_v30, %v2349_v14 }
 0x198   :  { %v840_v15 = vrot.slane %v839_v19, 4  ;;  %5257 = vmatprep.subr.bf16.mxu1 %v7166_v7  ;;  %v505_v47 = vadd.f32 %v504_v20, %v503_v33  ;;  %v729_v37 = vadd.f32 %v728_v32, %v727_v39  ;;  %v2351_v24 = vsel %vm2245_vm6, %v2232_v12, %v2350_v45  ;;  %v7178_v39 = vld [vmem:[%s10749_s1 + $0xf04] ss:$16 sps:$4 sm:$0xff]  }
 0x199   :  { %v952_v28 = vrot.slane %v951_v59, 4  ;;  %v617_v25 = vadd.f32 %v616_v53, %v615_v18  ;;  %v1960_v21 = vrot.slane %v9686_v36, %v1959_v60  ;;  %v9699_v35 = vpack.c.b16 %v2351_v24, %v2351_v24 }
 0x19a   :  { %v841_v27 = vadd.f32 %v840_v15, %v839_v19  ;;  %v506_v13 = vrot.slane %v505_v47, 2  ;;  %v730_v7 = vrot.slane %v729_v37, 2  ;;  %v10919_v12 = vunpack.c.l.bf16 %v9331_v26 }
 0x19b   :  { %v953_v42 = vadd.f32 %v952_v28, %v951_v59  ;;  %v618_v40 = vrot.slane %v617_v25, 2  ;;  %5258 = vmatpush2.bf16.msra.mxu1 %v7164_v4  ;;  %v9705_v30 = vadd.f32 %v9234_v34, %v1960_v21  ;;  %v10920_v16 = vunpack.c.l.bf16 %v9336_v54  ;;  %5263 = vmatprep.mubr.bf16.mxu1 %v9699_v35  ;;  %v7176_v4 = vld [vmem:[%s10749_s1 + $0xf00] ss:$16 sps:$4 sm:$0xff]  }
 0x19c   :  { %v842_v33 = vrot.slane %v841_v27, 2  ;;  %5259 = vmatprep.subr.bf16.mxu1 %v7172_v50  ;;  %v417_v11 = vunpack.c.l.bf16 %v9581_v31  ;;  %v507_v51 = vadd.f32 %v506_v13, %v505_v47  ;;  %v731_v34 = vadd.f32 %v730_v7, %v729_v37 }
 0x19d   :  { %v954_v18 = vrot.slane %v953_v42, 2  ;;  %v1063_v23 = vadd.f32 %v10920_v16, %v10919_v12  ;;  %v619_v61 = vadd.f32 %v618_v40, %v617_v25  ;;  %v1963_v26 = vsub.s32 1, %v9672_v6 }
 0x19e   :  { %v843_v19 = vadd.f32 %v842_v33, %v841_v27  ;;  %v508_v59 = vrot.slane %v507_v51, 1  ;;  %v732_v58 = vrot.slane %v731_v34, 1  ;;  %v10921_v20 = vunpack.c.l.bf16 %v9344_v49 }
 0x19f   :  { %v955_v2 = vadd.f32 %v954_v18, %v953_v42  ;;  %v1064_v22 = vrot.slane %v1063_v23, 4  ;;  %v620_v54 = vrot.slane %v619_v61, 1  ;;  %v10922_v53 = vunpack.c.l.bf16 %v9352_v3  ;;  %5260 = vmatpush2.bf16.msra.mxu1 %v7170_v63  ;;  %v7184_v3 = vld [vmem:[%s10749_s1 + $0x2ec] ss:$16 sps:$4 sm:$0xff]  }
 0x1a0   :  { %v844_v14 = vrot.slane %v843_v19, 1  ;;  %v10923_v28 = vunpack.c.l.bf16 %v9357_v0  ;;  %v10924_v50 = vunpack.c.l.bf16 %v9369_v38  ;;  %5261 = vmatprep.subr.bf16.mxu1 %v7178_v39  ;;  %v509_v47 = vadd.f32 %v508_v59, %v507_v51 }
 0x1a1   :  { %v1175_v32 = vadd.f32 %v10922_v53, %v10921_v20  ;;  %v956_v60 = vrot.slane %v955_v2, 1  ;;  %v1065_v15 = vadd.f32 %v1064_v22, %v1063_v23  ;;  %v621_v25 = vadd.f32 %v620_v54, %v619_v61 }
 0x1a2   :  { %v1287_v45 = vadd.f32 %v10924_v50, %v10923_v28  ;;  %v733_v49 = vadd.f32 %v732_v58, %v731_v34  ;;  %v845_v24 = vadd.f32 %v844_v14, %v843_v19  ;;  %v1327_v40 = vpack.c.bf16 %v509_v47, %v509_v47 }
 0x1a3   :  { %v1176_v37 = vrot.slane %v1175_v32, 4  ;;  %v957_v21 = vadd.f32 %v956_v60, %v955_v2  ;;  %v1066_v27 = vrot.slane %v1065_v15, 2  ;;  %v1343_v7 = vpack.c.bf16 %v621_v25, %v621_v25  ;;  %5262 = vmatpush2.bf16.msra.mxu1 %v7176_v4 }
 0x1a4   :  { %v1288_v42 = vrot.slane %v1287_v45, 4  ;;  %v1359_v0 = vpack.c.bf16 %v733_v49, %v733_v49  ;;  %v1375_v33 = vpack.c.bf16 %v845_v24, %v845_v24  ;;  %v2117_v16 = vunpack.c.l.b16 %v1327_v40  ;;  %5313 = vmatprep.subr.bf16.mxu1 %v7184_v3 }
 0x1a5   :  { %v1177_v13 = vadd.f32 %v1176_v37, %v1175_v32  ;;  %v1067_v38 = vadd.f32 %v1066_v27, %v1065_v15  ;;  %v1391_v18 = vpack.c.bf16 %v957_v21, %v957_v21  ;;  %v2133_v23 = vunpack.c.l.b16 %v1343_v7 }
 0x1a6   :  { %v1289_v63 = vadd.f32 %v1288_v42, %v1287_v45  ;;  %v2149_v39 = vunpack.c.l.b16 %v1359_v0  ;;  %v2165_v34 = vunpack.c.l.b16 %v1375_v33  ;;  %v10925_v59 = vunpack.c.l.bf16 %v9441_v46 }
 0x1a7   :  { %v1178_v12 = vrot.slane %v1177_v13, 2  ;;  %v1068_v51 = vrot.slane %v1067_v38, 1  ;;  %v2181_v19 = vunpack.c.l.b16 %v1391_v18  ;;  %v2324_v22 = vsel %vm2233_vm0, %v2133_v23, %v2117_v16 }
 0x1a8   :  { %v1290_v61 = vrot.slane %v1289_v63, 2  ;;  %v10926_v54 = vunpack.c.l.bf16 %v9459_v55  ;;  %v10927_v20 = vunpack.c.l.bf16 %v9467_v56  ;;  %v10928_v53 = vunpack.c.l.bf16 %v9472_v41 }
 0x1a9   :  { %v1179_v2 = vadd.f32 %v1178_v12, %v1177_v13  ;;  %v1069_v4 = vadd.f32 %v1068_v51, %v1067_v38  ;;  %v2325_v60 = vsel %vm2235_vm1, %v2149_v39, %v2324_v22  ;;  %v10929_v15 = vunpack.c.l.bf16 %v9483_v44 }
 0x1aa   :  { %v517_v58 = vadd.f32 %v10926_v54, %v10925_v59  ;;  %v629_v32 = vadd.f32 %v10928_v53, %v10927_v20  ;;  %v1291_v14 = vadd.f32 %v1290_v61, %v1289_v63  ;;  %v10930_v28 = vunpack.c.l.bf16 %v9493_v5 }
 0x1ab   :  { %v1180_v45 = vrot.slane %v1179_v2, 1  ;;  %v2326_v46 = vsel %vm2237_vm2, %v2165_v34, %v2325_v60  ;;  %v1407_v49 = vpack.c.bf16 %v1069_v4, %v1069_v4  ;;  %v10931_v21 = vunpack.c.l.bf16 %v9498_v8  ;;  %v7179_v60 = vld [vmem:[%s10749_s1 + $0xe8] ss:$16 sps:$4 sm:$0xff]  }
 0x1ac   :  { %v741_v50 = vadd.f32 %v10930_v28, %v10929_v15  ;;  %v518_v47 = vrot.slane %v517_v58, 4  ;;  %v630_v55 = vrot.slane %v629_v32, 4  ;;  %v1292_v25 = vrot.slane %v1291_v14, 1 }
 0x1ad   :  { %v2327_v56 = vsel %vm2239_vm3, %v2181_v19, %v2326_v46  ;;  %v1181_v37 = vadd.f32 %v1180_v45, %v1179_v2  ;;  %v10932_v44 = vunpack.c.l.bf16 %v9506_v48  ;;  %v2197_v42 = vunpack.c.l.b16 %v1407_v49 }
 0x1ae   :  { %v742_v41 = vrot.slane %v741_v50, 4  ;;  %v519_v3 = vadd.f32 %v518_v47, %v517_v58  ;;  %v631_v24 = vadd.f32 %v630_v55, %v629_v32  ;;  %v1293_v5 = vadd.f32 %v1292_v25, %v1291_v14 }
 0x1af   :  { %v853_v27 = vadd.f32 %v10932_v44, %v10931_v21  ;;  %v10933_v40 = vunpack.c.l.bf16 %v9518_v57  ;;  %v10934_v7 = vunpack.c.l.bf16 %v9523_v29  ;;  %v1423_v38 = vpack.c.bf16 %v1181_v37, %v1181_v37 }
 0x1b0   :  { %v743_v13 = vadd.f32 %v742_v41, %v741_v50  ;;  %v520_v63 = vrot.slane %v519_v3, 2  ;;  %v632_v33 = vrot.slane %v631_v24, 2  ;;  %v1439_v12 = vpack.c.bf16 %v1293_v5, %v1293_v5  ;;  %v7187_v50 = vld [vmem:[%s10749_s1 + $0xcc] ss:$16 sps:$4 sm:$0xff]  }
 0x1b1   :  { %v965_v0 = vadd.f32 %v10934_v7, %v10933_v40  ;;  %v854_v18 = vrot.slane %v853_v27, 4  ;;  %v2328_v16 = vsel %vm2241_vm4, %v2197_v42, %v2327_v56  ;;  %v2213_v39 = vunpack.c.l.b16 %v1423_v38  ;;  %v5060_v56 = vpop.f32.mrf.mxu0 }
 0x1b2   :  { %v744_v23 = vrot.slane %v743_v13, 2  ;;  %v521_v48 = vadd.f32 %v520_v63, %v519_v3  ;;  %v633_v51 = vadd.f32 %v632_v33, %v631_v24  ;;  %v2229_v34 = vunpack.c.l.b16 %v1439_v12 }
 0x1b3   :  { %v966_v8 = vrot.slane %v965_v0, 4  ;;  %v855_v61 = vadd.f32 %v854_v18, %v853_v27  ;;  %v10935_v57 = vunpack.c.l.bf16 %v9538_v17  ;;  %v10936_v29 = vunpack.c.l.bf16 %v9550_v52 }
 0x1b4   :  { %v745_v19 = vadd.f32 %v744_v23, %v743_v13  ;;  %v2329_v59 = vsel %vm2243_vm5, %v2213_v39, %v2328_v16  ;;  %v522_v54 = vrot.slane %v521_v48, 1  ;;  %v634_v58 = vrot.slane %v633_v51, 1  ;;  %v9783_v13 = vpop.f32.mrf.mxu0 }
 0x1b5   :  { %v967_v2 = vadd.f32 %v966_v8, %v965_v0  ;;  %v1077_v22 = vadd.f32 %v10936_v29, %v10935_v57  ;;  %v856_v20 = vrot.slane %v855_v61, 2  ;;  %v2330_v53 = vsel %vm2245_vm6, %v2229_v34, %v2329_v59  ;;  %v7191_v34 = vld [vmem:[%s10749_s1 + $0xa8] ss:$16 sps:$4 sm:$0xff]  }
 0x1b6   :  { %v746_v32 = vrot.slane %v745_v19, 1  ;;  %v9765_v15 = vpack.c.b16 %v2330_v53, %v2330_v53  ;;  %v523_v17 = vadd.f32 %v522_v54, %v521_v48  ;;  %v635_v28 = vadd.f32 %v634_v58, %v633_v51  ;;  %v5064_v18 = vpop.f32.mrf.mxu0 }
 0x1b7   :  { %v968_v4 = vrot.slane %v967_v2, 2  ;;  %v1078_v14 = vrot.slane %v1077_v22, 4  ;;  %v857_v52 = vadd.f32 %v856_v20, %v855_v61  ;;  %v10937_v55 = vunpack.c.l.bf16 %v9555_v9  ;;  %v7185_v9 = vld [vmem:[%s10749_s1 + $0xc8] ss:$16 sps:$4 sm:$0xff]  }
 0x1b8   :  { %v747_v45 = vadd.f32 %v746_v32, %v745_v19  ;;  %v10938_v25 = vunpack.c.l.bf16 %v9564_v43  ;;  %5223 = vmatmul.mubr.bf16.vlgmr.msra.gmra.mxu0 %v9765_v15  ;;  %v10939_v37 = vunpack.c.l.bf16 %v9569_v1  ;;  %v1329_v24 = vpack.c.bf16 %v523_v17, %v523_v17  ;;  %v10940_v43 = vld [vmem:[#allocation6_spill] sm:$0xff]  ;;  %v5065_v19 = vpop.f32.mrf.mxu0 }
 0x1b9   :  { %v969_v46 = vadd.f32 %v968_v4, %v967_v2  ;;  %v1079_v47 = vadd.f32 %v1078_v14, %v1077_v22  ;;  %v858_v41 = vrot.slane %v857_v52, 1  ;;  %v1345_v21 = vpack.c.bf16 %v635_v28, %v635_v28  ;;  %5273 = vmatpush1.bf16.msra.mxu0 %v7179_v60  ;;  %5304 = vmatprep.mubr.bf16.mxu0 %v10940_v43  ;;  %v7197_v4 = vld [vmem:[%s10749_s1 + $0x88] ss:$16 sps:$4 sm:$0xff]   ;;  %v7205_v60 = vld [vmem:[%s10749_s1 + $0x6c] ss:$16 sps:$4 sm:$0xff]  }
 0x1ba   :  { %v1189_v49 = vadd.f32 %v10938_v25, %v10937_v55  ;;  %v1301_v3 = vadd.f32 %v417_v11, %v10939_v37  ;;  %v1361_v42 = vpack.c.bf16 %v747_v45, %v747_v45  ;;  %v2119_v7 = vunpack.c.l.b16 %v1329_v24  ;;  %5274 = vmatprep.subr.bf16.mxu0 %v7187_v50  ;;  %v7193_v11 = vld [vmem:[%s10749_s1 + $0xac] ss:$16 sps:$4 sm:$0xff]   ;;  %v7182_v24 = vld [vmem:[%s10749_s1 + $0x2e8] ss:$16 sps:$4 sm:$0xff]  }
 0x1bb   :  { %v970_v44 = vrot.slane %v969_v46, 1  ;;  %v1080_v27 = vrot.slane %v1079_v47, 2  ;;  %v859_v40 = vadd.f32 %v858_v41, %v857_v52  ;;  %v2135_v31 = vunpack.c.l.b16 %v1345_v21  ;;  %v7211_v55 = vld [vmem:[%s10749_s1 + $0x4c] ss:$16 sps:$4 sm:$0xff]   ;;  %v7239_v19 = vld [vmem:[%s10749_s1 + $0x1a8] ss:$16 sps:$4 sm:$0xff]  }
 0x1bc   :  { %v1190_v5 = vrot.slane %v1189_v49, 4  ;;  %v1302_v1 = vrot.slane %v1301_v3, 4  ;;  %v2151_v33 = vunpack.c.l.b16 %v1361_v42  ;;  %v5020_v12 = vadd.f32 %v9401_v62, %v9705_v30  ;;  %v7199_v62 = vld [vmem:[%s10749_s1 + $0x8c] ss:$16 sps:$4 sm:$0xff]  }
 0x1bd   :  { %v971_v0 = vadd.f32 %v970_v44, %v969_v46  ;;  %v1081_v38 = vadd.f32 %v1080_v27, %v1079_v47  ;;  %v1377_v23 = vpack.c.bf16 %v859_v40, %v859_v40  ;;  %v2338_v8 = vsel %vm2233_vm0, %v2135_v31, %v2119_v7  ;;  %5275 = vmatpush1.bf16.msra.mxu0 %v7185_v9  ;;  %v10941_v41 = vld [vmem:[#allocation12_spill] sm:$0xff] }
 0x1be   :  { %v1191_v63 = vadd.f32 %v1190_v5, %v1189_v49  ;;  %v1303_v16 = vadd.f32 %v1302_v1, %v1301_v3  ;;  %v2339_v61 = vsel %vm2235_vm1, %v2151_v33, %v2338_v8  ;;  %5276 = vmatprep.subr.bf16.mxu0 %v7193_v11  ;;  %v5061_v30 = vadd.f32 %v5060_v56, %v5020_v12  ;;  %v7217_v21 = vld [vmem:[%s10749_s1 + $0x2c] ss:$16 sps:$4 sm:$0xff]   ;;  %v7215_v9 = vld [vmem:[%s10749_s1 + $0x28] ss:$16 sps:$4 sm:$0xff]  }
 0x1bf   :  { %v1082_v39 = vrot.slane %v1081_v38, 1  ;;  %v1393_v51 = vpack.c.bf16 %v971_v0, %v971_v0  ;;  %v2167_v57 = vunpack.c.l.b16 %v1377_v23  ;;  %v1964_v32 = vrot.slane %v9686_v36, %v1963_v26  ;;  %v7203_v36 = vld [vmem:[%s10749_s1 + $0x68] ss:$16 sps:$4 sm:$0xff]   ;;  %v7190_v27 = vld [vmem:[%s10749_s1 + $0x2cc] ss:$16 sps:$4 sm:$0xff]  }
 0x1c0   :  { %v1192_v48 = vrot.slane %v1191_v63, 2  ;;  %v1304_v2 = vrot.slane %v1303_v16, 2  ;;  %v5101_v42 = vpop.f32.mrf.mxu1  ;;  %v7188_v40 = vld [vmem:[%s10749_s1 + $0x2c8] ss:$16 sps:$4 sm:$0xff]   ;;  %v7196_v7 = vld [vmem:[%s10749_s1 + $0x2ac] ss:$16 sps:$4 sm:$0xff]  }
 0x1c1   :  { %v1083_v29 = vadd.f32 %v1082_v39, %v1081_v38  ;;  %v2183_v59 = vunpack.c.l.b16 %v1393_v51  ;;  %v2340_v58 = vsel %vm2237_vm2, %v2167_v57, %v2339_v61  ;;  %5277 = vmatpush1.bf16.msra.mxu0 %v7191_v34  ;;  %v4981_v46 = vadd.f32 %v9242_v10, %v1964_v32  ;;  %v7209_v10 = vld [vmem:[%s10749_s1 + $0x48] ss:$16 sps:$4 sm:$0xff]   ;;  %v7229_v33 = vld [vmem:[%s10749_s1 + $0x1ec] ss:$16 sps:$4 sm:$0xff]  }
 0x1c2   :  { %v1193_v22 = vadd.f32 %v1192_v48, %v1191_v63  ;;  %v1305_v54 = vadd.f32 %v1304_v2, %v1303_v16  ;;  %5278 = vmatprep.subr.bf16.mxu0 %v7199_v62  ;;  %v9839_v43 = vadd.f32 %v5101_v42, %v5061_v30  ;;  %v5103_v1 = vpop.f32.mrf.mxu1  ;;  %v10942_v31 = vld [vmem:[#allocation8_spill] sm:$0xff] }
 0x1c3   :  { %v1409_v53 = vpack.c.bf16 %v1083_v29, %v1083_v29  ;;  %v2341_v52 = vsel %vm2239_vm3, %v2183_v59, %v2340_v58  ;;  %v5022_v37 = vadd.f32 %v10941_v41, %v4981_v46  ;;  %v7221_v38 = vld [vmem:[%s10749_s1 + $0x8] ss:$16 sps:$4 sm:$0xff]   ;;  %v7202_v12 = vld [vmem:[%s10749_s1 + $0x28c] ss:$16 sps:$4 sm:$0xff]  }
 0x1c4   :  { %v1194_v20 = vrot.slane %v1193_v22, 1  ;;  %v1306_v14 = vrot.slane %v1305_v54, 1  ;;  %v5105_v0 = vpop.f32.mrf.mxu1  ;;  %v7194_v63 = vld [vmem:[%s10749_s1 + $0x2a8] ss:$16 sps:$4 sm:$0xff]   ;;  %v7235_v8 = vld [vmem:[%s10749_s1 + $0x1cc] ss:$16 sps:$4 sm:$0xff]  }
 0x1c5   :  { %v2199_v28 = vunpack.c.l.b16 %v1409_v53  ;;  %5279 = vmatpush1.bf16.msra.mxu0 %v7197_v4  ;;  %v5063_v5 = vadd.f32 %v9783_v13, %v5022_v37  ;;  %v7223_v13 = vld [vmem:[%s10749_s1 + $0xc] ss:$16 sps:$4 sm:$0xff]   ;;  %v7227_v16 = vld [vmem:[%s10749_s1 + $0x1e8] ss:$16 sps:$4 sm:$0xff]  }
 0x1c6   :  { %v1195_v17 = vadd.f32 %v1194_v20, %v1193_v22  ;;  %v1307_v50 = vadd.f32 %v1306_v14, %v1305_v54  ;;  %5280 = vmatprep.subr.bf16.mxu0 %v7205_v60  ;;  %v5106_v18 = vpop.f32.mrf.mxu1  ;;  %v7200_v23 = vld [vmem:[%s10749_s1 + $0x288] ss:$16 sps:$4 sm:$0xff]   ;;  %v7208_v39 = vld [vmem:[%s10749_s1 + $0x26c] ss:$16 sps:$4 sm:$0xff]  }
 0x1c7   :  { %v2342_v47 = vsel %vm2241_vm4, %v2199_v28, %v2341_v52  ;;  %v9851_v11 = vadd.f32 %v5103_v1, %v5063_v5  ;;  %v7233_v48 = vld [vmem:[%s10749_s1 + $0x1c8] ss:$16 sps:$4 sm:$0xff]   ;;  %v7241_v61 = vld [vmem:[%s10749_s1 + $0x1ac] ss:$16 sps:$4 sm:$0xff]  }
 0x1c8   :  { %v1425_v45 = vpack.c.bf16 %v1195_v17, %v1195_v17  ;;  %v1441_v26 = vpack.c.bf16 %v1307_v50, %v1307_v50  ;;  %v7206_v51 = vld [vmem:[%s10749_s1 + $0x268] ss:$16 sps:$4 sm:$0xff]   ;;  %v7214_v34 = vld [vmem:[%s10749_s1 + $0x24c] ss:$16 sps:$4 sm:$0xff]  }
 0x1c9   :  { %5281 = vmatpush1.bf16.msra.mxu0 %v7203_v36  ;;  %v7212_v2 = vld [vmem:[%s10749_s1 + $0x248] ss:$16 sps:$4 sm:$0xff]   ;;  %v7247_v57 = vld [vmem:[%s10749_s1 + $0x18c] ss:$16 sps:$4 sm:$0xff]  }
 0x1ca   :  { %v2215_v25 = vunpack.c.l.b16 %v1425_v45  ;;  %v2231_v49 = vunpack.c.l.b16 %v1441_v26  ;;  %5282 = vmatprep.subr.bf16.mxu0 %v7211_v55  ;;  %v7220_v62 = vld [vmem:[%s10749_s1 + $0x22c] ss:$16 sps:$4 sm:$0xff]   ;;  %v7245_v30 = vld [vmem:[%s10749_s1 + $0x188] ss:$16 sps:$4 sm:$0xff]  }
 0x1cb   :  { %v7218_v29 = vld [vmem:[%s10749_s1 + $0x228] ss:$16 sps:$4 sm:$0xff]   ;;  %v7253_v22 = vld [vmem:[%s10749_s1 + $0x16c] ss:$16 sps:$4 sm:$0xff]  }
 0x1cc   :  { %v2343_v56 = vsel %vm2243_vm5, %v2215_v25, %v2342_v47  ;;  %v7226_v59 = vld [vmem:[%s10749_s1 + $0x20c] ss:$16 sps:$4 sm:$0xff]   ;;  %v7251_v54 = vld [vmem:[%s10749_s1 + $0x168] ss:$16 sps:$4 sm:$0xff]  }
 0x1cd   :  { %v2344_v3 = vsel %vm2245_vm6, %v2231_v49, %v2343_v56  ;;  %5283 = vmatpush1.bf16.msra.mxu0 %v7209_v10  ;;  %v7224_v58 = vld [vmem:[%s10749_s1 + $0x208] ss:$16 sps:$4 sm:$0xff]   ;;  %v7259_v20 = vld [vmem:[%s10749_s1 + $0x14c] ss:$16 sps:$4 sm:$0xff]  }
 0x1ce   :  { %v9829_v44 = vpack.c.b16 %v2344_v3, %v2344_v3  ;;  %5284 = vmatprep.subr.bf16.mxu0 %v7217_v21  ;;  %v7232_v53 = vld [vmem:[%s10749_s1 + $0x3ec] ss:$16 sps:$4 sm:$0xff]   ;;  %v7257_v32 = vld [vmem:[%s10749_s1 + $0x148] ss:$16 sps:$4 sm:$0xff]  }
 0x1cf   :  { %v7230_v4 = vld [vmem:[%s10749_s1 + $0x3e8] ss:$16 sps:$4 sm:$0xff]   ;;  %v7265_v14 = vld [vmem:[%s10749_s1 + $0x12c] ss:$16 sps:$4 sm:$0xff]  }
 0x1d0   :  { %5264 = vmatmul.mubr.bf16.vlgmr.msra.gmra.mxu1 %v9829_v44  ;;  %v7238_v60 = vld [vmem:[%s10749_s1 + $0x3cc] ss:$16 sps:$4 sm:$0xff]   ;;  %v7263_v17 = vld [vmem:[%s10749_s1 + $0x128] ss:$16 sps:$4 sm:$0xff]  }
 0x1d1   :  { %5314 = vmatpush1.bf16.msra.mxu1 %v7182_v24  ;;  %5345 = vmatprep.mubr.bf16.mxu1 %v10942_v31  ;;  %v7236_v28 = vld [vmem:[%s10749_s1 + $0x3c8] ss:$16 sps:$4 sm:$0xff]   ;;  %v7271_v52 = vld [vmem:[%s10749_s1 + $0x10c] ss:$16 sps:$4 sm:$0xff]  }
 0x1d2   :  { %5315 = vmatprep.subr.bf16.mxu1 %v7190_v27  ;;  %5285 = vmatpush1.bf16.msra.mxu0 %v7215_v9  ;;  %v7244_v50 = vld [vmem:[%s10749_s1 + $0x3ac] ss:$16 sps:$4 sm:$0xff]   ;;  %v7269_v45 = vld [vmem:[%s10749_s1 + $0x108] ss:$16 sps:$4 sm:$0xff]  }
 0x1d3   :  { %5286 = vmatprep.subr.bf16.mxu0 %v7223_v13  ;;  %v7242_v46 = vld [vmem:[%s10749_s1 + $0x3a8] ss:$16 sps:$4 sm:$0xff]   ;;  %v7277_v36 = vld [vmem:[%s10749_s1 + $0x4ec] ss:$16 sps:$4 sm:$0xff]  }
 0x1d4   :  { %v7250_v26 = vld [vmem:[%s10749_s1 + $0x38c] ss:$16 sps:$4 sm:$0xff]   ;;  %v7275_v47 = vld [vmem:[%s10749_s1 + $0x4e8] ss:$16 sps:$4 sm:$0xff]  }
 0x1d5   :  { %5316 = vmatpush1.bf16.msra.mxu1 %v7188_v40  ;;  %v7248_v55 = vld [vmem:[%s10749_s1 + $0x388] ss:$16 sps:$4 sm:$0xff]   ;;  %v7283_v25 = vld [vmem:[%s10749_s1 + $0x4cc] ss:$16 sps:$4 sm:$0xff]  }
 0x1d6   :  { %5317 = vmatprep.subr.bf16.mxu1 %v7196_v7  ;;  %5287 = vmatpush1.bf16.msra.mxu0 %v7221_v38  ;;  %v7256_v49 = vld [vmem:[%s10749_s1 + $0x36c] ss:$16 sps:$4 sm:$0xff]   ;;  %v10943_v56 = vld [vmem:[#allocation9_spill] sm:$0xff] }
 0x1d7   :  { %5288 = vmatprep.subr.bf16.mxu0 %v7229_v33  ;;  %v7281_v41 = vld [vmem:[%s10749_s1 + $0x4c8] ss:$16 sps:$4 sm:$0xff]   ;;  %v7289_v3 = vld [vmem:[%s10749_s1 + $0x4ac] ss:$16 sps:$4 sm:$0xff]  }
 0x1d8   :  { %v10944_v37 = vld [vmem:[#allocation10_spill] sm:$0xff] }
 0x1d9   :  { %5318 = vmatpush1.bf16.msra.mxu1 %v7194_v63  ;;  %v7254_v10 = vld [vmem:[%s10749_s1 + $0x368] ss:$16 sps:$4 sm:$0xff]   ;;  %v7262_v24 = vld [vmem:[%s10749_s1 + $0x34c] ss:$16 sps:$4 sm:$0xff]  }
 0x1da   :  { %5319 = vmatprep.subr.bf16.mxu1 %v7202_v12  ;;  %5289 = vmatpush2.bf16.msra.mxu0 %v7227_v16  ;;  %v7287_v21 = vld [vmem:[%s10749_s1 + $0x4a8] ss:$16 sps:$4 sm:$0xff]   ;;  %v7295_v5 = vld [vmem:[%s10749_s1 + $0x48c] ss:$16 sps:$4 sm:$0xff]  }
 0x1db   :  { %5290 = vmatprep.subr.bf16.mxu0 %v7235_v8  ;;  %v7260_v27 = vld [vmem:[%s10749_s1 + $0x348] ss:$16 sps:$4 sm:$0xff]   ;;  %v7268_v42 = vld [vmem:[%s10749_s1 + $0x32c] ss:$16 sps:$4 sm:$0xff]  }
 0x1dc   :  { %v7293_v9 = vld [vmem:[%s10749_s1 + $0x488] ss:$16 sps:$4 sm:$0xff]   ;;  %v7301_v13 = vld [vmem:[%s10749_s1 + $0x46c] ss:$16 sps:$4 sm:$0xff]  }
 0x1dd   :  { %5320 = vmatpush1.bf16.msra.mxu1 %v7200_v23  ;;  %v7266_v40 = vld [vmem:[%s10749_s1 + $0x328] ss:$16 sps:$4 sm:$0xff]   ;;  %v7274_v1 = vld [vmem:[%s10749_s1 + $0x30c] ss:$16 sps:$4 sm:$0xff]  }
 0x1de   :  { %5321 = vmatprep.subr.bf16.mxu1 %v7208_v39  ;;  %5291 = vmatpush2.bf16.msra.mxu0 %v7233_v48  ;;  %v7299_v7 = vld [vmem:[%s10749_s1 + $0x468] ss:$16 sps:$4 sm:$0xff]   ;;  %v7307_v0 = vld [vmem:[%s10749_s1 + $0x44c] ss:$16 sps:$4 sm:$0xff]  }
 0x1df   :  { %5292 = vmatprep.subr.bf16.mxu0 %v7241_v61  ;;  %v7272_v31 = vld [vmem:[%s10749_s1 + $0x308] ss:$16 sps:$4 sm:$0xff]   ;;  %v7280_v38 = vld [vmem:[%s10749_s1 + $0x6ec] ss:$16 sps:$4 sm:$0xff]  }
 0x1e0   :  { %v7305_v63 = vld [vmem:[%s10749_s1 + $0x448] ss:$16 sps:$4 sm:$0xff]   ;;  %v7313_v18 = vld [vmem:[%s10749_s1 + $0x42c] ss:$16 sps:$4 sm:$0xff]  }
 0x1e1   :  { %5322 = vmatpush1.bf16.msra.mxu1 %v7206_v51  ;;  %v7278_v33 = vld [vmem:[%s10749_s1 + $0x6e8] ss:$16 sps:$4 sm:$0xff]   ;;  %v7286_v12 = vld [vmem:[%s10749_s1 + $0x6cc] ss:$16 sps:$4 sm:$0xff]  }
 0x1e2   :  { %5323 = vmatprep.subr.bf16.mxu1 %v7214_v34  ;;  %5293 = vmatpush2.bf16.msra.mxu0 %v7239_v19  ;;  %v10945_v16 = vld [vmem:[#allocation3_spill] sm:$0xff]  ;;  %v7319_v39 = vld [vmem:[%s10749_s1 + $0x40c] ss:$16 sps:$4 sm:$0xff]  }
 0x1e3   :  { %5294 = vmatprep.subr.bf16.mxu0 %v7247_v57  ;;  %v7311_v23 = vld [vmem:[%s10749_s1 + $0x428] ss:$16 sps:$4 sm:$0xff]   ;;  %v7292_v48 = vld [vmem:[%s10749_s1 + $0x6ac] ss:$16 sps:$4 sm:$0xff]  }
 0x1e4   :  { %v7284_v8 = vld [vmem:[%s10749_s1 + $0x6c8] ss:$16 sps:$4 sm:$0xff]   ;;  %v7325_v19 = vld [vmem:[%s10749_s1 + $0x5ec] ss:$16 sps:$4 sm:$0xff]  }
 0x1e5   :  { %5324 = vmatpush1.bf16.msra.mxu1 %v7212_v2  ;;  %v10946_v51 = vld [vmem:[#allocation11_spill] sm:$0xff]  ;;  %v7298_v2 = vld [vmem:[%s10749_s1 + $0x68c] ss:$16 sps:$4 sm:$0xff]  }
 0x1e6   :  { %5325 = vmatprep.subr.bf16.mxu1 %v7220_v62  ;;  %5295 = vmatpush2.bf16.msra.mxu0 %v7245_v30  ;;  %v7317_v61 = vld [vmem:[%s10749_s1 + $0x408] ss:$16 sps:$4 sm:$0xff]  }
 0x1e7   :  { %5296 = vmatprep.subr.bf16.mxu0 %v7253_v22  ;;  %v7290_v34 = vld [vmem:[%s10749_s1 + $0x6a8] ss:$16 sps:$4 sm:$0xff]  }
 0x1e8   :  { %v7323_v57 = vld [vmem:[%s10749_s1 + $0x5e8] ss:$16 sps:$4 sm:$0xff]  }
 0x1e9   :  { %5326 = vmatpush1.bf16.msra.mxu1 %v7218_v29  ;;  %v7296_v30 = vld [vmem:[%s10749_s1 + $0x688] ss:$16 sps:$4 sm:$0xff]   ;;  %v7331_v29 = vld [vmem:[%s10749_s1 + $0x5cc] ss:$16 sps:$4 sm:$0xff]  }
 0x1ea   :  { %5327 = vmatprep.subr.bf16.mxu1 %v7226_v59  ;;  %5297 = vmatpush2.bf16.msra.mxu0 %v7251_v54  ;;  %v7304_v59 = vld [vmem:[%s10749_s1 + $0x66c] ss:$16 sps:$4 sm:$0xff]  }
 0x1eb   :  { %5298 = vmatprep.subr.bf16.mxu0 %v7259_v20  ;;  %v7329_v20 = vld [vmem:[%s10749_s1 + $0x5c8] ss:$16 sps:$4 sm:$0xff]  }
 0x1ed   :  { %5328 = vmatpush1.bf16.msra.mxu1 %v7224_v58 }
 0x1ee   :  { %5329 = vmatprep.subr.bf16.mxu1 %v7232_v53  ;;  %5299 = vmatpush2.bf16.msra.mxu0 %v7257_v32  ;;  %v7302_v32 = vld [vmem:[%s10749_s1 + $0x668] ss:$16 sps:$4 sm:$0xff]  }
 0x1ef   :  { %5300 = vmatprep.subr.bf16.mxu0 %v7265_v14  ;;  %v7335_v14 = vld [vmem:[%s10749_s1 + $0x5a8] ss:$16 sps:$4 sm:$0xff]  }
 0x1f1   :  { %5330 = vmatpush2.bf16.msra.mxu1 %v7230_v4 }
 0x1f2   :  { %5331 = vmatprep.subr.bf16.mxu1 %v7238_v60  ;;  %5301 = vmatpush2.bf16.msra.mxu0 %v7263_v17  ;;  %v7308_v60 = vld [vmem:[%s10749_s1 + $0x648] ss:$16 sps:$4 sm:$0xff]   ;;  %v7343_v17 = vld [vmem:[%s10749_s1 + $0x58c] ss:$16 sps:$4 sm:$0xff]  }
 0x1f3   :  { %5302 = vmatprep.subr.bf16.mxu0 %v7271_v52  ;;  %v7341_v52 = vld [vmem:[%s10749_s1 + $0x588] ss:$16 sps:$4 sm:$0xff]  }
 0x1f5   :  { %5332 = vmatpush2.bf16.msra.mxu1 %v7236_v28  ;;  %v7316_v28 = vld [vmem:[%s10749_s1 + $0x62c] ss:$16 sps:$4 sm:$0xff]  }
 0x1f6   :  { %5333 = vmatprep.subr.bf16.mxu1 %v7244_v50  ;;  %5303 = vmatpush2.bf16.msra.mxu0 %v7269_v45  ;;  %v7314_v50 = vld [vmem:[%s10749_s1 + $0x628] ss:$16 sps:$4 sm:$0xff]   ;;  %v7349_v45 = vld [vmem:[%s10749_s1 + $0x56c] ss:$16 sps:$4 sm:$0xff]  }
 0x1f7   :  { %5354 = vmatprep.subr.bf16.mxu0 %v7277_v36  ;;  %v7347_v36 = vld [vmem:[%s10749_s1 + $0x568] ss:$16 sps:$4 sm:$0xff]  }
 0x1f9   :  { %5334 = vmatpush2.bf16.msra.mxu1 %v7242_v46  ;;  %5305 = vmatmul.mubr.bf16.vlgmr.msra.gmra.mxu0 %v10943_v56  ;;  %v7322_v46 = vld [vmem:[%s10749_s1 + $0x60c] ss:$16 sps:$4 sm:$0xff]  }
 0x1fa   :  { %5335 = vmatprep.subr.bf16.mxu1 %v7250_v26  ;;  %5355 = vmatpush1.bf16.msra.mxu0 %v7275_v47  ;;  %v7320_v26 = vld [vmem:[%s10749_s1 + $0x608] ss:$16 sps:$4 sm:$0xff]   ;;  %v7355_v47 = vld [vmem:[%s10749_s1 + $0x54c] ss:$16 sps:$4 sm:$0xff]  }
 0x1fb   :  { %5386 = vmatprep.mubr.bf16.mxu0 %v10944_v37  ;;  %5356 = vmatprep.subr.bf16.mxu0 %v7283_v25  ;;  %v7353_v25 = vld [vmem:[%s10749_s1 + $0x548] ss:$16 sps:$4 sm:$0xff]   ;;  %v7361_v56 = vld [vmem:[%s10749_s1 + $0x52c] ss:$16 sps:$4 sm:$0xff]  }
 0x1fc   :  { %v7334_v37 = vld [vmem:[%s10749_s1 + $0x7cc] ss:$16 sps:$4 sm:$0xff]  }
 0x1fd   :  { %5336 = vmatpush2.bf16.msra.mxu1 %v7248_v55  ;;  %v7328_v55 = vld [vmem:[%s10749_s1 + $0x7ec] ss:$16 sps:$4 sm:$0xff]  }
 0x1fe   :  { %5337 = vmatprep.subr.bf16.mxu1 %v7256_v49  ;;  %5357 = vmatpush1.bf16.msra.mxu0 %v7281_v41  ;;  %v7326_v49 = vld [vmem:[%s10749_s1 + $0x7e8] ss:$16 sps:$4 sm:$0xff]  }
 0x1ff   :  { %5358 = vmatprep.subr.bf16.mxu0 %v7289_v3 }
 0x201   :  { %5338 = vmatpush2.bf16.msra.mxu1 %v7254_v10 }
 0x202   :  { %5339 = vmatprep.subr.bf16.mxu1 %v7262_v24  ;;  %5359 = vmatpush1.bf16.msra.mxu0 %v7287_v21  ;;  %v7359_v24 = vld [vmem:[%s10749_s1 + $0x528] ss:$16 sps:$4 sm:$0xff]  }
 0x203   :  { %5360 = vmatprep.subr.bf16.mxu0 %v7295_v5  ;;  %v7367_v5 = vld [vmem:[%s10749_s1 + $0x50c] ss:$16 sps:$4 sm:$0xff]  }
 0x205   :  { %5340 = vmatpush2.bf16.msra.mxu1 %v7260_v27  ;;  %v7332_v27 = vld [vmem:[%s10749_s1 + $0x7c8] ss:$16 sps:$4 sm:$0xff]  }
 0x206   :  { %5341 = vmatprep.subr.bf16.mxu1 %v7268_v42  ;;  %5361 = vmatpush1.bf16.msra.mxu0 %v7293_v9  ;;  %v7340_v9 = vld [vmem:[%s10749_s1 + $0x7ac] ss:$16 sps:$4 sm:$0xff]  }
 0x207   :  { %5362 = vmatprep.subr.bf16.mxu0 %v7301_v13  ;;  %v7365_v13 = vld [vmem:[%s10749_s1 + $0x508] ss:$16 sps:$4 sm:$0xff]  }
 0x209   :  { %5342 = vmatpush2.bf16.msra.mxu1 %v7266_v40 }
 0x20a   :  { %5343 = vmatprep.subr.bf16.mxu1 %v7274_v1  ;;  %5363 = vmatpush1.bf16.msra.mxu0 %v7299_v7  ;;  %v7338_v1 = vld [vmem:[%s10749_s1 + $0x7a8] ss:$16 sps:$4 sm:$0xff]   ;;  %v7373_v7 = vld [vmem:[%s10749_s1 + $0x8ec] ss:$16 sps:$4 sm:$0xff]  }
 0x20b   :  { %5364 = vmatprep.subr.bf16.mxu0 %v7307_v0  ;;  %v7371_v0 = vld [vmem:[%s10749_s1 + $0x8e8] ss:$16 sps:$4 sm:$0xff]  }
 0x20d   :  { %5344 = vmatpush2.bf16.msra.mxu1 %v7272_v31  ;;  %v5142_v62 = vpop.f32.mrf.mxu0  ;;  %v7346_v31 = vld [vmem:[%s10749_s1 + $0x78c] ss:$16 sps:$4 sm:$0xff]  }
 0x20e   :  { %5395 = vmatprep.subr.bf16.mxu1 %v7280_v38  ;;  %5365 = vmatpush1.bf16.msra.mxu0 %v7305_v63  ;;  %v5143_v22 = vadd.f32 %v5142_v62, %v9839_v43  ;;  %v7337_v43 = vld [vmem:[%s10749_s1 + $0x5ac] ss:$16 sps:$4 sm:$0xff]   ;;  %v7344_v38 = vld [vmem:[%s10749_s1 + $0x788] ss:$16 sps:$4 sm:$0xff]  }
 0x20f   :  { %5366 = vmatprep.subr.bf16.mxu0 %v7313_v18  ;;  %v5144_v54 = vpop.f32.mrf.mxu0  ;;  %v7379_v63 = vld [vmem:[%s10749_s1 + $0x8cc] ss:$16 sps:$4 sm:$0xff]  }
 0x210   :  { %5346 = vmatmul.mubr.bf16.vlgmr.msra.gmra.mxu1 %v10945_v16  ;;  %v5145_v58 = vadd.f32 %v5144_v54, %v9851_v11  ;;  %v7310_v11 = vld [vmem:[%s10749_s1 + $0x64c] ss:$16 sps:$4 sm:$0xff]   ;;  %v10948_v16 = vld [vmem:[#allocation13_spill] sm:$0xff] }
 0x211   :  { %5396 = vmatpush1.bf16.msra.mxu1 %v7278_v33  ;;  %5427 = vmatprep.mubr.bf16.mxu1 %v10946_v51  ;;  %v5146_v53 = vpop.f32.mrf.mxu0  ;;  %v7352_v33 = vld [vmem:[%s10749_s1 + $0x76c] ss:$16 sps:$4 sm:$0xff]   ;;  %v7356_v51 = vld [vmem:[%s10749_s1 + $0x748] ss:$16 sps:$4 sm:$0xff]  }
 0x212   :  { %5397 = vmatprep.subr.bf16.mxu1 %v7286_v12  ;;  %5367 = vmatpush1.bf16.msra.mxu0 %v7311_v23  ;;  %v10947_v18 = vld [vmem:[#allocation4_spill] sm:$0xff] }
 0x213   :  { %5368 = vmatprep.subr.bf16.mxu0 %v7319_v39  ;;  %v5147_v4 = vpop.f32.mrf.mxu0  ;;  %v7377_v12 = vld [vmem:[%s10749_s1 + $0x8c8] ss:$16 sps:$4 sm:$0xff]   ;;  %v7358_v39 = vld [vmem:[%s10749_s1 + $0x74c] ss:$16 sps:$4 sm:$0xff]  }
 0x214   :  { %v7350_v23 = vld [vmem:[%s10749_s1 + $0x768] ss:$16 sps:$4 sm:$0xff]   ;;  %v7370_v62 = vld [vmem:[%s10749_s1 + $0x70c] ss:$16 sps:$4 sm:$0xff]  }
 0x215   :  { %5398 = vmatpush1.bf16.msra.mxu1 %v7284_v8  ;;  %v7385_v8 = vld [vmem:[%s10749_s1 + $0x8ac] ss:$16 sps:$4 sm:$0xff]   ;;  %v7401_v54 = vld [vmem:[%s10749_s1 + $0x848] ss:$16 sps:$4 sm:$0xff]  }
 0x216   :  { %5399 = vmatprep.subr.bf16.mxu1 %v7292_v48  ;;  %5369 = vmatpush1.bf16.msra.mxu0 %v7317_v61  ;;  %v7383_v48 = vld [vmem:[%s10749_s1 + $0x8a8] ss:$16 sps:$4 sm:$0xff]   ;;  %v7391_v61 = vld [vmem:[%s10749_s1 + $0x88c] ss:$16 sps:$4 sm:$0xff]  }
 0x217   :  { %5370 = vmatprep.subr.bf16.mxu0 %v7325_v19  ;;  %v7389_v19 = vld [vmem:[%s10749_s1 + $0x888] ss:$16 sps:$4 sm:$0xff]   ;;  %v7409_v53 = vld [vmem:[%s10749_s1 + $0x82c] ss:$16 sps:$4 sm:$0xff]  }
 0x218   :  { %v10949_v4 = vld [vmem:[#allocation5_spill] sm:$0xff] }
 0x219   :  { %5400 = vmatpush1.bf16.msra.mxu1 %v7290_v34  ;;  %v7364_v34 = vld [vmem:[%s10749_s1 + $0x72c] ss:$16 sps:$4 sm:$0xff]  }
 0x21a   :  { %5401 = vmatprep.subr.bf16.mxu1 %v7298_v2  ;;  %5371 = vmatpush2.bf16.msra.mxu0 %v7323_v57  ;;  %v7362_v2 = vld [vmem:[%s10749_s1 + $0x728] ss:$16 sps:$4 sm:$0xff]   ;;  %v7397_v57 = vld [vmem:[%s10749_s1 + $0x86c] ss:$16 sps:$4 sm:$0xff]  }
 0x21b   :  { %5372 = vmatprep.subr.bf16.mxu0 %v7331_v29  ;;  %v7368_v29 = vld [vmem:[%s10749_s1 + $0x708] ss:$16 sps:$4 sm:$0xff]  }
 0x21d   :  { %5402 = vmatpush1.bf16.msra.mxu1 %v7296_v30  ;;  %v7395_v30 = vld [vmem:[%s10749_s1 + $0x868] ss:$16 sps:$4 sm:$0xff]  }
 0x21e   :  { %5403 = vmatprep.subr.bf16.mxu1 %v7304_v59  ;;  %5373 = vmatpush2.bf16.msra.mxu0 %v7329_v20  ;;  %v7376_v59 = vld [vmem:[%s10749_s1 + $0xaec] ss:$16 sps:$4 sm:$0xff]  }
 0x21f   :  { %5374 = vmatprep.subr.bf16.mxu0 %v7337_v43  ;;  %v7382_v20 = vld [vmem:[%s10749_s1 + $0xacc] ss:$16 sps:$4 sm:$0xff]   ;;  %v7380_v43 = vld [vmem:[%s10749_s1 + $0xac8] ss:$16 sps:$4 sm:$0xff]  }
 0x221   :  { %5404 = vmatpush1.bf16.msra.mxu1 %v7302_v32  ;;  %v7407_v32 = vld [vmem:[%s10749_s1 + $0x828] ss:$16 sps:$4 sm:$0xff]  }
 0x222   :  { %5405 = vmatprep.subr.bf16.mxu1 %v7310_v11  ;;  %5375 = vmatpush2.bf16.msra.mxu0 %v7335_v14  ;;  %v7415_v11 = vld [vmem:[%s10749_s1 + $0x80c] ss:$16 sps:$4 sm:$0xff]  }
 0x223   :  { %5376 = vmatprep.subr.bf16.mxu0 %v7343_v17  ;;  %v7388_v14 = vld [vmem:[%s10749_s1 + $0xaac] ss:$16 sps:$4 sm:$0xff]  }
 0x224   :  { %v10950_v17 = vld [vmem:[#allocation14_spill] sm:$0xff] }
 0x225   :  { %5406 = vmatpush1.bf16.msra.mxu1 %v7308_v60  ;;  %v7413_v60 = vld [vmem:[%s10749_s1 + $0x808] ss:$16 sps:$4 sm:$0xff]  }
 0x226   :  { %5407 = vmatprep.subr.bf16.mxu1 %v7316_v28  ;;  %5377 = vmatpush2.bf16.msra.mxu0 %v7341_v52  ;;  %v5183_v41 = vpop.f32.mrf.mxu1  ;;  %v7386_v28 = vld [vmem:[%s10749_s1 + $0xaa8] ss:$16 sps:$4 sm:$0xff]   ;;  %v7421_v52 = vld [vmem:[%s10749_s1 + $0x9ec] ss:$16 sps:$4 sm:$0xff]  }
 0x227   :  { %5378 = vmatprep.subr.bf16.mxu0 %v7349_v45  ;;  %v10135_v10 = vadd.f32 %v5183_v41, %v5143_v22  ;;  %v7403_v22 = vld [vmem:[%s10749_s1 + $0x84c] ss:$16 sps:$4 sm:$0xff]   ;;  %v7392_v45 = vld [vmem:[%s10749_s1 + $0xa88] ss:$16 sps:$4 sm:$0xff]  }
 0x228   :  { %v5185_v3 = vpop.f32.mrf.mxu1  ;;  %v7404_v41 = vld [vmem:[%s10749_s1 + $0xa48] ss:$16 sps:$4 sm:$0xff]  }
 0x229   :  { %5408 = vmatpush1.bf16.msra.mxu1 %v7314_v50  ;;  %v10140_v21 = vadd.f32 %v5185_v3, %v5145_v58  ;;  %v7374_v58 = vld [vmem:[%s10749_s1 + $0xae8] ss:$16 sps:$4 sm:$0xff]   ;;  %v7394_v50 = vld [vmem:[%s10749_s1 + $0xa8c] ss:$16 sps:$4 sm:$0xff]  }
 0x22a   :  { %5409 = vmatprep.subr.bf16.mxu1 %v7322_v46  ;;  %5379 = vmatpush2.bf16.msra.mxu0 %v7347_v36  ;;  %v5187_v42 = vpop.f32.mrf.mxu1  ;;  %v7419_v46 = vld [vmem:[%s10749_s1 + $0x9e8] ss:$16 sps:$4 sm:$0xff]   ;;  %v7427_v36 = vld [vmem:[%s10749_s1 + $0x9cc] ss:$16 sps:$4 sm:$0xff]  }
 0x22b   :  { %5380 = vmatprep.subr.bf16.mxu0 %v7355_v47  ;;  %v7398_v47 = vld [vmem:[%s10749_s1 + $0xa68] ss:$16 sps:$4 sm:$0xff]   ;;  %v7412_v3 = vld [vmem:[%s10749_s1 + $0xa2c] ss:$16 sps:$4 sm:$0xff]  }
 0x22c   :  { %v5188_v40 = vpop.f32.mrf.mxu1  ;;  %v7418_v42 = vld [vmem:[%s10749_s1 + $0xa0c] ss:$16 sps:$4 sm:$0xff]  }
 0x22d   :  { %5410 = vmatpush1.bf16.msra.mxu1 %v7320_v26  ;;  %v7400_v26 = vld [vmem:[%s10749_s1 + $0xa6c] ss:$16 sps:$4 sm:$0xff]   ;;  %v7416_v40 = vld [vmem:[%s10749_s1 + $0xa08] ss:$16 sps:$4 sm:$0xff]  }
 0x22e   :  { %5411 = vmatprep.subr.bf16.mxu1 %v7328_v55  ;;  %5381 = vmatpush2.bf16.msra.mxu0 %v7353_v25  ;;  %v7406_v55 = vld [vmem:[%s10749_s1 + $0xa4c] ss:$16 sps:$4 sm:$0xff]   ;;  %v7425_v25 = vld [vmem:[%s10749_s1 + $0x9c8] ss:$16 sps:$4 sm:$0xff]  }
 0x22f   :  { %5382 = vmatprep.subr.bf16.mxu0 %v7361_v56  ;;  %v7431_v56 = vld [vmem:[%s10749_s1 + $0x9a8] ss:$16 sps:$4 sm:$0xff]  }
 0x231   :  { %5412 = vmatpush2.bf16.msra.mxu1 %v7326_v49  ;;  %v7433_v49 = vld [vmem:[%s10749_s1 + $0x9ac] ss:$16 sps:$4 sm:$0xff]  }
 0x232   :  { %5413 = vmatprep.subr.bf16.mxu1 %v7334_v37  ;;  %5383 = vmatpush2.bf16.msra.mxu0 %v7359_v24  ;;  %v7439_v37 = vld [vmem:[%s10749_s1 + $0x98c] ss:$16 sps:$4 sm:$0xff]   ;;  %v7437_v24 = vld [vmem:[%s10749_s1 + $0x988] ss:$16 sps:$4 sm:$0xff]  }
 0x233   :  { %5384 = vmatprep.subr.bf16.mxu0 %v7367_v5  ;;  %v7445_v5 = vld [vmem:[%s10749_s1 + $0x96c] ss:$16 sps:$4 sm:$0xff]  }
 0x235   :  { %5414 = vmatpush2.bf16.msra.mxu1 %v7332_v27  ;;  %v7410_v27 = vld [vmem:[%s10749_s1 + $0xa28] ss:$16 sps:$4 sm:$0xff]  }
 0x236   :  { %5415 = vmatprep.subr.bf16.mxu1 %v7340_v9  ;;  %5385 = vmatpush2.bf16.msra.mxu0 %v7365_v13  ;;  %v7443_v9 = vld [vmem:[%s10749_s1 + $0x968] ss:$16 sps:$4 sm:$0xff]   ;;  %v7451_v13 = vld [vmem:[%s10749_s1 + $0x94c] ss:$16 sps:$4 sm:$0xff]  }
 0x237   :  { %5436 = vmatprep.subr.bf16.mxu0 %v7373_v7  ;;  %v7449_v7 = vld [vmem:[%s10749_s1 + $0x948] ss:$16 sps:$4 sm:$0xff]  }
 0x239   :  { %5416 = vmatpush2.bf16.msra.mxu1 %v7338_v1  ;;  %5387 = vmatmul.mubr.bf16.vlgmr.msra.gmra.mxu0 %v10947_v18  ;;  %v7424_v1 = vld [vmem:[%s10749_s1 + $0xbec] ss:$16 sps:$4 sm:$0xff]  }
 0x23a   :  { %5417 = vmatprep.subr.bf16.mxu1 %v7346_v31  ;;  %5437 = vmatpush1.bf16.msra.mxu0 %v7371_v0  ;;  %v7422_v31 = vld [vmem:[%s10749_s1 + $0xbe8] ss:$16 sps:$4 sm:$0xff]   ;;  %v7457_v0 = vld [vmem:[%s10749_s1 + $0x92c] ss:$16 sps:$4 sm:$0xff]  }
 0x23b   :  { %5468 = vmatprep.mubr.bf16.mxu0 %v10948_v16  ;;  %5438 = vmatprep.subr.bf16.mxu0 %v7379_v63  ;;  %v7455_v63 = vld [vmem:[%s10749_s1 + $0x928] ss:$16 sps:$4 sm:$0xff]   ;;  %v7463_v18 = vld [vmem:[%s10749_s1 + $0x90c] ss:$16 sps:$4 sm:$0xff]  }
 0x23c   :  { %v7461_v16 = vld [vmem:[%s10749_s1 + $0x908] ss:$16 sps:$4 sm:$0xff]  }
 0x23d   :  { %5418 = vmatpush2.bf16.msra.mxu1 %v7344_v38  ;;  %v7430_v38 = vld [vmem:[%s10749_s1 + $0xbcc] ss:$16 sps:$4 sm:$0xff]  }
 0x23e   :  { %5419 = vmatprep.subr.bf16.mxu1 %v7352_v33  ;;  %5439 = vmatpush1.bf16.msra.mxu0 %v7377_v12  ;;  %v7428_v33 = vld [vmem:[%s10749_s1 + $0xbc8] ss:$16 sps:$4 sm:$0xff]   ;;  %v7436_v12 = vld [vmem:[%s10749_s1 + $0xbac] ss:$16 sps:$4 sm:$0xff]  }
 0x23f   :  { %5440 = vmatprep.subr.bf16.mxu0 %v7385_v8  ;;  %v7469_v8 = vld [vmem:[%s10749_s1 + $0xcec] ss:$16 sps:$4 sm:$0xff]  }
 0x241   :  { %5420 = vmatpush2.bf16.msra.mxu1 %v7350_v23  ;;  %v7434_v23 = vld [vmem:[%s10749_s1 + $0xba8] ss:$16 sps:$4 sm:$0xff]  }
 0x242   :  { %5421 = vmatprep.subr.bf16.mxu1 %v7358_v39  ;;  %5441 = vmatpush1.bf16.msra.mxu0 %v7383_v48  ;;  %v7442_v39 = vld [vmem:[%s10749_s1 + $0xb8c] ss:$16 sps:$4 sm:$0xff]   ;;  %v7467_v48 = vld [vmem:[%s10749_s1 + $0xce8] ss:$16 sps:$4 sm:$0xff]  }
 0x243   :  { %5442 = vmatprep.subr.bf16.mxu0 %v7391_v61  ;;  %v7475_v61 = vld [vmem:[%s10749_s1 + $0xccc] ss:$16 sps:$4 sm:$0xff]  }
 0x245   :  { %5422 = vmatpush2.bf16.msra.mxu1 %v7356_v51  ;;  %v7440_v51 = vld [vmem:[%s10749_s1 + $0xb88] ss:$16 sps:$4 sm:$0xff]  }
 0x246   :  { %5423 = vmatprep.subr.bf16.mxu1 %v7364_v34  ;;  %5443 = vmatpush1.bf16.msra.mxu0 %v7389_v19  ;;  %v7448_v34 = vld [vmem:[%s10749_s1 + $0xb6c] ss:$16 sps:$4 sm:$0xff]  }
 0x247   :  { %5444 = vmatprep.subr.bf16.mxu0 %v7397_v57 }
 0x249   :  { %5424 = vmatpush2.bf16.msra.mxu1 %v7362_v2  ;;  %v10951_v2 = vld [vmem:[#allocation15_spill] sm:$0xff] }
 0x24a   :  { %5425 = vmatprep.subr.bf16.mxu1 %v7370_v62  ;;  %5445 = vmatpush1.bf16.msra.mxu0 %v7395_v30  ;;  %v7473_v62 = vld [vmem:[%s10749_s1 + $0xcc8] ss:$16 sps:$4 sm:$0xff]  }
 0x24b   :  { %5446 = vmatprep.subr.bf16.mxu0 %v7403_v22  ;;  %v10952_v30 = vld [vmem:[#allocation16_spill] sm:$0xff] }
 0x24d   :  { %5426 = vmatpush2.bf16.msra.mxu1 %v7368_v29  ;;  %v7446_v29 = vld [vmem:[%s10749_s1 + $0xb68] ss:$16 sps:$4 sm:$0xff]  }
 0x24e   :  { %5477 = vmatprep.subr.bf16.mxu1 %v7376_v59  ;;  %5447 = vmatpush1.bf16.msra.mxu0 %v7401_v54  ;;  %v7481_v59 = vld [vmem:[%s10749_s1 + $0xcac] ss:$16 sps:$4 sm:$0xff]  }
 0x24f   :  { %5448 = vmatprep.subr.bf16.mxu0 %v7409_v53 }
 0x250   :  { %5428 = vmatmul.mubr.bf16.vlgmr.msra.gmra.mxu1 %v10949_v4  ;;  %v7458_v4 = vld [vmem:[%s10749_s1 + $0xb28] ss:$16 sps:$4 sm:$0xff]  }
 0x251   :  { %5478 = vmatpush1.bf16.msra.mxu1 %v7374_v58  ;;  %5509 = vmatprep.mubr.bf16.mxu1 %v10950_v17  ;;  %v7479_v58 = vld [vmem:[%s10749_s1 + $0xca8] ss:$16 sps:$4 sm:$0xff]  }
 0x252   :  { %5479 = vmatprep.subr.bf16.mxu1 %v7382_v20  ;;  %5449 = vmatpush1.bf16.msra.mxu0 %v7407_v32  ;;  %v7452_v20 = vld [vmem:[%s10749_s1 + $0xb48] ss:$16 sps:$4 sm:$0xff]   ;;  %v7487_v32 = vld [vmem:[%s10749_s1 + $0xc8c] ss:$16 sps:$4 sm:$0xff]  }
 0x253   :  { %5450 = vmatprep.subr.bf16.mxu0 %v7415_v11  ;;  %v7485_v11 = vld [vmem:[%s10749_s1 + $0xc88] ss:$16 sps:$4 sm:$0xff]  }
 0x254   :  { %v7491_v17 = vld [vmem:[%s10749_s1 + $0xc68] ss:$16 sps:$4 sm:$0xff]  }
 0x255   :  { %5480 = vmatpush1.bf16.msra.mxu1 %v7380_v43  ;;  %v7460_v43 = vld [vmem:[%s10749_s1 + $0xb2c] ss:$16 sps:$4 sm:$0xff]  }
 0x256   :  { %5481 = vmatprep.subr.bf16.mxu1 %v7388_v14  ;;  %5451 = vmatpush1.bf16.msra.mxu0 %v7413_v60  ;;  %v7493_v14 = vld [vmem:[%s10749_s1 + $0xc6c] ss:$16 sps:$4 sm:$0xff]  }
 0x257   :  { %5452 = vmatprep.subr.bf16.mxu0 %v7421_v52  ;;  %v7466_v60 = vld [vmem:[%s10749_s1 + $0xb0c] ss:$16 sps:$4 sm:$0xff]  }
 0x258   :  { %v7499_v52 = vld [vmem:[%s10749_s1 + $0xc4c] ss:$16 sps:$4 sm:$0xff]  }
 0x259   :  { %5482 = vmatpush1.bf16.msra.mxu1 %v7386_v28  ;;  %v7464_v28 = vld [vmem:[%s10749_s1 + $0xb08] ss:$16 sps:$4 sm:$0xff]  }
 0x25a   :  { %5483 = vmatprep.subr.bf16.mxu1 %v7394_v50  ;;  %5453 = vmatpush2.bf16.msra.mxu0 %v7419_v46  ;;  %v7472_v50 = vld [vmem:[%s10749_s1 + $0xeec] ss:$16 sps:$4 sm:$0xff]   ;;  %v7470_v46 = vld [vmem:[%s10749_s1 + $0xee8] ss:$16 sps:$4 sm:$0xff]  }
 0x25b   :  { %5454 = vmatprep.subr.bf16.mxu0 %v7427_v36  ;;  %v7505_v36 = vld [vmem:[%s10749_s1 + $0xc2c] ss:$16 sps:$4 sm:$0xff]  }
 0x25d   :  { %5484 = vmatpush1.bf16.msra.mxu1 %v7392_v45  ;;  %v7497_v45 = vld [vmem:[%s10749_s1 + $0xc48] ss:$16 sps:$4 sm:$0xff]  }
 0x25e   :  { %5485 = vmatprep.subr.bf16.mxu1 %v7400_v26  ;;  %5455 = vmatpush2.bf16.msra.mxu0 %v7425_v25  ;;  %v7478_v26 = vld [vmem:[%s10749_s1 + $0xecc] ss:$16 sps:$4 sm:$0xff]   ;;  %v7503_v25 = vld [vmem:[%s10749_s1 + $0xc28] ss:$16 sps:$4 sm:$0xff]  }
 0x25f   :  { %5456 = vmatprep.subr.bf16.mxu0 %v7433_v49 }
 0x261   :  { %5486 = vmatpush1.bf16.msra.mxu1 %v7398_v47 }
 0x262   :  { %5487 = vmatprep.subr.bf16.mxu1 %v7406_v55  ;;  %5457 = vmatpush2.bf16.msra.mxu0 %v7431_v56  ;;  %v10953_v55 = vld [vmem:[#allocation7_spill] sm:$0xff] }
 0x263   :  { %5458 = vmatprep.subr.bf16.mxu0 %v7439_v37  ;;  %v7476_v56 = vld [vmem:[%s10749_s1 + $0xec8] ss:$16 sps:$4 sm:$0xff]  }
 0x265   :  { %5488 = vmatpush1.bf16.msra.mxu1 %v7404_v41  ;;  %v7511_v41 = vld [vmem:[%s10749_s1 + $0xc0c] ss:$16 sps:$4 sm:$0xff]  }
 0x266   :  { %5489 = vmatprep.subr.bf16.mxu1 %v7412_v3  ;;  %5459 = vmatpush2.bf16.msra.mxu0 %v7437_v24  ;;  %v7484_v3 = vld [vmem:[%s10749_s1 + $0xeac] ss:$16 sps:$4 sm:$0xff]  }
 0x267   :  { %5460 = vmatprep.subr.bf16.mxu0 %v7445_v5  ;;  %v7482_v5 = vld [vmem:[%s10749_s1 + $0xea8] ss:$16 sps:$4 sm:$0xff]  }
 0x269   :  { %5490 = vmatpush1.bf16.msra.mxu1 %v7410_v27  ;;  %v7509_v27 = vld [vmem:[%s10749_s1 + $0xc08] ss:$16 sps:$4 sm:$0xff]  }
 0x26a   :  { %5491 = vmatprep.subr.bf16.mxu1 %v7418_v42  ;;  %5461 = vmatpush2.bf16.msra.mxu0 %v7443_v9  ;;  %v7517_v42 = vld [vmem:[%s10749_s1 + $0xdec] ss:$16 sps:$4 sm:$0xff]  }
 0x26b   :  { %5462 = vmatprep.subr.bf16.mxu0 %v7451_v13  ;;  %v7488_v13 = vld [vmem:[%s10749_s1 + $0xe88] ss:$16 sps:$4 sm:$0xff]  }
 0x26d   :  { %5492 = vmatpush1.bf16.msra.mxu1 %v7416_v40  ;;  %v7515_v40 = vld [vmem:[%s10749_s1 + $0xde8] ss:$16 sps:$4 sm:$0xff]  }
 0x26e   :  { %5493 = vmatprep.subr.bf16.mxu1 %v7424_v1  ;;  %5463 = vmatpush2.bf16.msra.mxu0 %v7449_v7  ;;  %v7523_v1 = vld [vmem:[%s10749_s1 + $0xdcc] ss:$16 sps:$4 sm:$0xff]  }
 0x26f   :  { %5464 = vmatprep.subr.bf16.mxu0 %v7457_v0  ;;  %v7496_v7 = vld [vmem:[%s10749_s1 + $0xe6c] ss:$16 sps:$4 sm:$0xff]   ;;  %v7494_v0 = vld [vmem:[%s10749_s1 + $0xe68] ss:$16 sps:$4 sm:$0xff]  }
 0x271   :  { %5494 = vmatpush2.bf16.msra.mxu1 %v7422_v31  ;;  %v7521_v31 = vld [vmem:[%s10749_s1 + $0xdc8] ss:$16 sps:$4 sm:$0xff]  }
 0x272   :  { %5495 = vmatprep.subr.bf16.mxu1 %v7430_v38  ;;  %5465 = vmatpush2.bf16.msra.mxu0 %v7455_v63  ;;  %v7529_v38 = vld [vmem:[%s10749_s1 + $0xdac] ss:$16 sps:$4 sm:$0xff]  }
 0x273   :  { %5466 = vmatprep.subr.bf16.mxu0 %v7463_v18  ;;  %v7502_v63 = vld [vmem:[%s10749_s1 + $0xe4c] ss:$16 sps:$4 sm:$0xff]   ;;  %v7500_v18 = vld [vmem:[%s10749_s1 + $0xe48] ss:$16 sps:$4 sm:$0xff]  }
 0x275   :  { %5496 = vmatpush2.bf16.msra.mxu1 %v7428_v33  ;;  %v7527_v33 = vld [vmem:[%s10749_s1 + $0xda8] ss:$16 sps:$4 sm:$0xff]  }
 0x276   :  { %5497 = vmatprep.subr.bf16.mxu1 %v7436_v12  ;;  %5467 = vmatpush2.bf16.msra.mxu0 %v7461_v16  ;;  %v7535_v12 = vld [vmem:[%s10749_s1 + $0xd8c] ss:$16 sps:$4 sm:$0xff]  }
 0x277   :  { %5518 = vmatprep.subr.bf16.mxu0 %v7469_v8  ;;  %v7508_v16 = vld [vmem:[%s10749_s1 + $0xe2c] ss:$16 sps:$4 sm:$0xff]   ;;  %v7506_v8 = vld [vmem:[%s10749_s1 + $0xe28] ss:$16 sps:$4 sm:$0xff]  }
 0x278   :  { %v5224_v19 = vpop.f32.mrf.mxu0 }
 0x279   :  { %5498 = vmatpush2.bf16.msra.mxu1 %v7434_v23  ;;  %5469 = vmatmul.mubr.bf16.vlgmr.msra.gmra.mxu0 %v10951_v2  ;;  %v5225_v57 = vadd.f32 %v5224_v19, %v10135_v10  ;;  %v7454_v10 = vld [vmem:[%s10749_s1 + $0xb4c] ss:$16 sps:$4 sm:$0xff]   ;;  %v7533_v23 = vld [vmem:[%s10749_s1 + $0xd88] ss:$16 sps:$4 sm:$0xff]  }
 0x27a   :  { %5499 = vmatprep.subr.bf16.mxu1 %v7442_v39  ;;  %5519 = vmatpush1.bf16.msra.mxu0 %v7467_v48  ;;  %v10380_v22 = vpop.f32.mrf.mxu0  ;;  %v7541_v39 = vld [vmem:[%s10749_s1 + $0xd6c] ss:$16 sps:$4 sm:$0xff]  }
 0x27b   :  { %5550 = vmatprep.mubr.bf16.mxu0 %v10952_v30  ;;  %5520 = vmatprep.subr.bf16.mxu0 %v7475_v61  ;;  %v7514_v48 = vld [vmem:[%s10749_s1 + $0xe0c] ss:$16 sps:$4 sm:$0xff]   ;;  %v7512_v61 = vld [vmem:[%s10749_s1 + $0xe08] ss:$16 sps:$4 sm:$0xff]   ;;  %v5227_v2 = vadd.f32 %v10380_v22, %v10140_v21 }
 0x27c   :  { %v5228_v54 = vpop.f32.mrf.mxu0  ;;  %v7520_v19 = vld [vmem:[%s10749_s1 + $0xfec] ss:$16 sps:$4 sm:$0xff]   ;;  %v7551_v22 = vld [vmem:[%s10749_s1 + $0xd28] ss:$16 sps:$4 sm:$0xff]  }
 0x27d   :  { %5500 = vmatpush2.bf16.msra.mxu1 %v7440_v51  ;;  %v7539_v51 = vld [vmem:[%s10749_s1 + $0xd68] ss:$16 sps:$4 sm:$0xff]   ;;  %v7553_v30 = vld [vmem:[%s10749_s1 + $0xd2c] ss:$16 sps:$4 sm:$0xff]  }
 0x27e   :  { %5501 = vmatprep.subr.bf16.mxu1 %v7448_v34  ;;  %5521 = vmatpush1.bf16.msra.mxu0 %v7473_v62  ;;  %v5229_v53 = vpop.f32.mrf.mxu0  ;;  %v7547_v34 = vld [vmem:[%s10749_s1 + $0xd4c] ss:$16 sps:$4 sm:$0xff]   ;;  %v7518_v62 = vld [vmem:[%s10749_s1 + $0xfe8] ss:$16 sps:$4 sm:$0xff]  }
 0x27f   :  { %5522 = vmatprep.subr.bf16.mxu0 %v7481_v59  ;;  %v7526_v21 = vld [vmem:[%s10749_s1 + $0xfcc] ss:$16 sps:$4 sm:$0xff]   ;;  %v7524_v59 = vld [vmem:[%s10749_s1 + $0xfc8] ss:$16 sps:$4 sm:$0xff]  }
 0x280   :  { %v7532_v54 = vld [vmem:[%s10749_s1 + $0xfac] ss:$16 sps:$4 sm:$0xff]   ;;  %v7530_v53 = vld [vmem:[%s10749_s1 + $0xfa8] ss:$16 sps:$4 sm:$0xff]  }
 0x281   :  { %5502 = vmatpush2.bf16.msra.mxu1 %v7446_v29 }
 0x282   :  { %5503 = vmatprep.subr.bf16.mxu1 %v7454_v10  ;;  %5523 = vmatpush1.bf16.msra.mxu0 %v7479_v58  ;;  %v7559_v10 = vld [vmem:[%s10749_s1 + $0xd0c] ss:$16 sps:$4 sm:$0xff]  }
 0x283   :  { %5524 = vmatprep.subr.bf16.mxu0 %v7487_v32  ;;  %v7563_v32 = vld [vmem:[%s10752_s3 + $0x78] sm:$0xff]  }
 0x285   :  { %5504 = vmatpush2.bf16.msra.mxu1 %v7452_v20  ;;  %v7557_v20 = vld [vmem:[%s10749_s1 + $0xd08] ss:$16 sps:$4 sm:$0xff]  }
 0x286   :  { %5505 = vmatprep.subr.bf16.mxu1 %v7460_v43  ;;  %5525 = vmatpush1.bf16.msra.mxu0 %v7485_v11  ;;  %v7538_v43 = vld [vmem:[%s10749_s1 + $0xf8c] ss:$16 sps:$4 sm:$0xff]  }
 0x287   :  { %5526 = vmatprep.subr.bf16.mxu0 %v7493_v14  ;;  %v7536_v14 = vld [vmem:[%s10749_s1 + $0xf88] ss:$16 sps:$4 sm:$0xff]  }
 0x289   :  { %5506 = vmatpush2.bf16.msra.mxu1 %v7458_v4  ;;  %v7564_v4 = vld [vmem:[%s10752_s3 + $0x38] sm:$0xff]  }
 0x28a   :  { %5507 = vmatprep.subr.bf16.mxu1 %v7466_v60  ;;  %5527 = vmatpush1.bf16.msra.mxu0 %v7491_v17  ;;  %v7565_v60 = vld [vmem:[%s10752_s3 + $0x70] sm:$0xff]   ;;  %v7544_v17 = vld [vmem:[%s10749_s1 + $0xf6c] ss:$16 sps:$4 sm:$0xff]  }
 0x28b   :  { %5528 = vmatprep.subr.bf16.mxu0 %v7499_v52 }
 0x28d   :  { %5508 = vmatpush2.bf16.msra.mxu1 %v7464_v28 }
 0x28e   :  { %5559 = vmatprep.subr.bf16.mxu1 %v7472_v50  ;;  %5529 = vmatpush1.bf16.msra.mxu0 %v7497_v45  ;;  %v7566_v50 = vld [vmem:[%s10752_s3 + $0x30] sm:$0xff]   ;;  %v7542_v45 = vld [vmem:[%s10749_s1 + $0xf68] ss:$16 sps:$4 sm:$0xff]  }
 0x28f   :  { %5530 = vmatprep.subr.bf16.mxu0 %v7505_v36  ;;  %v7567_v36 = vld [vmem:[%s10752_s3 + $0x68] sm:$0xff]  }
 0x290   :  { %v5265_v47 = vpop.f32.mrf.mxu1  ;;  %5510 = vmatmul.mubr.bf16.vlgmr.msra.gmra.mxu1 %v10953_v55  ;;  %v7548_v55 = vld [vmem:[%s10749_s1 + $0xf48] ss:$16 sps:$4 sm:$0xff]  }
 0x291   :  { %v10440_v49 = vadd.f32 %v5265_v47, %v5225_v57  ;;  %5560 = vmatpush1.bf16.msra.mxu1 %v7470_v46  ;;  %5591 = vmatprep.mubr.bf16.mxu1 %v9699_v35  ;;  %v7490_v35 = vld [vmem:[%s10749_s1 + $0xe8c] ss:$16 sps:$4 sm:$0xff]   ;;  %v7545_v57 = vld [vmem:[%s10749_s1 + $0xd48] ss:$16 sps:$4 sm:$0xff]  }
 0x292   :  { %v10448_v37 = vpop.f32.mrf.mxu1  ;;  %5561 = vmatprep.subr.bf16.mxu1 %v7478_v26  ;;  %5531 = vmatpush1.bf16.msra.mxu0 %v7503_v25  ;;  %v7568_v47 = vld [vmem:[%s10752_s3 + $0x28] sm:$0xff]  }
 0x293   :  { %5532 = vmatprep.subr.bf16.mxu0 %v7511_v41  ;;  %v5268_v29 = vadd.f32 %v10448_v37, %v5227_v2  ;;  %v7556_v41 = vld [vmem:[%s10749_s1 + $0xf2c] ss:$16 sps:$4 sm:$0xff]   ;;  %v7570_v37 = vld [vmem:[%s10752_s3 + $0x20] sm:$0xff]   ;;  %vm5600_vm8 = vcmp.gt.f32.partialorder %v10440_v49, 0.0 }
 0x294   :  { %v5269_v24 = vpop.f32.mrf.mxu1 }
 0x295   :  { %5562 = vmatpush1.bf16.msra.mxu1 %v7476_v56  ;;  %v5605_v58 = vmul.f32 0.01, %v5268_v29  ;;  %vm5601_vm7 = vcmp.gt.f32.partialorder %v5268_v29, 0.0  ;;  %v7569_v56 = vld [vmem:[%s10752_s3 + $0x60] sm:$0xff]   ;;  %v1967_v24 = vsub.s32 2, %v9672_v6 }
 0x296   :  { %v5270_v9 = vpop.f32.mrf.mxu1  ;;  %5563 = vmatprep.subr.bf16.mxu1 %v7484_v3  ;;  %5533 = vmatpush1.bf16.msra.mxu0 %v7509_v27  ;;  %v7554_v3 = vld [vmem:[%s10749_s1 + $0xf28] ss:$16 sps:$4 sm:$0xff]  }
 0x297   :  { %5534 = vmatprep.subr.bf16.mxu0 %v7517_v42  ;;  %v5609_v11 = vsel %vm5601_vm7, %v5268_v29, %v5605_v58  ;;  %v7571_v27 = vld [vmem:[%s10752_s3 + $0x58] sm:$0xff]   ;;  %v1971_v42 = vsub.s32 3, %v9672_v6  ;;  %v7573_v6 = vld [vmem:[%s10752_s3 + $0x50] sm:$0xff]  }
 0x298   :  { %v5613_v28 = vpack.c.bf16 %v5609_v11, %v5609_v11  ;;  %v7572_v9 = vld [vmem:[%s10752_s3 + $0x18] sm:$0xff]   ;;  %v7590_v11 = vld [vmem:[%s10752_s3 + $0x90] sm:$0xff]  }
 0x299   :  { %5564 = vmatpush1.bf16.msra.mxu1 %v7482_v5  ;;  %v7562_v5 = vld [vmem:[%s10749_s1 + $0xf0c] ss:$16 sps:$4 sm:$0xff]  }
 0x29a   :  { %5565 = vmatprep.subr.bf16.mxu1 %v7490_v35  ;;  %5535 = vmatpush2.bf16.msra.mxu0 %v7515_v40  ;;  %v7560_v35 = vld [vmem:[%s10749_s1 + $0xf08] ss:$16 sps:$4 sm:$0xff]   ;;  %v7605_v40 = vld [vmem:[%s10751_s2] sm:$0xf] }
 0x29b   :  { %5536 = vmatprep.subr.bf16.mxu0 %v7523_v1  ;;  %v1972_v1 = vrot.slane %v7605_v40, %v1971_v42  ;;  %v7587_v29 = vld [vmem:[%s10752_s3 + $0xd8] sm:$0xff]  }
 0x29d   :  { %5566 = vmatpush1.bf16.msra.mxu1 %v7488_v13  ;;  %v1968_v13 = vrot.slane %v7605_v40, %v1967_v24 }
 0x29e   :  { %5567 = vmatprep.subr.bf16.mxu1 %v7496_v7  ;;  %5537 = vmatpush2.bf16.msra.mxu0 %v7521_v31  ;;  %v7574_v7 = vld [vmem:[%s10752_s3 + $0x10] sm:$0xff]  }
 0x29f   :  { %5538 = vmatprep.subr.bf16.mxu0 %v7529_v38 }
 0x2a1   :  { %5568 = vmatpush1.bf16.msra.mxu1 %v7494_v0  ;;  %v7575_v0 = vld [vmem:[%s10752_s3 + $0x48] sm:$0xff]  }
 0x2a2   :  { %5569 = vmatprep.subr.bf16.mxu1 %v7502_v63  ;;  %5539 = vmatpush2.bf16.msra.mxu0 %v7527_v33  ;;  %v7576_v33 = vld [vmem:[%s10752_s3 + $0x8] sm:$0xff]  }
 0x2a3   :  { %5540 = vmatprep.subr.bf16.mxu0 %v7535_v12  ;;  %v7577_v12 = vld [vmem:[%s10752_s3 + $0x40] sm:$0xff]  }
 0x2a5   :  { %5570 = vmatpush1.bf16.msra.mxu1 %v7500_v18 }
 0x2a6   :  { %5571 = vmatprep.subr.bf16.mxu1 %v7508_v16  ;;  %5541 = vmatpush2.bf16.msra.mxu0 %v7533_v23  ;;  %v5604_v16 = vmul.f32 0.01, %v10440_v49 }
 0x2a7   :  { %5542 = vmatprep.subr.bf16.mxu0 %v7541_v39 }
 0x2a9   :  { %5572 = vmatpush1.bf16.msra.mxu1 %v7506_v8 }
 0x2aa   :  { %5573 = vmatprep.subr.bf16.mxu1 %v7514_v48  ;;  %5543 = vmatpush2.bf16.msra.mxu0 %v7539_v51  ;;  %v5608_v48 = vsel %vm5600_vm8, %v10440_v49, %v5604_v16  ;;  %v7582_v49 = vld [vmem:[%s10752_s3 + $0xb0] sm:$0xff]  }
 0x2ab   :  { %5544 = vmatprep.subr.bf16.mxu0 %v7547_v34  ;;  %v7580_v34 = vld [vmem:[%s10752_s3 + $0xb8] sm:$0xff]   ;;  %v5612_v2 = vpack.c.bf16 %v5608_v48, %v5608_v48 }
 0x2ad   :  { %5574 = vmatpush1.bf16.msra.mxu1 %v7512_v61  ;;  %v7579_v61 = vld [vmem:[%s10752_s3 + $0xf8] sm:$0xff]  }
 0x2ae   :  { %5575 = vmatprep.subr.bf16.mxu1 %v7520_v19  ;;  %5545 = vmatpush2.bf16.msra.mxu0 %v7545_v57  ;;  %v7581_v19 = vld [vmem:[%s10752_s3 + $0xf0] sm:$0xff]   ;;  %v7583_v57 = vld [vmem:[%s10752_s3 + $0xe8] sm:$0xff]  }
 0x2af   :  { %5546 = vmatprep.subr.bf16.mxu0 %v7553_v30  ;;  %v7585_v30 = vld [vmem:[%s10752_s3 + $0xe0] sm:$0xff]  }
 0x2b1   :  { %5576 = vmatpush2.bf16.msra.mxu1 %v7518_v62  ;;  %v7584_v62 = vld [vmem:[%s10752_s3 + $0xa8] sm:$0xff]  }
 0x2b2   :  { %5577 = vmatprep.subr.bf16.mxu1 %v7526_v21  ;;  %5547 = vmatpush2.bf16.msra.mxu0 %v7551_v22  ;;  %v7586_v21 = vld [vmem:[%s10752_s3 + $0xa0] sm:$0xff]   ;;  %v7588_v22 = vld [vmem:[%s10752_s3 + $0x98] sm:$0xff]  }
 0x2b3   :  { %5548 = vmatprep.subr.bf16.mxu0 %v7559_v10 }
 0x2b5   :  { %5578 = vmatpush2.bf16.msra.mxu1 %v7524_v59 }
 0x2b6   :  { %5579 = vmatprep.subr.bf16.mxu1 %v7532_v54  ;;  %5549 = vmatpush2.bf16.msra.mxu0 %v7557_v20 }
 0x2b7   :  { %6709 = vmatprep.subr.bf16.mxu0 %v7563_v32  ;;  %v7589_v32 = vld [vmem:[%s10752_s3 + $0xd0] sm:$0xff]  }
 0x2b9   :  { %5580 = vmatpush2.bf16.msra.mxu1 %v7530_v53  ;;  %v5306_v52 = vpop.f32.mrf.mxu0  ;;  %5551 = vmatmul.mubr.bf16.vlgmr.msra.gmra.mxu0 %v9765_v15  ;;  %v7550_v15 = vld [vmem:[%s10749_s1 + $0xf4c] ss:$16 sps:$4 sm:$0xff]  }
 0x2ba   :  { %5581 = vmatprep.subr.bf16.mxu1 %v7538_v43  ;;  %6710 = vmatpush3.bf16.msra.mxu0 %v7564_v4  ;;  %v5307_v31 = vadd.f32 %v5306_v52, %v1968_v13  ;;  %v7592_v52 = vld [vmem:[%s10752_s3 + $0x88] sm:$0xff]  }
 0x2bb   :  { %5911 = vmatprep.mubr.bf16.mxu0 %v5613_v28  ;;  %v5308_v46 = vpop.f32.mrf.mxu0  ;;  %6711 = vmatprep.subr.bf16.mxu0 %v7565_v60 }
 0x2bc   :  { %v5309_v38 = vadd.f32 %v5308_v46, %v1972_v1  ;;  %v7594_v46 = vld [vmem:[%s10752_s3 + $0x80] sm:$0xff]  }
 0x2bd   :  { %5582 = vmatpush2.bf16.msra.mxu1 %v7536_v14  ;;  %v5310_v26 = vpop.f32.mrf.mxu0 }
 0x2be   :  { %5583 = vmatprep.subr.bf16.mxu1 %v7544_v17  ;;  %6712 = vmatpush3.bf16.msra.mxu0 %v7566_v50  ;;  %v7591_v17 = vld [vmem:[%s10752_s3 + $0xc8] sm:$0xff]   ;;  %v7596_v26 = vld [vmem:[%s10753_s5 + $0x30] sm:$0xff]  }
 0x2bf   :  { %v5311_v25 = vpop.f32.mrf.mxu0  ;;  %6713 = vmatprep.subr.bf16.mxu0 %v7567_v36  ;;  %v7606_v36 = vmov 0.0  }
 0x2c0   :  { %v7599_v25 = vld [vmem:[%s10753_s5 + $0x18] sm:$0xff]  }
 0x2c1   :  { %5584 = vmatpush2.bf16.msra.mxu1 %v7542_v45  ;;  %v7593_v45 = vld [vmem:[%s10752_s3 + $0xc0] sm:$0xff]  }
 0x2c2   :  { %5585 = vmatprep.subr.bf16.mxu1 %v7550_v15  ;;  %6714 = vmatpush3.bf16.msra.mxu0 %v7568_v47  ;;  %v7595_v15 = vld [vmem:[%s10753_s5 + $0x38] sm:$0xff]   ;;  %v7597_v47 = vld [vmem:[%s10753_s5 + $0x28] sm:$0xff]  }
 0x2c3   :  { %6715 = vmatprep.subr.bf16.mxu0 %v7569_v56 }
 0x2c5   :  { %5586 = vmatpush2.bf16.msra.mxu1 %v7548_v55  ;;  %v7598_v55 = vld [vmem:[%s10753_s5 + $0x20] sm:$0xff]  }
 0x2c6   :  { %5587 = vmatprep.subr.bf16.mxu1 %v7556_v41  ;;  %6716 = vmatpush3.bf16.msra.mxu0 %v7570_v37 }
 0x2c7   :  { %6717 = vmatprep.subr.bf16.mxu0 %v7571_v27 }
 0x2c9   :  { %5588 = vmatpush2.bf16.msra.mxu1 %v7554_v3 }
 0x2ca   :  { %5589 = vmatprep.subr.bf16.mxu1 %v7562_v5  ;;  %6718 = vmatpush3.bf16.msra.mxu0 %v7572_v9 }
 0x2cb   :  { %6719 = vmatprep.subr.bf16.mxu0 %v7573_v6 }
 0x2cd   :  { %5590 = vmatpush2.bf16.msra.mxu1 %v7560_v35 }
 0x2ce   :  { %6720 = vmatpush3.bf16.msra.mxu0 %v7574_v7  ;;  %6731 = vmatprep.subr.bf16.mxu1 %v7579_v61 }
 0x2cf   :  { %6721 = vmatprep.subr.bf16.mxu0 %v7575_v0 }
 0x2d0   :  { %v5347_v63 = vpop.f32.mrf.mxu1  ;;  %5592 = vmatmul.mubr.bf16.vlgmr.msra.gmra.mxu1 %v9829_v44  ;;  %v7578_v44 = vld [vmem:[%s10752_s3] sm:$0xff]  }
 0x2d1   :  { %v5348_v18 = vadd.f32 %v5347_v63, %v5307_v31  ;;  %6732 = vmatpush3.bf16.msra.mxu1 %v7580_v34 }
 0x2d2   :  { %v5349_v23 = vpop.f32.mrf.mxu1  ;;  %6722 = vmatpush3.bf16.msra.mxu0 %v7576_v33  ;;  %6733 = vmatprep.subr.bf16.mxu1 %v7581_v19 }
 0x2d3   :  { %v5350_v8 = vadd.f32 %v5349_v23, %v5309_v38  ;;  %6723 = vmatprep.subr.bf16.mxu0 %v7577_v12 }
 0x2d4   :  { %v5351_v39 = vpop.f32.mrf.mxu1 }
 0x2d5   :  { %6734 = vmatpush3.bf16.msra.mxu1 %v7582_v49 }
 0x2d6   :  { %v5352_v51 = vpop.f32.mrf.mxu1  ;;  %6724 = vmatpush3.bf16.msra.mxu0 %v7578_v44  ;;  %6735 = vmatprep.subr.bf16.mxu1 %v7583_v57 }
 0x2d7   :  { %6765 = vmatprep.subr.bf16.mxu0 %v7606_v36 }
 0x2d9   :  { %5912 = vmatmul.mubr.bf16.vlgmr.msra.gmra.mxu0 %v5612_v2  ;;  %6736 = vmatpush3.bf16.msra.mxu1 %v7584_v62  ;;  %v7600_v62 = vld [vmem:[%s10753_s5 + $0x10] sm:$0xff]  }
 0x2da   :  { %6737 = vmatprep.subr.bf16.mxu1 %v7585_v30  ;;  %6766 = vmatpush3.bf16.msra.mxu0 %v7595_v15  ;;  %v7601_v30 = vld [vmem:[%s10753_s5 + $0x8] sm:$0xff]  }
 0x2db   :  { %6767 = vmatprep.subr.bf16.mxu0 %v7606_v36  ;;  %6781 = vmatprep.mubr.msk.bf16.mxu0 %vm7607_vm11, %v7606_v36 }
 0x2dd   :  { %6738 = vmatpush3.bf16.msra.mxu1 %v7586_v21  ;;  %v7602_v21 = vld [vmem:[%s10753_s5] sm:$0xff]  }
 0x2de   :  { %6739 = vmatprep.subr.bf16.mxu1 %v7587_v29  ;;  %6768 = vmatpush3.bf16.msra.mxu0 %v7596_v26  ;;  %v6663_v29 = vld [vmem:[%s10754_s4] ss:$0 sm:$0xff] }
 0x2df   :  { %6769 = vmatprep.subr.bf16.mxu0 %v7606_v36 }
 0x2e1   :  { %6740 = vmatpush3.bf16.msra.mxu1 %v7588_v22 }
 0x2e2   :  { %6741 = vmatprep.subr.bf16.mxu1 %v7589_v32  ;;  %6770 = vmatpush3.bf16.msra.mxu0 %v7597_v47 }
 0x2e3   :  { %6771 = vmatprep.subr.bf16.mxu0 %v7606_v36 }
 0x2e5   :  { %6742 = vmatpush3.bf16.msra.mxu1 %v7590_v11 }
 0x2e6   :  { %6743 = vmatprep.subr.bf16.mxu1 %v7591_v17  ;;  %6772 = vmatpush3.bf16.msra.mxu0 %v7598_v55  ;;  %v6696_v17 = vld [vmem:[%s10757_s6] ss:$0 sm:$0xff] }
 0x2e7   :  { %6773 = vmatprep.subr.bf16.mxu0 %v7606_v36 }
 0x2e9   :  { %6744 = vmatpush3.bf16.msra.mxu1 %v7592_v52 }
 0x2ea   :  { %6745 = vmatprep.subr.bf16.mxu1 %v7593_v45  ;;  %6774 = vmatpush3.bf16.msra.mxu0 %v7599_v25 }
 0x2eb   :  { %6775 = vmatprep.subr.bf16.mxu0 %v7606_v36 }
 0x2ed   :  { %6746 = vmatpush3.bf16.msra.mxu1 %v7594_v46 }
 0x2ee   :  { %6785 = vmatprep.subr.bf16.mxu1 %v7606_v36  ;;  %6776 = vmatpush3.bf16.msra.mxu0 %v7600_v62 }
 0x2ef   :  { %6777 = vmatprep.subr.bf16.mxu0 %v7606_v36 }
 0x2f2   :  { %6778 = vmatpush3.bf16.msra.mxu0 %v7601_v30 }
 0x2f3   :  { %6779 = vmatprep.subr.bf16.mxu0 %v7606_v36 }
 0x2f6   :  { %6780 = vmatpush3.bf16.msra.mxu0 %v7602_v21 }
 0x2f9   :  { %v5388_v59 = vpop.f32.mrf.mxu0 }
 0x2fa   :  { %v5389_v10 = vadd.f32 %v5388_v59, %v5348_v18 }
 0x2fb   :  { %v5390_v54 = vpop.f32.mrf.mxu0 }
 0x2fc   :  { %v5391_v58 = vadd.f32 %v5390_v54, %v5350_v8 }
 0x2fd   :  { %v5392_v20 = vpop.f32.mrf.mxu0 }
 0x2ff   :  { %v5393_v53 = vpop.f32.mrf.mxu0 }
 0x310   :  { %v5429_v43 = vpop.f32.mrf.mxu1 }
 0x311   :  { %v5430_v4 = vadd.f32 %v5429_v43, %v5389_v10 }
 0x312   :  { %v5431_v14 = vpop.f32.mrf.mxu1 }
 0x313   :  { %v5432_v60 = vadd.f32 %v5431_v14, %v5391_v58  ;;  %v7604_v14 = vld [vmem:[%s10755_s7] sm:$0xff]  }
 0x314   :  { %v5433_v28 = vpop.f32.mrf.mxu1 }
 0x316   :  { %v5434_v50 = vpop.f32.mrf.mxu1 }
 0x339   :  { %v5470_v56 = vpop.f32.mrf.mxu0 }
 0x33a   :  { %v5471_v41 = vadd.f32 %v5470_v56, %v5430_v4  ;;  %v7603_v4 = vld [vmem:[%s10755_s7 + $0x8] sm:$0xff]  }
 0x33b   :  { %v5472_v37 = vpop.f32.mrf.mxu0 }
 0x33c   :  { %v5473_v3 = vadd.f32 %v5472_v37, %v5432_v60  ;;  %v14_v60 = vstv %s10756_s8 }
 0x33d   :  { %v5474_v24 = vpop.f32.mrf.mxu0  ;;  %15 = vst [vmem:[#allocation2] sm:$0x1] %v14_v60 }
 0x33f   :  { %v5475_v27 = vpop.f32.mrf.mxu0 }
 0x344   :  { %v6705_v47 = vld [vmem:[#allocation2] ss:$0 sm:$0xff] }
 0x350   :  { %v5511_v5 = vpop.f32.mrf.mxu1 }
 0x351   :  { %v5512_v7 = vadd.f32 %v5511_v5, %v5471_v41 }
 0x352   :  { %v5513_v42 = vpop.f32.mrf.mxu1 }
 0x353   :  { %v5514_v31 = vadd.f32 %v5513_v42, %v5473_v3 }
 0x354   :  { %v5515_v9 = vpop.f32.mrf.mxu1 }
 0x356   :  { %v5516_v35 = vpop.f32.mrf.mxu1 }
 0x379   :  { %v5552_v40 = vpop.f32.mrf.mxu0 }
 0x37a   :  { %v5553_v0 = vadd.f32 %v5552_v40, %v5512_v7 }
 0x37b   :  { %v5554_v13 = vpop.f32.mrf.mxu0 }
 0x37c   :  { %v5555_v38 = vadd.f32 %v5554_v13, %v5514_v31 }
 0x37d   :  { %v5556_v6 = vpop.f32.mrf.mxu0 }
 0x37f   :  { %v5557_v1 = vpop.f32.mrf.mxu0 }
 0x390   :  { %v5593_v63 = vpop.f32.mrf.mxu1 }
 0x391   :  { %v5594_v33 = vadd.f32 %v5593_v63, %v5553_v0 }
 0x392   :  { %v5595_v18 = vpop.f32.mrf.mxu1 }
 0x393   :  { %vm5602_vm9 = vcmp.gt.f32.partialorder %v5594_v33, 0.0  ;;  %v5606_v12 = vmul.f32 0.01, %v5594_v33  ;;  %v5596_v16 = vadd.f32 %v5595_v18, %v5555_v38 }
 0x394   :  { %v5597_v23 = vpop.f32.mrf.mxu1 }
 0x395   :  { %vm5603_vm10 = vcmp.gt.f32.partialorder %v5596_v16, 0.0  ;;  %v5607_v8 = vmul.f32 0.01, %v5596_v16  ;;  %v5610_v39 = vsel %vm5602_vm9, %v5594_v33, %v5606_v12 }
 0x396   :  { %v5598_v44 = vpop.f32.mrf.mxu1  ;;  %v5614_v61 = vpack.c.bf16 %v5610_v39, %v5610_v39 }
 0x397   :  { %v5611_v48 = vsel %vm5603_vm10, %v5596_v16, %v5607_v8 }
 0x398   :  { %v5615_v51 = vpack.c.bf16 %v5611_v48, %v5611_v48 }
 0x399   :  { %v6725_v34 = vpop.f32.mrf.mxu0 }
 0x39a   :  { %5951 = vmatprep.mubr.bf16.mxu1 %v5615_v51 }
 0x39b   :  { %5952 = vmatmul.mubr.bf16.vlgmr.msra.gmra.mxu1 %v5614_v61  ;;  %v6726_v19 = vpop.f32.mrf.mxu0 }
 0x39c   :  { %v6727_v2 = vadd.f32 %v6726_v19, %v6725_v34  ;;  %6789 = vmatprep.mubr.msk.bf16.mxu1 %vm7607_vm11, %v7606_v36  ;;  %6786 = vmatpush3.bf16.msra.mxu1 %v7603_v4 }
 0x39d   :  { %v6728_v49 = vpop.f32.mrf.mxu0  ;;  %6787 = vmatprep.subr.bf16.mxu1 %v7606_v36 }
 0x39e   :  { %v5914_v10 = vadd.f32 %v6727_v2, %v6663_v29 }
 0x39f   :  { %v6729_v57 = vpop.f32.mrf.mxu0 }
 0x3a0   :  { %6788 = vmatpush3.bf16.msra.mxu1 %v7604_v14 }
 0x45b   :  { %v6747_v22 = vpop.f32.mrf.mxu1 }
 0x45d   :  { %v6748_v59 = vpop.f32.mrf.mxu1 }
 0x45e   :  { %v6749_v54 = vadd.f32 %v6748_v59, %v6747_v22 }
 0x45f   :  { %v6750_v58 = vpop.f32.mrf.mxu1 }
 0x460   :  { %v5954_v20 = vadd.f32 %v6749_v54, %v5914_v10 }
 0x461   :  { %v6751_v53 = vpop.f32.mrf.mxu1 }
 0x462   :  { %vm5959_vm12 = vcmp.gt.f32.partialorder %v5954_v20, 0.0  ;;  %v5960_v32 = vmul.f32 0.01, %v5954_v20 }
 0x464   :  { %v5961_v43 = vsel %vm5959_vm12, %v5954_v20, %v5960_v32 }
 0x465   :  { %v5962_v11 = vpack.c.bf16 %v5961_v43, %v5961_v43 }
 0x467   :  { %6782 = vmatmul.mubr.bf16.vlgmr.msra.gmra.mxu0 %v5962_v11 }
 0x527   :  { %v6068_v28 = vpop.f32.mrf.mxu0 }
 0x528   :  { %v6069_v52 = vadd.f32 %v6696_v17, %v6068_v28 }
 0x529   :  { %v6783_v50 = vpop.f32.mrf.mxu0 }
 0x52a   :  { %vm6074_vm13 = vcmp.gt.f32.partialorder %v6069_v52, 0.0  ;;  %v6075_v45 = vmul.f32 0.01, %v6069_v52 }
 0x52b   :  { %v6071_v46 = vpop.f32.mrf.mxu0 }
 0x52c   :  { %v6076_v36 = vsel %vm6074_vm13, %v6069_v52, %v6075_v45 }
 0x52d   :  { %v6077_v15 = vpack.c.bf16 %v6076_v36, %v6076_v36  ;;  %v6784_v26 = vpop.f32.mrf.mxu0 }
 0x52f   :  { %6790 = vmatmul.mubr.msk.bf16.vlgmr.msra.gmra.mxu1 %vm6101_vm14, %v6077_v15 }
 0x5ef   :  { %v6139_v55 = vpop.f32.mrf.mxu1 }
 0x5f0   :  { %v6140_v25 = vadd.f32 %v6705_v47, %v6139_v55 }
 0x5f1   :  { %v6791_v56 = vpop.f32.mrf.mxu1 }
 0x5f2   :  { %6146 = vst.msk [vmem:[%s10758_s9] sm:$0xff] %vm6145_vm15, %v6140_v25 }
 0x5f3   :  { %v6142_v41 = vpop.f32.mrf.mxu1 }
 0x5f5   :  { %v6792_v37 = vpop.f32.mrf.mxu1 }

</bundles_post_ra>
